<compile_context>
chip_gen: v7x
topology: tpu7x:2x2x1
jax: 0.10.0
libtpu: 0.0.40
codegen_flags: <defaults>
</compile_context>

<pallas_src>
import functools

import jax
import jax.numpy as jnp
from jax.experimental import pallas as pl
from jax.experimental.pallas import tpu as pltpu

_VMEM_LIMIT = 48 * 1024 * 1024


# ----------------------------------------------------------------------------
# In-kernel helpers (pure value-level jnp, traced inside the kernels)
# ----------------------------------------------------------------------------
def _pad1_hw(x):
    """Zero-pad an (H, W, C) value by 1 on both spatial dims (in VMEM)."""
    H, W, C = x.shape
    zr = jnp.zeros((1, W, C), x.dtype)
    x = jnp.concatenate([zr, x, zr], axis=0)           # (H+2, W, C)
    zc = jnp.zeros((H + 2, 1, C), x.dtype)
    return jnp.concatenate([zc, x, zc], axis=1)        # (H+2, W+2, C)


def _im2col3x3(xp, H, W, C):
    """(H+2, W+2, C) padded input -> (H*W, 9*C) im2col matrix (dy,dx,c order)."""
    cols = []
    for dy in range(3):
        for dx in range(3):
            cols.append(xp[dy:dy + H, dx:dx + W, :].reshape(H * W, C))
    return jnp.concatenate(cols, axis=-1)


# ----------------------------------------------------------------------------
# Kernel A: fused DecoderBlock  (conv0 3x3 + ReLU, conv1 3x3, residual add)
# ----------------------------------------------------------------------------
def _decoder_block_kernel(x_ref, w0_ref, b0_ref, w1_ref, b1_ref, o_ref,
                          *, H, W, C, compute_dtype):
    x = x_ref[0]                                                    # (H, W, C)
    # conv0: one im2col matmul with K = 9*C, then bias + ReLU
    cols0 = _im2col3x3(_pad1_hw(x), H, W, C).astype(compute_dtype)
    h = jnp.dot(cols0, w0_ref[...],
                preferred_element_type=jnp.float32) + b0_ref[...]
    h = jnp.maximum(h, 0.0)                                         # (H*W, C)
    # conv1: second im2col matmul, bias, then residual add (h stays in VMEM)
    cols1 = _im2col3x3(_pad1_hw(h.reshape(H, W, C)), H, W, C)
    cols1 = cols1.astype(compute_dtype)
    y = jnp.dot(cols1, w1_ref[...],
                preferred_element_type=jnp.float32) + b1_ref[...]
    y = y + x.reshape(H * W, C).astype(jnp.float32)
    o_ref[0] = y.reshape(H, W, C).astype(o_ref.dtype)


def decoder_block(x, w0, b0, w1, b1, *, compute_dtype=None):
    """DecoderBlock: x (N,H,W,C), w* (3,3,C,C), b* (C,). Returns (N,H,W,C)."""
    N, H, W, C = x.shape
    cd = compute_dtype or x.dtype
    w0f = w0.reshape(9 * C, C).astype(cd)      # (dy,dx,cin)-major rows
    w1f = w1.reshape(9 * C, C).astype(cd)
    b0r = b0.reshape(1, C)
    b1r = b1.reshape(1, C)
    kernel = functools.partial(_decoder_block_kernel,
                               H=H, W=W, C=C, compute_dtype=cd)
    return pl.pallas_call(
        kernel,
        out_shape=jax.ShapeDtypeStruct((N, H, W, C), x.dtype),
        grid=(N,),
        in_specs=[
            pl.BlockSpec((1, H, W, C), lambda n: (n, 0, 0, 0)),
            pl.BlockSpec((9 * C, C), lambda n: (0, 0)),
            pl.BlockSpec((1, C), lambda n: (0, 0)),
            pl.BlockSpec((9 * C, C), lambda n: (0, 0)),
            pl.BlockSpec((1, C), lambda n: (0, 0)),
        ],
        out_specs=pl.BlockSpec((1, H, W, C), lambda n: (n, 0, 0, 0)),
        compiler_params=pltpu.CompilerParams(
            dimension_semantics=("parallel",),
            vmem_limit_bytes=_VMEM_LIMIT),
    )(x, w0f, b0r, w1f, b1r)


# ----------------------------------------------------------------------------
# Kernel B: fused ConvTranspose2d(k=2,s=2) + 1x1 proj conv (ReLU) + add,
# reading skip in natural NHWC layout and writing spatial output directly.
# ----------------------------------------------------------------------------
def _upsample_proj_kernel(x_ref, skip_ref, wt_ref, bt_ref, wp_ref, bp_ref,
                          o_ref, *, H, W, Cout, compute_dtype):
    Cin = x_ref.shape[-1]
    Csk = skip_ref.shape[-1]
    x2 = x_ref[0].reshape(H * W, Cin).astype(compute_dtype)
    # Transposed conv: one small matmul per output quadrant q = ky*2+kx
    # (keeps all in-kernel reshapes in the lane-preserving class).
    uq = [jnp.dot(x2, wt_ref[q],
                  preferred_element_type=jnp.float32).reshape(H, W, Cout)
          for q in range(4)]
    # interleave kx along width: (H, W, 2, Cout) -> (H, 2W, Cout)
    rows = [jnp.stack([uq[2 * ky + 0], uq[2 * ky + 1]],
                      axis=2).reshape(H, 2 * W, Cout) for ky in range(2)]
    # interleave ky along height: (H, 2, 2W, Cout) -> (2H, 2W, Cout)
    up = jnp.stack(rows, axis=1).reshape(2 * H, 2 * W, Cout) + bt_ref[...]
    # 1x1 projection conv: one big matmul over all 4*H*W skip pixels (natural
    # layout, no per-quadrant loop, no concatenate).
    skip2 = skip_ref[0].reshape(4 * H * W, Csk).astype(compute_dtype)
    proj = jnp.dot(skip2, wp_ref[...],
                   preferred_element_type=jnp.float32) + bp_ref[...]
    proj = jnp.maximum(proj, 0.0).reshape(2 * H, 2 * W, Cout)
    o_ref[0] = (up + proj).astype(o_ref.dtype)


def upsample_proj_add(x, skip, wt, bt, wp, bp, *, compute_dtype=None):
    """x: (N,H,W,Cin), skip: (N,2H,2W,Csk), wt: (Cin,2,2,Cout). -> (N,2H,2W,Cout)."""
    N, H, W, Cin = x.shape
    Cout = wt.shape[-1]
    Csk = skip.shape[-1]
    cd = compute_dtype or x.dtype
    # (Cin, ky, kx, Cout) -> (q=ky*2+kx, Cin, Cout); tiny weight, cast once.
    wt_q = jnp.transpose(wt, (1, 2, 0, 3)).reshape(4, Cin, Cout).astype(cd)
    wp2 = wp.astype(cd)
    bt2 = bt.reshape(1, Cout)
    bp2 = bp.reshape(1, Cout)
    kernel = functools.partial(_upsample_proj_kernel,
                               H=H, W=W, Cout=Cout, compute_dtype=cd)
    return pl.pallas_call(
        kernel,
        out_shape=jax.ShapeDtypeStruct((N, 2 * H, 2 * W, Cout), x.dtype),
        grid=(N,),
        in_specs=[
            pl.BlockSpec((1, H, W, Cin), lambda n: (n, 0, 0, 0)),
            pl.BlockSpec((1, 2 * H, 2 * W, Csk), lambda n: (n, 0, 0, 0)),
            pl.BlockSpec((4, Cin, Cout), lambda n: (0, 0, 0)),
            pl.BlockSpec((1, Cout), lambda n: (0, 0)),
            pl.BlockSpec((Csk, Cout), lambda n: (0, 0)),
            pl.BlockSpec((1, Cout), lambda n: (0, 0)),
        ],
        out_specs=pl.BlockSpec((1, 2 * H, 2 * W, Cout), lambda n: (n, 0, 0, 0)),
        compiler_params=pltpu.CompilerParams(
            dimension_semantics=("parallel",),
            vmem_limit_bytes=_VMEM_LIMIT),
    )(x, skip, wt_q, bt2, wp2, bp2)


# ----------------------------------------------------------------------------
# DecoderStage forward
# ----------------------------------------------------------------------------
def decoder_stage_forward_nhwc(params, inp, skip, *, compute_dtype=None):
    """NHWC entry point (no boundary transposes)."""
    x = decoder_block(inp, params["w0"], params["b0"],
                      params["w1"], params["b1"], compute_dtype=compute_dtype)
    return upsample_proj_add(x, skip, params["wt"], params["bt"],
                             params["wp"], params["bp"],
                             compute_dtype=compute_dtype)


def decoder_stage_forward(params, inp_nchw, skip_nchw, *, compute_dtype=None):
    # NCHW boundary kept only for parity with the PyTorch module; callers that
    # can supply NHWC should use decoder_stage_forward_nhwc directly and skip
    # these full-tensor transposes.
    inp = jnp.transpose(inp_nchw, (0, 2, 3, 1))
    skip = jnp.transpose(skip_nchw, (0, 2, 3, 1))
    out = decoder_stage_forward_nhwc(params, inp, skip,
                                     compute_dtype=compute_dtype)
    return jnp.transpose(out, (0, 3, 1, 2))


def init_params(key, in_ch, skip_in_ch, out_ch):
    ks = jax.random.split(key, 8)
    s = 0.1
    return dict(
        w0=s * jax.random.normal(ks[0], (3, 3, in_ch, in_ch), jnp.float32),
        b0=s * jax.random.normal(ks[1], (in_ch,), jnp.float32),
        w1=s * jax.random.normal(ks[2], (3, 3, in_ch, in_ch), jnp.float32),
        b1=s * jax.random.normal(ks[3], (in_ch,), jnp.float32),
        wt=s * jax.random.normal(ks[4], (in_ch, 2, 2, out_ch), jnp.float32),
        bt=s * jax.random.normal(ks[5], (out_ch,), jnp.float32),
        wp=s * jax.random.normal(ks[6], (skip_in_ch, out_ch), jnp.float32),
        bp=s * jax.random.normal(ks[7], (out_ch,), jnp.float32),
    )


# ----------------------------------------------------------------------------
# Pure-JAX reference (same params / layouts) for correctness checking
# ----------------------------------------------------------------------------
def _ref_forward(params, inp_nchw, skip_nchw):
    inp = jnp.transpose(inp_nchw, (0, 2, 3, 1))
    skip = jnp.transpose(skip_nchw, (0, 2, 3, 1))

    def conv(x, w, b, relu):
        o = jax.lax.conv_general_dilated(
            x, w, window_strides=(1, 1), padding="SAME",
            dimension_numbers=("NHWC", "HWIO", "NHWC"))
        o = o + b
        return jnp.maximum(o, 0.0) if relu else o

    h = conv(inp, params["w0"], params["b0"], True)
    x = conv(h, params["w1"], params["b1"], False) + inp
    up = jnp.einsum("nijc,cpqd->nijpqd", x, params["wt"]) + params["bt"]
    N, H, W = up.shape[:3]
    Cout = up.shape[-1]
    up = up.transpose(0, 1, 3, 2, 4, 5).reshape(N, 2 * H, 2 * W, Cout)
    y = jnp.maximum(
        jnp.einsum("nijc,cd->nijd", skip, params["wp"]) + params["bp"], 0.0)
    return jnp.transpose(up + y, (0, 3, 1, 2))


if __name__ == "__main__":
    N, in_ch, skip_ch, out_ch, H, W = 2, 8, 16, 8, 8, 8
    key = jax.random.PRNGKey(0)
    k_inp, k_skip, k_par = jax.random.split(key, 3)
    inp = jax.random.normal(k_inp, (N, in_ch, H, W), jnp.float32)          # NCHW
    skip = jax.random.normal(k_skip, (N, skip_ch, 2 * H, 2 * W), jnp.float32)
    params = init_params(k_par, in_ch, skip_ch, out_ch)

    fwd = jax.jit(decoder_stage_forward)   # f32; pass compute_dtype=bf16 on v6e/v7x
    out = jax.block_until_ready(fwd(params, inp, skip))
    ref = jax.block_until_ready(_ref_forward(params, inp, skip))

    assert out.shape == (N, out_ch, 2 * H, 2 * W), out.shape
    err = float(jnp.max(jnp.abs(out - ref)))
    assert err < 1e-3, f"max abs err {err}"
    print("KERNEL_OK")
</pallas_src>

<mosaic_0001>
module attributes {stable_mosaic.version = 11 : i64} {
  func.func @_decoder_block_kernel(%arg0: i32, %arg1: memref<1x8x8x8xf32, #tpu.memory_space<vmem>>, %arg2: memref<72x8xf32, #tpu.memory_space<vmem>>, %arg3: memref<1x8xf32, #tpu.memory_space<vmem>>, %arg4: memref<72x8xf32, #tpu.memory_space<vmem>>, %arg5: memref<1x8xf32, #tpu.memory_space<vmem>>, %arg6: memref<1x8x8x8xf32, #tpu.memory_space<vmem>>) attributes {dimension_semantics = [#tpu.dimension_semantics<parallel>], iteration_bounds = array<i64: 2>, scalar_prefetch = 0 : i64, scratch_operands = 0 : i64, tpu.core_type = #tpu.core_type<tc>, window_params = [{transform_indices = @transform_0, window_bounds = array<i64: 1, 8, 8, 8>}, {pipeline_mode = #tpu.pipeline_mode<synchronous>, transform_indices = @transform_1, window_bounds = array<i64: 72, 8>}, {pipeline_mode = #tpu.pipeline_mode<synchronous>, transform_indices = @transform_2, window_bounds = array<i64: 1, 8>}, {pipeline_mode = #tpu.pipeline_mode<synchronous>, transform_indices = @transform_3, window_bounds = array<i64: 72, 8>}, {pipeline_mode = #tpu.pipeline_mode<synchronous>, transform_indices = @transform_4, window_bounds = array<i64: 1, 8>}, {transform_indices = @transform_5, window_bounds = array<i64: 1, 8, 8, 8>}]} {
    %c0 = arith.constant 0 : index
    %c0_0 = arith.constant 0 : index
    %c0_1 = arith.constant 0 : index
    %c0_2 = arith.constant 0 : index
    %0 = vector.load %arg1[%c0, %c0_0, %c0_1, %c0_2] : memref<1x8x8x8xf32, #tpu.memory_space<vmem>>, vector<1x8x8x8xf32>
    %1 = vector.shape_cast %0 : vector<1x8x8x8xf32> to vector<8x8x8xf32>
    %cst = arith.constant 0.000000e+00 : f32
    %2 = vector.broadcast %cst : f32 to vector<1x8x8xf32>
    %3 = tpu.concatenate %2, %1, %2 in 0 : vector<1x8x8xf32>, vector<8x8x8xf32>, vector<1x8x8xf32> -> vector<10x8x8xf32>
    %cst_3 = arith.constant 0.000000e+00 : f32
    %4 = vector.broadcast %cst_3 : f32 to vector<10x1x8xf32>
    %5 = tpu.concatenate %4, %3, %4 in 1 : vector<10x1x8xf32>, vector<10x8x8xf32>, vector<10x1x8xf32> -> vector<10x10x8xf32>
    %6 = vector.extract_strided_slice %5 {offsets = [0, 0, 0], sizes = [8, 8, 8], strides = [1, 1, 1]} : vector<10x10x8xf32> to vector<8x8x8xf32>
    %7 = vector.shape_cast %6 : vector<8x8x8xf32> to vector<64x8xf32>
    %8 = vector.extract_strided_slice %5 {offsets = [0, 1, 0], sizes = [8, 8, 8], strides = [1, 1, 1]} : vector<10x10x8xf32> to vector<8x8x8xf32>
    %9 = vector.shape_cast %8 : vector<8x8x8xf32> to vector<64x8xf32>
    %10 = vector.extract_strided_slice %5 {offsets = [0, 2, 0], sizes = [8, 8, 8], strides = [1, 1, 1]} : vector<10x10x8xf32> to vector<8x8x8xf32>
    %11 = vector.shape_cast %10 : vector<8x8x8xf32> to vector<64x8xf32>
    %12 = vector.extract_strided_slice %5 {offsets = [1, 0, 0], sizes = [8, 8, 8], strides = [1, 1, 1]} : vector<10x10x8xf32> to vector<8x8x8xf32>
    %13 = vector.shape_cast %12 : vector<8x8x8xf32> to vector<64x8xf32>
    %14 = vector.extract_strided_slice %5 {offsets = [1, 1, 0], sizes = [8, 8, 8], strides = [1, 1, 1]} : vector<10x10x8xf32> to vector<8x8x8xf32>
    %15 = vector.shape_cast %14 : vector<8x8x8xf32> to vector<64x8xf32>
    %16 = vector.extract_strided_slice %5 {offsets = [1, 2, 0], sizes = [8, 8, 8], strides = [1, 1, 1]} : vector<10x10x8xf32> to vector<8x8x8xf32>
    %17 = vector.shape_cast %16 : vector<8x8x8xf32> to vector<64x8xf32>
    %18 = vector.extract_strided_slice %5 {offsets = [2, 0, 0], sizes = [8, 8, 8], strides = [1, 1, 1]} : vector<10x10x8xf32> to vector<8x8x8xf32>
    %19 = vector.shape_cast %18 : vector<8x8x8xf32> to vector<64x8xf32>
    %20 = vector.extract_strided_slice %5 {offsets = [2, 1, 0], sizes = [8, 8, 8], strides = [1, 1, 1]} : vector<10x10x8xf32> to vector<8x8x8xf32>
    %21 = vector.shape_cast %20 : vector<8x8x8xf32> to vector<64x8xf32>
    %22 = vector.extract_strided_slice %5 {offsets = [2, 2, 0], sizes = [8, 8, 8], strides = [1, 1, 1]} : vector<10x10x8xf32> to vector<8x8x8xf32>
    %23 = vector.shape_cast %22 : vector<8x8x8xf32> to vector<64x8xf32>
    %24 = tpu.concatenate %7, %9, %11, %13, %15, %17, %19, %21, %23 in 1 : vector<64x8xf32>, vector<64x8xf32>, vector<64x8xf32>, vector<64x8xf32>, vector<64x8xf32>, vector<64x8xf32>, vector<64x8xf32>, vector<64x8xf32>, vector<64x8xf32> -> vector<64x72xf32>
    %c0_4 = arith.constant 0 : index
    %c0_5 = arith.constant 0 : index
    %25 = vector.load %arg2[%c0_4, %c0_5] : memref<72x8xf32, #tpu.memory_space<vmem>>, vector<72x8xf32>
    %cst_6 = arith.constant dense<0.000000e+00> : vector<64x8xf32>
    %26 = tpu.matmul %24, %25, %cst_6 {dimension_numbers = #tpu.dot_dimension_numbers<[1], [0], [0], [1], [0, 0, 1, 1], [], []>} : vector<64x72xf32>, vector<72x8xf32>, vector<64x8xf32> -> vector<64x8xf32>
    %c0_7 = arith.constant 0 : index
    %c0_8 = arith.constant 0 : index
    %27 = vector.load %arg3[%c0_7, %c0_8] : memref<1x8xf32, #tpu.memory_space<vmem>>, vector<1x8xf32>
    %28 = vector.broadcast %27 : vector<1x8xf32> to vector<64x8xf32>
    %29 = arith.addf %26, %28 : vector<64x8xf32>
    %cst_9 = arith.constant 0.000000e+00 : f32
    %30 = vector.broadcast %cst_9 : f32 to vector<64x8xf32>
    %31 = arith.maximumf %29, %30 : vector<64x8xf32>
    %32 = vector.shape_cast %31 : vector<64x8xf32> to vector<8x8x8xf32>
    %cst_10 = arith.constant 0.000000e+00 : f32
    %33 = vector.broadcast %cst_10 : f32 to vector<1x8x8xf32>
    %34 = tpu.concatenate %33, %32, %33 in 0 : vector<1x8x8xf32>, vector<8x8x8xf32>, vector<1x8x8xf32> -> vector<10x8x8xf32>
    %cst_11 = arith.constant 0.000000e+00 : f32
    %35 = vector.broadcast %cst_11 : f32 to vector<10x1x8xf32>
    %36 = tpu.concatenate %35, %34, %35 in 1 : vector<10x1x8xf32>, vector<10x8x8xf32>, vector<10x1x8xf32> -> vector<10x10x8xf32>
    %37 = vector.extract_strided_slice %36 {offsets = [0, 0, 0], sizes = [8, 8, 8], strides = [1, 1, 1]} : vector<10x10x8xf32> to vector<8x8x8xf32>
    %38 = vector.shape_cast %37 : vector<8x8x8xf32> to vector<64x8xf32>
    %39 = vector.extract_strided_slice %36 {offsets = [0, 1, 0], sizes = [8, 8, 8], strides = [1, 1, 1]} : vector<10x10x8xf32> to vector<8x8x8xf32>
    %40 = vector.shape_cast %39 : vector<8x8x8xf32> to vector<64x8xf32>
    %41 = vector.extract_strided_slice %36 {offsets = [0, 2, 0], sizes = [8, 8, 8], strides = [1, 1, 1]} : vector<10x10x8xf32> to vector<8x8x8xf32>
    %42 = vector.shape_cast %41 : vector<8x8x8xf32> to vector<64x8xf32>
    %43 = vector.extract_strided_slice %36 {offsets = [1, 0, 0], sizes = [8, 8, 8], strides = [1, 1, 1]} : vector<10x10x8xf32> to vector<8x8x8xf32>
    %44 = vector.shape_cast %43 : vector<8x8x8xf32> to vector<64x8xf32>
    %45 = vector.extract_strided_slice %36 {offsets = [1, 1, 0], sizes = [8, 8, 8], strides = [1, 1, 1]} : vector<10x10x8xf32> to vector<8x8x8xf32>
    %46 = vector.shape_cast %45 : vector<8x8x8xf32> to vector<64x8xf32>
    %47 = vector.extract_strided_slice %36 {offsets = [1, 2, 0], sizes = [8, 8, 8], strides = [1, 1, 1]} : vector<10x10x8xf32> to vector<8x8x8xf32>
    %48 = vector.shape_cast %47 : vector<8x8x8xf32> to vector<64x8xf32>
    %49 = vector.extract_strided_slice %36 {offsets = [2, 0, 0], sizes = [8, 8, 8], strides = [1, 1, 1]} : vector<10x10x8xf32> to vector<8x8x8xf32>
    %50 = vector.shape_cast %49 : vector<8x8x8xf32> to vector<64x8xf32>
    %51 = vector.extract_strided_slice %36 {offsets = [2, 1, 0], sizes = [8, 8, 8], strides = [1, 1, 1]} : vector<10x10x8xf32> to vector<8x8x8xf32>
    %52 = vector.shape_cast %51 : vector<8x8x8xf32> to vector<64x8xf32>
    %53 = vector.extract_strided_slice %36 {offsets = [2, 2, 0], sizes = [8, 8, 8], strides = [1, 1, 1]} : vector<10x10x8xf32> to vector<8x8x8xf32>
    %54 = vector.shape_cast %53 : vector<8x8x8xf32> to vector<64x8xf32>
    %55 = tpu.concatenate %38, %40, %42, %44, %46, %48, %50, %52, %54 in 1 : vector<64x8xf32>, vector<64x8xf32>, vector<64x8xf32>, vector<64x8xf32>, vector<64x8xf32>, vector<64x8xf32>, vector<64x8xf32>, vector<64x8xf32>, vector<64x8xf32> -> vector<64x72xf32>
    %c0_12 = arith.constant 0 : index
    %c0_13 = arith.constant 0 : index
    %56 = vector.load %arg4[%c0_12, %c0_13] : memref<72x8xf32, #tpu.memory_space<vmem>>, vector<72x8xf32>
    %cst_14 = arith.constant dense<0.000000e+00> : vector<64x8xf32>
    %57 = tpu.matmul %55, %56, %cst_14 {dimension_numbers = #tpu.dot_dimension_numbers<[1], [0], [0], [1], [0, 0, 1, 1], [], []>} : vector<64x72xf32>, vector<72x8xf32>, vector<64x8xf32> -> vector<64x8xf32>
    %c0_15 = arith.constant 0 : index
    %c0_16 = arith.constant 0 : index
    %58 = vector.load %arg5[%c0_15, %c0_16] : memref<1x8xf32, #tpu.memory_space<vmem>>, vector<1x8xf32>
    %59 = vector.broadcast %58 : vector<1x8xf32> to vector<64x8xf32>
    %60 = arith.addf %57, %59 : vector<64x8xf32>
    %61 = vector.shape_cast %1 : vector<8x8x8xf32> to vector<64x8xf32>
    %62 = arith.addf %60, %61 : vector<64x8xf32>
    %63 = vector.shape_cast %62 : vector<64x8xf32> to vector<8x8x8xf32>
    %c0_17 = arith.constant 0 : index
    %c0_18 = arith.constant 0 : index
    %c0_19 = arith.constant 0 : index
    %c0_20 = arith.constant 0 : index
    %64 = vector.load %arg6[%c0_17, %c0_18, %c0_19, %c0_20] : memref<1x8x8x8xf32, #tpu.memory_space<vmem>>, vector<1x8x8x8xf32>
    %65 = vector.shape_cast %64 : vector<1x8x8x8xf32> to vector<8x8x8xf32>
    %66 = vector.shape_cast %63 : vector<8x8x8xf32> to vector<1x8x8x8xf32>
    tpu.vector_store %arg6[%c0_17, %c0_18, %c0_19, %c0_20], %66 {strides = array<i32>} : memref<1x8x8x8xf32, #tpu.memory_space<vmem>>, vector<1x8x8x8xf32>,
    return
  }
  func.func @transform_0(%arg0: i32) -> (i32, i32, i32, i32) {
    %c0_i32 = arith.constant 0 : i32
    %c0_i32_0 = arith.constant 0 : i32
    %c0_i32_1 = arith.constant 0 : i32
    %c0_i32_2 = arith.constant 0 : i32
    return %arg0, %c0_i32, %c0_i32_0, %c0_i32_1 : i32, i32, i32, i32
  }
  func.func @transform_1(%arg0: i32) -> (i32, i32) {
    %c0_i32 = arith.constant 0 : i32
    %c0_i32_0 = arith.constant 0 : i32
    %c0_i32_1 = arith.constant 0 : i32
    return %c0_i32, %c0_i32_0 : i32, i32
  }
  func.func @transform_2(%arg0: i32) -> (i32, i32) {
    %c0_i32 = arith.constant 0 : i32
    %c0_i32_0 = arith.constant 0 : i32
    %c0_i32_1 = arith.constant 0 : i32
    return %c0_i32, %c0_i32_0 : i32, i32
  }
  func.func @transform_3(%arg0: i32) -> (i32, i32) {
    %c0_i32 = arith.constant 0 : i32
    %c0_i32_0 = arith.constant 0 : i32
    %c0_i32_1 = arith.constant 0 : i32
    return %c0_i32, %c0_i32_0 : i32, i32
  }
  func.func @transform_4(%arg0: i32) -> (i32, i32) {
    %c0_i32 = arith.constant 0 : i32
    %c0_i32_0 = arith.constant 0 : i32
    %c0_i32_1 = arith.constant 0 : i32
    return %c0_i32, %c0_i32_0 : i32, i32
  }
  func.func @transform_5(%arg0: i32) -> (i32, i32, i32, i32) {
    %c0_i32 = arith.constant 0 : i32
    %c0_i32_0 = arith.constant 0 : i32
    %c0_i32_1 = arith.constant 0 : i32
    %c0_i32_2 = arith.constant 0 : i32
    return %arg0, %c0_i32, %c0_i32_0, %c0_i32_1 : i32, i32, i32, i32
  }
}

module attributes {stable_mosaic.version = 11 : i64} {
  func.func @_upsample_proj_kernel(%arg0: i32, %arg1: memref<1x8x8x8xf32, #tpu.memory_space<vmem>>, %arg2: memref<1x16x16x16xf32, #tpu.memory_space<vmem>>, %arg3: memref<4x8x8xf32, #tpu.memory_space<vmem>>, %arg4: memref<1x8xf32, #tpu.memory_space<vmem>>, %arg5: memref<16x8xf32, #tpu.memory_space<vmem>>, %arg6: memref<1x8xf32, #tpu.memory_space<vmem>>, %arg7: memref<1x16x16x8xf32, #tpu.memory_space<vmem>>) attributes {dimension_semantics = [#tpu.dimension_semantics<parallel>], iteration_bounds = array<i64: 2>, scalar_prefetch = 0 : i64, scratch_operands = 0 : i64, tpu.core_type = #tpu.core_type<tc>, window_params = [{transform_indices = @transform_0, window_bounds = array<i64: 1, 8, 8, 8>}, {transform_indices = @transform_1, window_bounds = array<i64: 1, 16, 16, 16>}, {pipeline_mode = #tpu.pipeline_mode<synchronous>, transform_indices = @transform_2, window_bounds = array<i64: 4, 8, 8>}, {pipeline_mode = #tpu.pipeline_mode<synchronous>, transform_indices = @transform_3, window_bounds = array<i64: 1, 8>}, {pipeline_mode = #tpu.pipeline_mode<synchronous>, transform_indices = @transform_4, window_bounds = array<i64: 16, 8>}, {pipeline_mode = #tpu.pipeline_mode<synchronous>, transform_indices = @transform_5, window_bounds = array<i64: 1, 8>}, {transform_indices = @transform_6, window_bounds = array<i64: 1, 16, 16, 8>}]} {
    %c0 = arith.constant 0 : index
    %c0_0 = arith.constant 0 : index
    %c0_1 = arith.constant 0 : index
    %c0_2 = arith.constant 0 : index
    %0 = vector.load %arg1[%c0, %c0_0, %c0_1, %c0_2] : memref<1x8x8x8xf32, #tpu.memory_space<vmem>>, vector<1x8x8x8xf32>
    %1 = vector.shape_cast %0 : vector<1x8x8x8xf32> to vector<8x8x8xf32>
    %2 = vector.shape_cast %1 : vector<8x8x8xf32> to vector<64x8xf32>
    %c0_3 = arith.constant 0 : index
    %c0_4 = arith.constant 0 : index
    %c0_5 = arith.constant 0 : index
    %3 = vector.load %arg3[%c0_3, %c0_4, %c0_5] : memref<4x8x8xf32, #tpu.memory_space<vmem>>, vector<1x8x8xf32>
    %4 = vector.shape_cast %3 : vector<1x8x8xf32> to vector<8x8xf32>
    %cst = arith.constant dense<0.000000e+00> : vector<64x8xf32>
    %5 = tpu.matmul %2, %4, %cst {dimension_numbers = #tpu.dot_dimension_numbers<[1], [0], [0], [1], [0, 0, 1, 1], [], []>} : vector<64x8xf32>, vector<8x8xf32>, vector<64x8xf32> -> vector<64x8xf32>
    %6 = vector.shape_cast %5 : vector<64x8xf32> to vector<8x8x8xf32>
    %c1 = arith.constant 1 : index
    %c0_6 = arith.constant 0 : index
    %c0_7 = arith.constant 0 : index
    %7 = vector.load %arg3[%c1, %c0_6, %c0_7] : memref<4x8x8xf32, #tpu.memory_space<vmem>>, vector<1x8x8xf32>
    %8 = vector.shape_cast %7 : vector<1x8x8xf32> to vector<8x8xf32>
    %cst_8 = arith.constant dense<0.000000e+00> : vector<64x8xf32>
    %9 = tpu.matmul %2, %8, %cst_8 {dimension_numbers = #tpu.dot_dimension_numbers<[1], [0], [0], [1], [0, 0, 1, 1], [], []>} : vector<64x8xf32>, vector<8x8xf32>, vector<64x8xf32> -> vector<64x8xf32>
    %10 = vector.shape_cast %9 : vector<64x8xf32> to vector<8x8x8xf32>
    %c2 = arith.constant 2 : index
    %c0_9 = arith.constant 0 : index
    %c0_10 = arith.constant 0 : index
    %11 = vector.load %arg3[%c2, %c0_9, %c0_10] : memref<4x8x8xf32, #tpu.memory_space<vmem>>, vector<1x8x8xf32>
    %12 = vector.shape_cast %11 : vector<1x8x8xf32> to vector<8x8xf32>
    %cst_11 = arith.constant dense<0.000000e+00> : vector<64x8xf32>
    %13 = tpu.matmul %2, %12, %cst_11 {dimension_numbers = #tpu.dot_dimension_numbers<[1], [0], [0], [1], [0, 0, 1, 1], [], []>} : vector<64x8xf32>, vector<8x8xf32>, vector<64x8xf32> -> vector<64x8xf32>
    %14 = vector.shape_cast %13 : vector<64x8xf32> to vector<8x8x8xf32>
    %c3 = arith.constant 3 : index
    %c0_12 = arith.constant 0 : index
    %c0_13 = arith.constant 0 : index
    %15 = vector.load %arg3[%c3, %c0_12, %c0_13] : memref<4x8x8xf32, #tpu.memory_space<vmem>>, vector<1x8x8xf32>
    %16 = vector.shape_cast %15 : vector<1x8x8xf32> to vector<8x8xf32>
    %cst_14 = arith.constant dense<0.000000e+00> : vector<64x8xf32>
    %17 = tpu.matmul %2, %16, %cst_14 {dimension_numbers = #tpu.dot_dimension_numbers<[1], [0], [0], [1], [0, 0, 1, 1], [], []>} : vector<64x8xf32>, vector<8x8xf32>, vector<64x8xf32> -> vector<64x8xf32>
    %18 = vector.shape_cast %17 : vector<64x8xf32> to vector<8x8x8xf32>
    %19 = vector.shape_cast %6 : vector<8x8x8xf32> to vector<8x8x1x8xf32>
    %20 = vector.shape_cast %10 : vector<8x8x8xf32> to vector<8x8x1x8xf32>
    %21 = tpu.concatenate %19, %20 in 2 : vector<8x8x1x8xf32>, vector<8x8x1x8xf32> -> vector<8x8x2x8xf32>
    %22 = vector.shape_cast %21 : vector<8x8x2x8xf32> to vector<8x16x8xf32>
    %23 = vector.shape_cast %14 : vector<8x8x8xf32> to vector<8x8x1x8xf32>
    %24 = vector.shape_cast %18 : vector<8x8x8xf32> to vector<8x8x1x8xf32>
    %25 = tpu.concatenate %23, %24 in 2 : vector<8x8x1x8xf32>, vector<8x8x1x8xf32> -> vector<8x8x2x8xf32>
    %26 = vector.shape_cast %25 : vector<8x8x2x8xf32> to vector<8x16x8xf32>
    %27 = vector.shape_cast %22 : vector<8x16x8xf32> to vector<8x1x16x8xf32>
    %28 = vector.shape_cast %26 : vector<8x16x8xf32> to vector<8x1x16x8xf32>
    %29 = tpu.concatenate %27, %28 in 1 : vector<8x1x16x8xf32>, vector<8x1x16x8xf32> -> vector<8x2x16x8xf32>
    %30 = vector.shape_cast %29 : vector<8x2x16x8xf32> to vector<16x16x8xf32>
    %c0_15 = arith.constant 0 : index
    %c0_16 = arith.constant 0 : index
    %31 = vector.load %arg4[%c0_15, %c0_16] : memref<1x8xf32, #tpu.memory_space<vmem>>, vector<1x8xf32>
    %32 = vector.shape_cast %31 : vector<1x8xf32> to vector<1x1x8xf32>
    %33 = vector.broadcast %32 : vector<1x1x8xf32> to vector<16x16x8xf32>
    %34 = arith.addf %30, %33 : vector<16x16x8xf32>
    %c0_17 = arith.constant 0 : index
    %c0_18 = arith.constant 0 : index
    %c0_19 = arith.constant 0 : index
    %c0_20 = arith.constant 0 : index
    %35 = vector.load %arg2[%c0_17, %c0_18, %c0_19, %c0_20] : memref<1x16x16x16xf32, #tpu.memory_space<vmem>>, vector<1x16x16x16xf32>
    %36 = vector.shape_cast %35 : vector<1x16x16x16xf32> to vector<16x16x16xf32>
    %37 = vector.shape_cast %36 : vector<16x16x16xf32> to vector<256x16xf32>
    %c0_21 = arith.constant 0 : index
    %c0_22 = arith.constant 0 : index
    %38 = vector.load %arg5[%c0_21, %c0_22] : memref<16x8xf32, #tpu.memory_space<vmem>>, vector<16x8xf32>
    %cst_23 = arith.constant dense<0.000000e+00> : vector<256x8xf32>
    %39 = tpu.matmul %37, %38, %cst_23 {dimension_numbers = #tpu.dot_dimension_numbers<[1], [0], [0], [1], [0, 0, 1, 1], [], []>} : vector<256x16xf32>, vector<16x8xf32>, vector<256x8xf32> -> vector<256x8xf32>
    %c0_24 = arith.constant 0 : index
    %c0_25 = arith.constant 0 : index
    %40 = vector.load %arg6[%c0_24, %c0_25] : memref<1x8xf32, #tpu.memory_space<vmem>>, vector<1x8xf32>
    %41 = vector.broadcast %40 : vector<1x8xf32> to vector<256x8xf32>
    %42 = arith.addf %39, %41 : vector<256x8xf32>
    %cst_26 = arith.constant 0.000000e+00 : f32
    %43 = vector.broadcast %cst_26 : f32 to vector<256x8xf32>
    %44 = arith.maximumf %42, %43 : vector<256x8xf32>
    %45 = vector.shape_cast %44 : vector<256x8xf32> to vector<16x16x8xf32>
    %46 = arith.addf %34, %45 : vector<16x16x8xf32>
    %c0_27 = arith.constant 0 : index
    %c0_28 = arith.constant 0 : index
    %c0_29 = arith.constant 0 : index
    %c0_30 = arith.constant 0 : index
    %47 = vector.load %arg7[%c0_27, %c0_28, %c0_29, %c0_30] : memref<1x16x16x8xf32, #tpu.memory_space<vmem>>, vector<1x16x16x8xf32>
    %48 = vector.shape_cast %47 : vector<1x16x16x8xf32> to vector<16x16x8xf32>
    %49 = vector.shape_cast %46 : vector<16x16x8xf32> to vector<1x16x16x8xf32>
    tpu.vector_store %arg7[%c0_27, %c0_28, %c0_29, %c0_30], %49 {strides = array<i32>} : memref<1x16x16x8xf32, #tpu.memory_space<vmem>>, vector<1x16x16x8xf32>,
    return
  }
  func.func @transform_0(%arg0: i32) -> (i32, i32, i32, i32) {
    %c0_i32 = arith.constant 0 : i32
    %c0_i32_0 = arith.constant 0 : i32
    %c0_i32_1 = arith.constant 0 : i32
    %c0_i32_2 = arith.constant 0 : i32
    return %arg0, %c0_i32, %c0_i32_0, %c0_i32_1 : i32, i32, i32, i32
  }
  func.func @transform_1(%arg0: i32) -> (i32, i32, i32, i32) {
    %c0_i32 = arith.constant 0 : i32
    %c0_i32_0 = arith.constant 0 : i32
    %c0_i32_1 = arith.constant 0 : i32
    %c0_i32_2 = arith.constant 0 : i32
    return %arg0, %c0_i32, %c0_i32_0, %c0_i32_1 : i32, i32, i32, i32
  }
  func.func @transform_2(%arg0: i32) -> (i32, i32, i32) {
    %c0_i32 = arith.constant 0 : i32
    %c0_i32_0 = arith.constant 0 : i32
    %c0_i32_1 = arith.constant 0 : i32
    %c0_i32_2 = arith.constant 0 : i32
    return %c0_i32, %c0_i32_0, %c0_i32_1 : i32, i32, i32
  }
  func.func @transform_3(%arg0: i32) -> (i32, i32) {
    %c0_i32 = arith.constant 0 : i32
    %c0_i32_0 = arith.constant 0 : i32
    %c0_i32_1 = arith.constant 0 : i32
    return %c0_i32, %c0_i32_0 : i32, i32
  }
  func.func @transform_4(%arg0: i32) -> (i32, i32) {
    %c0_i32 = arith.constant 0 : i32
    %c0_i32_0 = arith.constant 0 : i32
    %c0_i32_1 = arith.constant 0 : i32
    return %c0_i32, %c0_i32_0 : i32, i32
  }
  func.func @transform_5(%arg0: i32) -> (i32, i32) {
    %c0_i32 = arith.constant 0 : i32
    %c0_i32_0 = arith.constant 0 : i32
    %c0_i32_1 = arith.constant 0 : i32
    return %c0_i32, %c0_i32_0 : i32, i32
  }
  func.func @transform_6(%arg0: i32) -> (i32, i32, i32, i32) {
    %c0_i32 = arith.constant 0 : i32
    %c0_i32_0 = arith.constant 0 : i32
    %c0_i32_1 = arith.constant 0 : i32
    %c0_i32_2 = arith.constant 0 : i32
    return %arg0, %c0_i32, %c0_i32_0, %c0_i32_1 : i32, i32, i32, i32
  }
}

</mosaic_0001>

<bundles_post_ra>
// kernel: decoder_stage_forward.2
= control target key start
LH: loop header
LB: loop body
LE: loop exit
PB: predicated region body
PF: predicated region fallthrough
CT: control target
= control target key end

     0   :  { %10 = vsyncpa [#allocation3], 0  ;;  %s2504_s0 = inlined_call_operand.vmem [shape: f32[2,8,8,8], index: 0, kind: input, shape index: {}]   ;;  %s2505_s1 = inlined_call_operand.hbm [shape: f32[72,8], index: 1, kind: input, shape index: {}]   ;;  %s2506_s2 = inlined_call_operand.hbm [shape: f32[1,8], index: 2, kind: input, shape index: {}]   ;;  %s2507_s3 = inlined_call_operand.hbm [shape: f32[72,8], index: 3, kind: input, shape index: {}]   ;;  %s2508_s4 = inlined_call_operand.hbm [shape: f32[1,8], index: 4, kind: input, shape index: {}]   ;;  %s2509_s5 = inlined_call_operand.vmem [shape: f32[2,8,8,8], index: 5, kind: output, shape index: {}]  }
   0x1   :  { %11 = vsyncpa [#allocation5], 0 }
   0x2   :  { %12 = vsyncpa [#allocation8], 0  ;;  %s1835_s18 = smov 0  }
   0x3 LB: > { %s1790_s19 = smov [#allocation4]   ;;  %s1841_s21 = sadd.s32 4294967295, %s1788_s18   ;;  %s1788_s18 = sphi %s1835_s18, %s18_s18  }
   0x4   : > { %s185_s20 = sshll.u32 %s1790_s19, 4  ;;  %p1428_p0 = scmp.ge.s32.totalorder %s1788_s18, 1  ;;  %s1846_s20 = int_to_ptr.vmem [resolvable:$true] %s185_s20 }
   0x5   : > { %p159_p1 = scmp.lt.s32.totalorder %s1788_s18, 3  ;;  %p2510_p2 = scmp.eq.s32.totalorder %s1841_s21, 0 }
   0x6   : > { %s1791_s23 = smov [#allocation2]   ;;  %s1792_s26 = smov [#allocation6]  }
   0x7   : > { %p1848_p3 = pnand %p1428_p0, %p159_p1  ;;  %s171_s24 = sshll.u32 %s1791_s23, 4  ;;  %s1854_s24 = int_to_ptr.vmem [resolvable:$true] %s171_s24 }
   0x8   : > { %s195_s27 = sshll.u32 %s1792_s26, 4  ;;  %s1793_s28 = smov [#allocation7]   ;;  %s1862_s27 = int_to_ptr.vmem [resolvable:$true] %s195_s27 }
   0x9   : > { %s2512_s22 = scalar_select %p1848_p3, 1, 0 }
   0xa   : > { %p1607_p4 = pneg %p1848_p3  ;;  %s1864_s29 = sshll.u32 %s1793_s28, 4  ;;  %s210_s29 = int_to_ptr.vmem [resolvable:$true] %s1864_s29 }
   0xb   : > { %s1658_s7 = scalar_lea.hbm %s2506_s2, 16 }
   0xc   : > { %p1858_p5 = pnand %p2510_p2, %p1607_p4  ;;  %p1659_p6 = scmp.ne.s32.totalorder %s2506_s2, %s1658_s7 }
   0xd   : > { %p1665_p10 = scmp.lt.u32.totalorder %s1658_s7, %s2506_s2 }
   0xe   : > { %p1874_p7 = pneg %p1858_p5 }
  0x10   : > { %p1661_p8 = pnand %p1874_p7, %p1659_p6 }
  0x12   : > { %p1662_p9 = pneg %p1661_p8 }
  0x14   : > { %p1667_p11 = pnand %p1665_p10, %p1662_p9 }
  0x16   : > { %1670 = shalt.err (!%p1667_p11)
}
  0x17   : > { %s1671_s13 = scalar_lea.vmem %s1846_s20, 16  ;;  %s1678_s14 = scalar_lea.vmem %s1846_s20, 32 }
  0x18   : > { %p1672_p12 = scmp.ne.s32.totalorder %s1846_s20, %s1671_s13  ;;  %p1679_p1 = scmp.lt.s32.totalorder %s1846_s20, %s1846_s20 }
  0x19   : > { %p1680_p4 = scmp.lt.s32.totalorder %s1678_s14, %s1671_s13 }
  0x1a   : > { %p1674_p13 = pnand %p1672_p12, %p1874_p7 }
  0x1b   : > { %p1681_p6 = por %p1680_p4, %p1679_p1 }
  0x1c   : > { %p1675_p0 = pneg %p1674_p13 }
  0x1e   : > { %p1682_p8 = pnand %p1681_p6, %p1675_p0 }
  0x20   : > { %1685 = shalt.err (!%p1682_p8)
}
  0x21   : > { %1613 = dma.hbm_to_vmem [thread:$0]  (!%p1858_p5), %s2506_s2, 16, %s1846_s20, [#allocation5]  }
  0x22   : > { %s1686_s23 = scalar_lea.hbm %s2505_s1, 1152 }
  0x23   : > { %p1687_p9 = scmp.ne.s32.totalorder %s2505_s1, %s1686_s23  ;;  %p1693_p12 = scmp.lt.u32.totalorder %s1686_s23, %s2505_s1 }
  0x25   : > { %p1689_p10 = pnand %p1687_p9, %p1874_p7 }
  0x27   : > { %p1690_p11 = pneg %p1689_p10 }
  0x29   : > { %p1695_p13 = pnand %p1693_p12, %p1690_p11 }
  0x2b   : > { %1698 = shalt.err (!%p1695_p13)
}
  0x2c   : > { %s1699_s20 = scalar_lea.vmem %s1854_s24, 1152  ;;  %p1707_p6 = scmp.lt.s32.totalorder %s1854_s24, %s1854_s24 }
  0x2d   : > { %p1700_p0 = scmp.ne.s32.totalorder %s1854_s24, %s1699_s20  ;;  %p1708_p8 = scmp.lt.s32.totalorder %s1699_s20, %s1699_s20 }
  0x2f   : > { %p1702_p1 = pnand %p1700_p0, %p1874_p7  ;;  %p1709_p9 = por %p1708_p8, %p1707_p6 }
  0x31   : > { %p1703_p4 = pneg %p1702_p1 }
  0x33   : > { %p1710_p10 = pnand %p1709_p9, %p1703_p4 }
  0x35   : > { %1713 = shalt.err (!%p1710_p10)
}
  0x36   : > { %s1794_s7 = smov 128   ;;  %s1795_s8 = smov 8  }
  0x37   : > { %1610 = dma.hbm_to_vmem [thread:$0]  (!%p1858_p5), %s2505_s1, 1152, %s1854_s24, [#allocation3], %s1794_s7, %s1794_s7, %s1795_s8  }
  0x38   : > { %s1714_s14 = scalar_lea.hbm %s2507_s3, 1152 }
  0x39   : > { %p1715_p11 = scmp.ne.s32.totalorder %s2507_s3, %s1714_s14  ;;  %p1721_p0 = scmp.lt.u32.totalorder %s1714_s14, %s2507_s3 }
  0x3b   : > { %p1717_p12 = pnand %p1715_p11, %p1874_p7 }
  0x3d   : > { %p1718_p13 = pneg %p1717_p12 }
  0x3f   : > { %p1723_p1 = pnand %p1721_p0, %p1718_p13 }
  0x41   : > { %1726 = shalt.err (!%p1723_p1)
}
  0x42   : > { %s1727_s24 = scalar_lea.vmem %s1862_s27, 1152  ;;  %p1735_p9 = scmp.lt.s32.totalorder %s1862_s27, %s1862_s27 }
  0x43   : > { %p1728_p4 = scmp.ne.s32.totalorder %s1862_s27, %s1727_s24  ;;  %p1736_p10 = scmp.lt.s32.totalorder %s1727_s24, %s1727_s24 }
  0x45   : > { %p1730_p6 = pnand %p1728_p4, %p1874_p7  ;;  %p1737_p11 = por %p1736_p10, %p1735_p9 }
  0x47   : > { %p1731_p8 = pneg %p1730_p6 }
  0x49   : > { %p1738_p12 = pnand %p1737_p11, %p1731_p8 }
  0x4b   : > { %1741 = shalt.err (!%p1738_p12)
}
  0x4c   : > { %1616 = dma.hbm_to_vmem [thread:$0]  (!%p1858_p5), %s2507_s3, 1152, %s1862_s27, [#allocation5], %s1794_s7, %s1794_s7, %s1795_s8  }
  0x4d   : > { %s1742_s6 = scalar_lea.hbm %s2508_s4, 16 }
  0x4e   : > { %p1743_p13 = scmp.ne.s32.totalorder %s2508_s4, %s1742_s6  ;;  %p1749_p4 = scmp.lt.u32.totalorder %s1742_s6, %s2508_s4 }
  0x50   : > { %p1745_p0 = pnand %p1743_p13, %p1874_p7 }
  0x52   : > { %p1746_p1 = pneg %p1745_p0 }
  0x54   : > { %p1751_p6 = pnand %p1749_p4, %p1746_p1 }
  0x56   : > { %1754 = shalt.err (!%p1751_p6)
}
  0x57   : > { %s1755_s13 = scalar_lea.vmem %s210_s29, 16  ;;  %s1762_s27 = scalar_lea.vmem %s210_s29, 32 }
  0x58   : > { %p1756_p8 = scmp.ne.s32.totalorder %s210_s29, %s1755_s13  ;;  %p1763_p11 = scmp.lt.s32.totalorder %s210_s29, %s210_s29 }
  0x59   : > { %p1764_p12 = scmp.lt.s32.totalorder %s1762_s27, %s1755_s13 }
  0x5a   : > { %p1758_p9 = pnand %p1756_p8, %p1874_p7 }
  0x5b   : > { %p1765_p2 = por %p1764_p12, %p1763_p11 }
  0x5c   : > { %p1759_p10 = pneg %p1758_p9 }
  0x5e   : > { %p1766_p3 = pnand %p1765_p2, %p1759_p10 }
  0x60   : > { %1769 = shalt.err (!%p1766_p3)
}
  0x61   : > { %1619 = dma.hbm_to_vmem [thread:$0]  (!%p1858_p5), %s2508_s4, 16, %s210_s29, [#allocation8]  }
  0x62   : > { %p2515_p13 = scmp.ne.s32.totalorder %s2512_s22, 0 }
  0x63   : > { %p2516_p0 = scmp.eq.s32.totalorder (!%p2515_p13), %s1841_s21, 0 }
  0x64   : > { %230 = sbr.rel (%p2515_p13) target bundleno = 967 (0x3c7), region = 40 }
  0x6b   : > { %1775 = dma.done.wait (%p2516_p0), [#allocation3], 1152   ;;  %p2517_p7 = pmov %p2516_p0 }
  0x6c   : > { %p2518_p1 = pmov %p2516_p0 }
  0x6d   : > { %1777 = vsyncadd (%p2517_p7), [#allocation3], 4294966144 }
  0x6e   : > { %1779 = dma.done.wait (%p2518_p1), [#allocation5], 1168   ;;  %p2519_p2 = pmov %p2516_p0 }
  0x6f   : > { %p2520_p3 = pmov %p2516_p0 }
  0x70   : > { %1781 = vsyncadd (%p2519_p2), [#allocation5], 4294966128 }
  0x71   : > { %1783 = dma.done.wait (%p2520_p3), [#allocation8], 16   ;;  %p2521_p5 = pmov %p2516_p0 }
  0x72   : > { %vm315_vm0 = vcmask 1040384   ;;  %v1796_v0 = vmov 0.0   ;;  %p270_p4 = scmp.lt.s32.totalorder %s1841_s21, 1  ;;  %vm375_vm1 = vcmask 1045504   ;;  %vm350_vm2 = vcmask 1046528   ;;  %s1797_s14 = smov 16  }
  0x73   : > { %1785 = vsyncadd (%p2521_p5), [#allocation8], 4294967280  ;;  %v297_v1 = vrot.slane %v1796_v0, 7  ;;  %s1798_s15 = smov 8   ;;  %s1799_s16 = smov 24   ;;  %v672_v35 = vld [vmem:[#allocation2] sm:$0xff] }
  0x74   : > { %s2523_s21 = smov (!%p270_p4, %s1841_s21), 1  ;;  %s1800_s17 = smov 32   ;;  %v673_v36 = vld [vmem:[#allocation2 + $0x8] sm:$0xff]  ;;  %v674_v40 = vld [vmem:[#allocation2 + $0x10] sm:$0xff]  ;;  %v675_v41 = vld [vmem:[#allocation2 + $0x18] sm:$0xff]  ;;  %vm600_vm3 = vcmask 64512  }
  0x75   : > { %v1977_v2 = vsel %vm315_vm0, 0.0, %v297_v1  ;;  %v325_v3 = vsel %vm315_vm0, %v297_v1, 0.0  ;;  %s1463_s22 = sshll.u32 %s2523_s21, 6  ;;  %s1801_s19 = smov 40   ;;  %v1559_v39 = vpack.c.bf16 %v673_v36, %v672_v35  ;;  %v1563_v42 = vpack.c.bf16 %v675_v41, %v674_v40  ;;  %v676_v45 = vld [vmem:[#allocation2 + $0x20] sm:$0xff]  ;;  %v677_v46 = vld [vmem:[#allocation2 + $0x28] sm:$0xff] }
  0x76   : > { %v376_v4 = vrot.slane %v1977_v2, 2  ;;  %v377_v5 = vrot.slane %v325_v3, 2  ;;  %v351_v6 = vrot.slane %v1977_v2, 1  ;;  %v352_v7 = vrot.slane %v325_v3, 1  ;;  %s1997_s10 = scalar_lea.vmem %s2504_s0, %s1463_s22  ;;  %s1802_s24 = smov 48   ;;  %v678_v50 = vld [vmem:[#allocation2 + $0x30] sm:$0xff] }
  0x77   : > { %v281_v10 = vld [vmem:[%s1997_s10 + $0x8] sm:$0xff]  ;;  %v280_v11 = vld [vmem:[%s1997_s10] sm:$0xff]  ;;  %v282_v18 = vld [vmem:[%s1997_s10 + $0x10] sm:$0xff]  ;;  %1560 = vmatprep.subr.bf16.mxu0 %v1559_v39  ;;  %v1567_v47 = vpack.c.bf16 %v677_v46, %v676_v45  ;;  %s1803_s23 = smov 56   ;;  %s1804_s26 = smov 64   ;;  %vm609_vm4 = vcmask 130048  }
  0x78   : > { %v1987_v8 = vsel %vm375_vm1, %v376_v4, %v377_v5  ;;  %v1990_v9 = vsel %vm350_vm2, %v351_v6, %v352_v7  ;;  %v299_v12 = vrot.slane %v281_v10, 7  ;;  %v298_v13 = vrot.slane %v280_v11, 7  ;;  %1562 = vmatpush3.bf16.msra.mxu0 %v1559_v39  ;;  %v283_v49 = vld [vmem:[%s1997_s10 + $0x18] sm:$0xff]  ;;  %v680_v54 = vld [vmem:[#allocation2 + $0x40] sm:$0xff]  ;;  %s2475_s6 = scalar_lea.vmem %s2509_s5, %s1463_s22 }
  0x79   : > { %432 = vrot.lane.b32.xlu1 %v1987_v8, %s1797_s14  ;;  %408 = vrot.lane.b32.xlu0 %v1990_v9, %s1798_s15  ;;  %v300_v27 = vrot.slane %v282_v18, 7  ;;  %v679_v51 = vld [vmem:[#allocation2 + $0x38] sm:$0xff]  ;;  %v301_v53 = vrot.slane %v283_v49, 7  ;;  %v284_v57 = vld [vmem:[%s1997_s10 + $0x20] sm:$0xff]  ;;  %v286_v18 = vld [vmem:[%s1997_s10 + $0x30] sm:$0xff]  ;;  %vm618_vm5 = vcmask 195584  }
  0x7a   : > { %v2006_v14 = vsel %vm315_vm0, 0.0, %v299_v12  ;;  %v2009_v15 = vsel %vm315_vm0, 0.0, %v298_v13  ;;  %v326_v16 = vsel %vm315_vm0, %v298_v13, 0.0  ;;  %v327_v17 = vsel %vm315_vm0, %v299_v12, 0.0  ;;  %1564 = vmatprep.subr.bf16.mxu0 %v1563_v42  ;;  %v285_v12 = vld [vmem:[%s1997_s10 + $0x28] sm:$0xff]  ;;  %v2122_v35 = vld [vmem:[%s1997_s10 + $0x38] sm:$0xff] }
  0x7b   : > { %v379_v19 = vrot.slane %v2009_v15, 2  ;;  %v380_v20 = vrot.slane %v326_v16, 2  ;;  %v354_v21 = vrot.slane %v2009_v15, 1  ;;  %v355_v22 = vrot.slane %v326_v16, 1 }
  0x7c   : > { %v357_v23 = vrot.slane %v2006_v14, 1  ;;  %v358_v24 = vrot.slane %v327_v17, 1  ;;  %v2027_v29 = vsel %vm315_vm0, 0.0, %v300_v27  ;;  %v328_v30 = vsel %vm315_vm0, %v300_v27, 0.0  ;;  %1566 = vmatpush3.bf16.msra.mxu0 %v1563_v42 }
  0x7d   : > { %458 = vrot.lane.b32.xlu1 %v2006_v14, %s1799_s16  ;;  %456 = vrot.lane.b32.xlu0 %v2009_v15, %s1799_s16  ;;  %v381_v25 = vsel %vm375_vm1, %v379_v19, %v380_v20  ;;  %v356_v26 = vsel %vm350_vm2, %v354_v21, %v355_v22  ;;  %v382_v31 = vrot.slane %v2006_v14, 2  ;;  %v383_v32 = vrot.slane %v327_v17, 2 }
  0x7e   : > { %v359_v28 = vsel %vm350_vm2, %v357_v23, %v358_v24  ;;  %v360_v33 = vrot.slane %v2027_v29, 1  ;;  %v361_v34 = vrot.slane %v328_v30, 1  ;;  %v385_v43 = vrot.slane %v2027_v29, 2  ;;  %1568 = vmatprep.subr.bf16.mxu0 %v1567_v47 }
  0x7f   : > { %v384_v37 = vsel %vm375_vm1, %v382_v31, %v383_v32  ;;  %v386_v44 = vrot.slane %v328_v30, 2  ;;  %v1571_v52 = vpack.c.bf16 %v679_v51, %v678_v50  ;;  %v2053_v55 = vsel %vm315_vm0, 0.0, %v301_v53 }
  0x80   : > { %v362_v38 = vsel %vm350_vm2, %v360_v33, %v361_v34  ;;  %1570 = vmatpush3.bf16.msra.mxu0 %v1567_v47  ;;  %v329_v56 = vsel %vm315_vm0, %v301_v53, 0.0  ;;  %v363_v58 = vrot.slane %v2053_v55, 1  ;;  %v302_v60 = vrot.slane %v284_v57, 7 }
  0x81   : > { %434 = vrot.lane.b32.xlu1 %v381_v25, %s1797_s14  ;;  %410 = vrot.lane.b32.xlu0 %v356_v26, %s1798_s15  ;;  %v387_v48 = vsel %vm375_vm1, %v385_v43, %v386_v44  ;;  %v364_v59 = vrot.slane %v329_v56, 1  ;;  %v388_v0 = vrot.slane %v2053_v55, 2  ;;  %v389_v1 = vrot.slane %v329_v56, 2 }
  0x82   : > { %1572 = vmatprep.subr.bf16.mxu0 %v1571_v52  ;;  %v2065_v62 = vsel %vm315_vm0, 0.0, %v302_v60  ;;  %v330_v63 = vsel %vm315_vm0, %v302_v60, 0.0  ;;  %v303_v13 = vrot.slane %v285_v12, 7  ;;  %v304_v21 = vrot.slane %v286_v18, 7 }
  0x83   : > { %v365_v61 = vsel %vm350_vm2, %v363_v58, %v364_v59  ;;  %v366_v3 = vrot.slane %v2065_v62, 1  ;;  %v367_v4 = vrot.slane %v330_v63, 1  ;;  %v390_v5 = vsel %vm375_vm1, %v388_v0, %v389_v1 }
  0x84   : > { %1574 = vmatpush3.bf16.msra.mxu0 %v1571_v52  ;;  %v391_v7 = vrot.slane %v2065_v62, 2  ;;  %v392_v10 = vrot.slane %v330_v63, 2  ;;  %v2091_v16 = vsel %vm315_vm0, 0.0, %v303_v13  ;;  %v331_v17 = vsel %vm315_vm0, %v303_v13, 0.0 }
  0x85   : > { %412 = vrot.lane.b32.xlu1 %v359_v28, %s1798_s15  ;;  %480 = vrot.lane.b32.xlu0 %v356_v26, %s1800_s17  ;;  %v368_v6 = vsel %vm350_vm2, %v366_v3, %v367_v4  ;;  %v369_v19 = vrot.slane %v2091_v16, 1  ;;  %v370_v20 = vrot.slane %v331_v17, 1  ;;  %v2103_v23 = vsel %vm315_vm0, 0.0, %v304_v21 }
  0x86   : > { %1515 = vmatprep.subr.mxu0 %v680_v54  ;;  %v393_v11 = vsel %vm375_vm1, %v391_v7, %v392_v10  ;;  %v332_v24 = vsel %vm315_vm0, %v304_v21, 0.0  ;;  %v395_v26 = vrot.slane %v331_v17, 2  ;;  %v372_v27 = vrot.slane %v2103_v23, 1 }
  0x87   : > { %v371_v22 = vsel %vm350_vm2, %v369_v19, %v370_v20  ;;  %v397_v32 = vrot.slane %v2103_v23, 2  ;;  %v398_v33 = vrot.slane %v332_v24, 2  ;;  %v305_v36 = vrot.slane %v2122_v35, 7 }
  0x88   : > { %1516 = vmatpush3.msra.mxu0 %v680_v54  ;;  %vm627_vm6 = vcmask 261120   ;;  %vm636_vm7 = vcmask 326656   ;;  %vm645_vm8 = vcmask 392192   ;;  %vm654_vm9 = vcmask 457728  }
  0x89   : > { %504 = vrot.lane.b32.xlu1 %v381_v25, %s1801_s19  ;;  %482 = vrot.lane.b32.xlu0 %v359_v28, %s1800_s17  ;;  %v394_v25 = vrot.slane %v2091_v16, 2  ;;  %v399_v34 = vsel %vm375_vm1, %v397_v32, %v398_v33  ;;  %vm663_vm10 = vcmask 523264   ;;  %vm688_vm11 = vcmask 588800  }
  0x8b   : > { %v396_v30 = vsel %vm375_vm1, %v394_v25, %v395_v26 }
  0x8d   : > { %436 = vrot.lane.b32.xlu1 %v384_v37, %s1797_s14  ;;  %414 = vrot.lane.b32.xlu0 %v362_v38, %s1798_s15 }
  0x91   : > { %528 = vrot.lane.b32.xlu1 %v2006_v14, %s1802_s24  ;;  %506 = vrot.lane.b32.xlu0 %v384_v37, %s1801_s19 }
  0x95   : > { %460 = vrot.lane.b32.xlu1 %v2027_v29, %s1799_s16  ;;  %438 = vrot.lane.b32.xlu0 %v387_v48, %s1797_s14 }
  0x99   : > { %552 = vrot.lane.b32.xlu1 %v359_v28, %s1803_s23  ;;  %530 = vrot.lane.b32.xlu0 %v2027_v29, %s1802_s24  ;;  %v373_v28 = vrot.slane %v332_v24, 1 }
  0x9b   : > { %v374_v31 = vsel %vm350_vm2, %v372_v27, %v373_v28 }
  0x9d   : > { %484 = vrot.lane.b32.xlu1 %v362_v38, %s1800_s17  ;;  %462 = vrot.lane.b32.xlu0 %v2053_v55, %s1799_s16 }
  0xa1   : > { %576 = vrot.lane.b32.xlu1 %v384_v37, %s1804_s26  ;;  %554 = vrot.lane.b32.xlu0 %v362_v38, %s1803_s23  ;;  %v324_v37 = vsel %vm315_vm0, 0.0, %v305_v36  ;;  %v333_v38 = vsel %vm315_vm0, %v305_v36, 0.0 }
  0xa2   : > { %v402_v39 = vrot.slane %v324_v37, 1  ;;  %v403_v40 = vrot.slane %v333_v38, 1  ;;  %v405_v42 = vrot.slane %v324_v37, 2  ;;  %v406_v43 = vrot.slane %v333_v38, 2 }
  0xa4   : > { %v404_v41 = vsel %vm350_vm2, %v402_v39, %v403_v40  ;;  %v407_v44 = vsel %vm375_vm1, %v405_v42, %v406_v43 }
  0xa5   : > { %486 = vrot.lane.b32.xlu1 %v365_v61, %s1800_s17  ;;  %416 = vrot.lane.b32.xlu0 %v365_v61, %s1798_s15 }
  0xa9   : > { %578 = vrot.lane.b32.xlu1 %v387_v48, %s1804_s26  ;;  %508 = vrot.lane.b32.xlu0 %v387_v48, %s1801_s19 }
  0xad   : > { %440 = vrot.lane.b32.xlu1 %v390_v5, %s1797_s14  ;;  %418 = vrot.lane.b32.xlu0 %v368_v6, %s1798_s15 }
  0xb1   : > { %532 = vrot.lane.b32.xlu1 %v2053_v55, %s1802_s24  ;;  %510 = vrot.lane.b32.xlu0 %v390_v5, %s1801_s19 }
  0xb5   : > { %464 = vrot.lane.b32.xlu1 %v2065_v62, %s1799_s16  ;;  %442 = vrot.lane.b32.xlu0 %v393_v11, %s1797_s14 }
  0xb9   : > { %556 = vrot.lane.b32.xlu1 %v365_v61, %s1803_s23  ;;  %534 = vrot.lane.b32.xlu0 %v2065_v62, %s1802_s24 }
  0xbd   : > { %488 = vrot.lane.b32.xlu1 %v368_v6, %s1800_s17  ;;  %466 = vrot.lane.b32.xlu0 %v2091_v16, %s1799_s16 }
  0xc1   : > { %580 = vrot.lane.b32.xlu1 %v390_v5, %s1804_s26  ;;  %558 = vrot.lane.b32.xlu0 %v368_v6, %s1803_s23 }
  0xc5   : > { %490 = vrot.lane.b32.xlu1 %v371_v22, %s1800_s17  ;;  %420 = vrot.lane.b32.xlu0 %v371_v22, %s1798_s15 }
  0xc9   : > { %582 = vrot.lane.b32.xlu1 %v393_v11, %s1804_s26  ;;  %512 = vrot.lane.b32.xlu0 %v393_v11, %s1801_s19 }
  0xcd   : > { %444 = vrot.lane.b32.xlu1 %v396_v30, %s1797_s14  ;;  %422 = vrot.lane.b32.xlu0 %v374_v31, %s1798_s15 }
  0xd1   : > { %536 = vrot.lane.b32.xlu1 %v2091_v16, %s1802_s24  ;;  %514 = vrot.lane.b32.xlu0 %v396_v30, %s1801_s19 }
  0xd5   : > { %468 = vrot.lane.b32.xlu1 %v2103_v23, %s1799_s16  ;;  %446 = vrot.lane.b32.xlu0 %v399_v34, %s1797_s14 }
  0xd9   : > { %560 = vrot.lane.b32.xlu1 %v371_v22, %s1803_s23  ;;  %538 = vrot.lane.b32.xlu0 %v2103_v23, %s1802_s24 }
  0xdd   : > { %492 = vrot.lane.b32.xlu1 %v374_v31, %s1800_s17  ;;  %470 = vrot.lane.b32.xlu0 %v324_v37, %s1799_s16 }
  0xe1   : > { %584 = vrot.lane.b32.xlu1 %v396_v30, %s1804_s26  ;;  %562 = vrot.lane.b32.xlu0 %v374_v31, %s1803_s23 }
  0xe5   : > { %516 = vrot.lane.b32.xlu1 %v399_v34, %s1801_s19  ;;  %494 = vrot.lane.b32.xlu0 %v404_v41, %s1800_s17 }
  0xe9   : > { %518 = vrot.lane.b32.xlu1 %v407_v44, %s1801_s19  ;;  %586 = vrot.lane.b32.xlu0 %v399_v34, %s1804_s26 }
  0xeb   : > { %v433_v45 = vpop.permute.xlu1 %432  ;;  %v409_v46 = vpop.permute.xlu0 %408 }
  0xec   : > { %v601_v61 = vsel %vm600_vm3, %v1977_v2, %v409_v46 }
  0xed   : > { %542 = vrot.lane.b32.xlu1 %v1977_v2, %s1802_s24  ;;  %540 = vrot.lane.b32.xlu0 %v324_v37, %s1802_s24  ;;  %v2157_v0 = vsel %vm609_vm4, %v601_v61, %v433_v45 }
  0xef   : > { %v459_v47 = vpop.permute.xlu1 %458  ;;  %v457_v48 = vpop.permute.xlu0 %456 }
  0xf0   : > { %v619_v1 = vsel %vm618_vm5, %v2157_v0, %v457_v48 }
  0xf1   : > { %566 = vrot.lane.b32.xlu1 %v1990_v9, %s1803_s23  ;;  %564 = vrot.lane.b32.xlu0 %v404_v41, %s1803_s23 }
  0xf3   : > { %v435_v49 = vpop.permute.xlu1 %434  ;;  %v411_v50 = vpop.permute.xlu0 %410 }
  0xf4   : > { %v602_v2 = vsel %vm600_vm3, %v2009_v15, %v411_v50 }
  0xf5   : > { %590 = vrot.lane.b32.xlu1 %v1987_v8, %s1804_s26  ;;  %588 = vrot.lane.b32.xlu0 %v407_v44, %s1804_s26  ;;  %v611_v13 = vsel %vm609_vm4, %v602_v2, %v435_v49 }
  0xf6   : > { %v620_v18 = vsel %vm618_vm5, %v611_v13, %v459_v47 }
  0xf7   : > { %v413_v51 = vpop.permute.xlu1 %412  ;;  %v481_v52 = vpop.permute.xlu0 %480 }
  0xf8   : > { %v628_v5 = vsel %vm627_vm6, %v619_v1, %v481_v52  ;;  %v603_v38 = vsel %vm600_vm3, %v2006_v14, %v413_v51 }
  0xfb   : > { %v505_v53 = vpop.permute.xlu1 %504  ;;  %v483_v54 = vpop.permute.xlu0 %482 }
  0xfc   : > { %v637_v6 = vsel %vm636_vm7, %v628_v5, %v505_v53  ;;  %v629_v20 = vsel %vm627_vm6, %v620_v18, %v483_v54 }
  0xff   : > { %v437_v56 = vpop.permute.xlu1 %436  ;;  %v2152_v57 = vpop.permute.xlu0 %414 }
 0x100   : > { %v612_v39 = vsel %vm609_vm4, %v603_v38, %v437_v56  ;;  %v604_v14 = vsel %vm600_vm3, %v2027_v29, %v2152_v57 }
 0x103   : > { %v529_v58 = vpop.permute.xlu1 %528  ;;  %v507_v59 = vpop.permute.xlu0 %506 }
 0x104   : > { %v646_v7 = vsel %vm645_vm8, %v637_v6, %v529_v58  ;;  %v638_v21 = vsel %vm636_vm7, %v629_v20, %v507_v59 }
 0x107   : > { %v461_v60 = vpop.permute.xlu1 %460  ;;  %v439_v9 = vpop.permute.xlu0 %438 }
 0x108   : > { %v621_v40 = vsel %vm618_vm5, %v612_v39, %v461_v60  ;;  %v613_v50 = vsel %vm609_vm4, %v604_v14, %v439_v9 }
 0x10b   : > { %v553_v63 = vpop.permute.xlu1 %552  ;;  %v531_v8 = vpop.permute.xlu0 %530 }
 0x10c   : > { %v655_v10 = vsel %vm654_vm9, %v646_v7, %v553_v63  ;;  %v647_v22 = vsel %vm645_vm8, %v638_v21, %v531_v8 }
 0x10f   : > { %v485_v3 = vpop.permute.xlu1 %484  ;;  %v463_v4 = vpop.permute.xlu0 %462 }
 0x110   : > { %v630_v43 = vsel %vm627_vm6, %v621_v40, %v485_v3  ;;  %v622_v51 = vsel %vm618_vm5, %v613_v50, %v463_v4 }
 0x113   : > { %v577_v11 = vpop.permute.xlu1 %576  ;;  %v555_v12 = vpop.permute.xlu0 %554 }
 0x114   : > { %v664_v17 = vsel %vm663_vm10, %v655_v10, %v577_v11  ;;  %v656_v24 = vsel %vm654_vm9, %v647_v22, %v555_v12 }
 0x115   : > { %1517 = vmatprep.mubr.msk.f32.mxu0 %vm688_vm11, %v664_v17 }
 0x117   : > { %v487_v19 = vpop.permute.xlu1 %486  ;;  %v417_v15 = vpop.permute.xlu0 %416 }
 0x118   : > { %v631_v54 = vsel %vm627_vm6, %v622_v51, %v487_v19  ;;  %v605_v2 = vsel %vm600_vm3, %v2053_v55, %v417_v15 }
 0x11b   : > { %v579_v25 = vpop.permute.xlu1 %578  ;;  %v509_v26 = vpop.permute.xlu0 %508 }
 0x11c   : > { %v665_v27 = vsel %vm663_vm10, %v656_v24, %v579_v25  ;;  %v639_v44 = vsel %vm636_vm7, %v630_v43, %v509_v26 }
 0x11d   : > { %1518 = vmatmul.mubr.msk.f32.vlgmr.msra.gmra.mrb[0].mxu0 %vm688_vm11, %v665_v27 }
 0x11f   : > { %v441_v28 = vpop.permute.xlu1 %440  ;;  %v419_v30 = vpop.permute.xlu0 %418 }
 0x120   : > { %v614_v6 = vsel %vm609_vm4, %v605_v2, %v441_v28  ;;  %v606_v55 = vsel %vm600_vm3, %v2065_v62, %v419_v30 }
 0x123   : > { %v533_v31 = vpop.permute.xlu1 %532  ;;  %v511_v32 = vpop.permute.xlu0 %510 }
 0x124   : > { %v648_v45 = vsel %vm645_vm8, %v639_v44, %v533_v31  ;;  %v640_v56 = vsel %vm636_vm7, %v631_v54, %v511_v32 }
 0x127   : > { %v465_v33 = vpop.permute.xlu1 %464  ;;  %v443_v34 = vpop.permute.xlu0 %442 }
 0x128   : > { %v623_v7 = vsel %vm618_vm5, %v614_v6, %v465_v33  ;;  %v615_v15 = vsel %vm609_vm4, %v606_v55, %v443_v34 }
 0x12b   : > { %v557_v36 = vpop.permute.xlu1 %556  ;;  %v535_v37 = vpop.permute.xlu0 %534 }
 0x12c   : > { %v657_v46 = vsel %vm654_vm9, %v648_v45, %v557_v36  ;;  %v649_v58 = vsel %vm645_vm8, %v640_v56, %v535_v37 }
 0x12f   : > { %v489_v41 = vpop.permute.xlu1 %488  ;;  %v467_v42 = vpop.permute.xlu0 %466 }
 0x130   : > { %v632_v12 = vsel %vm627_vm6, %v623_v7, %v489_v41  ;;  %v624_v22 = vsel %vm618_vm5, %v615_v15, %v467_v42 }
 0x133   : > { %v581_v47 = vpop.permute.xlu1 %580  ;;  %v559_v48 = vpop.permute.xlu0 %558 }
 0x134   : > { %v666_v49 = vsel %vm663_vm10, %v657_v46, %v581_v47  ;;  %v658_v59 = vsel %vm654_vm9, %v649_v58, %v559_v48 }
 0x135   : > { %1520 = vmatprep.mubr.msk.f32.mxu0 %vm688_vm11, %v666_v49 }
 0x137   : > { %v491_v52 = vpop.permute.xlu1 %490  ;;  %v421_v53 = vpop.permute.xlu0 %420 }
 0x138   : > { %v633_v26 = vsel %vm627_vm6, %v624_v22, %v491_v52  ;;  %v607_v36 = vsel %vm600_vm3, %v2091_v16, %v421_v53  ;;  %v2247_v53 = vld [vmem:[#allocation4] ss:$0 sm:$0xff]  ;;  %v1169_v22 = vld [vmem:[#allocation6] sm:$0xff] }
 0x13b   : > { %v583_v60 = vpop.permute.xlu1 %582  ;;  %v513_v61 = vpop.permute.xlu0 %512 }
 0x13c   : > { %v667_v29 = vsel %vm663_vm10, %v658_v59, %v583_v60  ;;  %v641_v13 = vsel %vm636_vm7, %v632_v12, %v513_v61 }
 0x13d   : > { %1521 = vmatmul.mubr.msk.f32.gmra.mrb[2].mxu0 %vm688_vm11, %v667_v29 }
 0x13f   : > { %v445_v57 = vpop.permute.xlu1 %444  ;;  %v423_v9 = vpop.permute.xlu0 %422 }
 0x140   : > { %v608_v37 = vsel %vm600_vm3, %v2103_v23, %v423_v9  ;;  %v616_v38 = vsel %vm609_vm4, %v607_v36, %v445_v57 }
 0x143   : > { %v537_v63 = vpop.permute.xlu1 %536  ;;  %v515_v8 = vpop.permute.xlu0 %514 }
 0x144   : > { %v650_v17 = vsel %vm645_vm8, %v641_v13, %v537_v63  ;;  %v642_v27 = vsel %vm636_vm7, %v633_v26, %v515_v8 }
 0x147   : > { %v469_v1 = vpop.permute.xlu1 %468  ;;  %v447_v3 = vpop.permute.xlu0 %446 }
 0x148   : > { %v617_v39 = vsel %vm609_vm4, %v608_v37, %v447_v3  ;;  %v625_v40 = vsel %vm618_vm5, %v616_v38, %v469_v1 }
 0x14b   : > { %v561_v4 = vpop.permute.xlu1 %560  ;;  %v539_v5 = vpop.permute.xlu0 %538 }
 0x14c   : > { %v659_v18 = vsel %vm654_vm9, %v650_v17, %v561_v4  ;;  %v651_v28 = vsel %vm645_vm8, %v642_v27, %v539_v5 }
 0x14f   : > { %v493_v10 = vpop.permute.xlu1 %492  ;;  %v471_v11 = vpop.permute.xlu0 %470 }
 0x150   : > { %v626_v41 = vsel %vm618_vm5, %v617_v39, %v471_v11  ;;  %v634_v44 = vsel %vm627_vm6, %v625_v40, %v493_v10  ;;  %v1173_v39 = vld [vmem:[#allocation6 + $0x20] sm:$0xff]  ;;  %v1174_v40 = vld [vmem:[#allocation6 + $0x28] sm:$0xff] }
 0x153   : > { %v585_v19 = vpop.permute.xlu1 %584  ;;  %v563_v20 = vpop.permute.xlu0 %562 }
 0x154   : > { %v668_v21 = vsel %vm663_vm10, %v659_v18, %v585_v19  ;;  %v660_v31 = vsel %vm654_vm9, %v651_v28, %v563_v20 }
 0x155   : > { %1523 = vmatprep.mubr.msk.f32.mxu0 %vm688_vm11, %v668_v21 }
 0x157   : > { %v517_v24 = vpop.permute.xlu1 %516  ;;  %v495_v25 = vpop.permute.xlu0 %494 }
 0x158   : > { %v635_v45 = vsel %vm627_vm6, %v626_v41, %v495_v25  ;;  %v643_v16 = vsel %vm636_vm7, %v634_v44, %v517_v24  ;;  %v1170_v24 = vld [vmem:[#allocation6 + $0x8] sm:$0xff]  ;;  %v1583_v41 = vpack.c.bf16 %v1174_v40, %v1173_v39 }
 0x159   : > { %v1575_v26 = vpack.c.bf16 %v1170_v24, %v1169_v22 }
 0x15b   : > { %v519_v32 = vpop.permute.xlu1 %518  ;;  %v587_v33 = vpop.permute.xlu0 %586  ;;  %1576 = vmatprep.subr.bf16.mxu1 %v1575_v26 }
 0x15c   : > { %v669_v62 = vsel %vm663_vm10, %v660_v31, %v587_v33  ;;  %v644_v46 = vsel %vm636_vm7, %v635_v45, %v519_v32  ;;  %1578 = vmatpush3.bf16.msra.mxu1 %v1575_v26  ;;  %v1171_v32 = vld [vmem:[#allocation6 + $0x10] sm:$0xff]  ;;  %v1172_v33 = vld [vmem:[#allocation6 + $0x18] sm:$0xff] }
 0x15d   : > { %1524 = vmatmul.mubr.msk.f32.gmra.mrb[4].mxu0 %vm688_vm11, %v669_v62 }
 0x15f   : > { %v2218_v30 = vpop.permute.xlu1 %542  ;;  %v541_v34 = vpop.permute.xlu0 %540 }
 0x160   : > { %v653_v23 = vsel %vm645_vm8, %v644_v46, %v2218_v30  ;;  %v652_v47 = vsel %vm645_vm8, %v643_v16, %v541_v34  ;;  %v1579_v34 = vpack.c.bf16 %v1172_v33, %v1171_v32  ;;  %v1175_v46 = vld [vmem:[#allocation6 + $0x30] sm:$0xff] }
 0x162   : > { %1580 = vmatprep.subr.bf16.mxu1 %v1579_v34 }
 0x163   : > { %v2228_v42 = vpop.permute.xlu1 %566  ;;  %v565_v43 = vpop.permute.xlu0 %564  ;;  %1582 = vmatpush3.bf16.msra.mxu1 %v1579_v34 }
 0x164   : > { %v662_v48 = vsel %vm654_vm9, %v653_v23, %v2228_v42  ;;  %v661_v49 = vsel %vm654_vm9, %v652_v47, %v565_v43  ;;  %1584 = vmatprep.subr.bf16.mxu1 %v1583_v41  ;;  %v1176_v23 = vld [vmem:[#allocation6 + $0x38] sm:$0xff] }
 0x165   : > { %v1587_v47 = vpack.c.bf16 %v1176_v23, %v1175_v46 }
 0x167   : > { %v2240_v14 = vpop.permute.xlu1 %590  ;;  %v589_v50 = vpop.permute.xlu0 %588  ;;  %1586 = vmatpush3.bf16.msra.mxu1 %v1583_v41 }
 0x168   : > { %v671_v51 = vsel %vm663_vm10, %v662_v48, %v2240_v14  ;;  %v670_v52 = vsel %vm663_vm10, %v661_v49, %v589_v50  ;;  %1588 = vmatprep.subr.bf16.mxu1 %v1587_v47 }
 0x169   : > { %1526 = vmatprep.mubr.msk.f32.mxu0 %vm688_vm11, %v670_v52 }
 0x16a   : > { %1527 = vmatmul.mubr.msk.f32.gmra.mrb[6].mxu0 %vm688_vm11, %v671_v51  ;;  %v1177_v51 = vld [vmem:[#allocation6 + $0x40] sm:$0xff] }
 0x16b   : > { %1590 = vmatpush3.bf16.msra.mxu1 %v1587_v47 }
 0x16c   : > { %1545 = vmatprep.subr.mxu1 %v1177_v51 }
 0x16f   : > { %1546 = vmatpush3.msra.mxu1 %v1177_v51 }
 0x1f0   : > { %v1519_v54 = vpop.f32.mrb[0].mxu0 }
 0x1f1   : > { %v785_v56 = vadd.f32 %v1519_v54, %v2247_v53  ;;  %v779_v58 = vpop.f32.mrb[1].mxu0 }
 0x1f2   : > { %v780_v59 = vadd.f32 %v2247_v53, %v779_v58 }
 0x1f3   : > { %v819_v60 = vmax.f32 %v785_v56, 0.0 }
 0x1f4   : > { %v818_v61 = vmax.f32 %v780_v59, 0.0 }
 0x1f5   : > { %v835_v29 = vrot.slane %v819_v60, 7 }
 0x1f6   : > { %v834_v57 = vrot.slane %v818_v61, 7 }
 0x1f7   : > { %v2252_v9 = vsel %vm315_vm0, 0.0, %v835_v29  ;;  %v859_v63 = vsel %vm315_vm0, %v835_v29, 0.0 }
 0x1f8   : > { %v884_v8 = vrot.slane %v859_v63, 1  ;;  %974 = vrot.lane.b32.xlu1 %v2252_v9, %s1799_s16  ;;  %v2258_v1 = vsel %vm315_vm0, 0.0, %v834_v57  ;;  %v883_v3 = vrot.slane %v2252_v9, 1  ;;  %v905_v4 = vrot.slane %v859_v63, 2 }
 0x1f9   : > { %972 = vrot.lane.b32.xlu0 %v2258_v1, %s1799_s16  ;;  %v904_v2 = vrot.slane %v2252_v9, 2  ;;  %v858_v6 = vsel %vm315_vm0, %v834_v57, 0.0  ;;  %v880_v11 = vrot.slane %v2258_v1, 1  ;;  %v901_v17 = vrot.slane %v2258_v1, 2 }
 0x1fa   : > { %v885_v5 = vsel %vm350_vm2, %v883_v3, %v884_v8  ;;  %v881_v7 = vrot.slane %v858_v6, 1  ;;  %v902_v13 = vrot.slane %v858_v6, 2 }
 0x1fb   : > { %v906_v10 = vsel %vm375_vm1, %v904_v2, %v905_v4 }
 0x1fc   : > { %1044 = vrot.lane.b32.xlu1 %v2252_v9, %s1802_s24  ;;  %v882_v12 = vsel %vm350_vm2, %v880_v11, %v881_v7  ;;  %v903_v18 = vsel %vm375_vm1, %v901_v17, %v902_v13 }
 0x1fd   : > { %998 = vrot.lane.b32.xlu0 %v885_v5, %s1800_s17 }
 0x200   : > { %932 = vrot.lane.b32.xlu1 %v885_v5, %s1798_s15 }
 0x201   : > { %1022 = vrot.lane.b32.xlu0 %v906_v10, %s1801_s19 }
 0x204   : > { %953 = vrot.lane.b32.xlu1 %v906_v10, %s1797_s14 }
 0x205   : > { %930 = vrot.lane.b32.xlu0 %v882_v12, %s1798_s15 }
 0x208   : > { %1065 = vrot.lane.b32.xlu1 %v885_v5, %s1803_s23 }
 0x209   : > { %996 = vrot.lane.b32.xlu0 %v882_v12, %s1800_s17 }
 0x20c   : > { %1086 = vrot.lane.b32.xlu1 %v906_v10, %s1804_s26 }
 0x210   : > { %951 = vrot.lane.b32.xlu1 %v903_v18, %s1797_s14  ;;  %v1522_v19 = vpop.f32.mrb[2].mxu0 }
 0x211   : > { %v795_v20 = vadd.f32 %v1522_v19, %v2247_v53  ;;  %v789_v21 = vpop.f32.mrb[3].mxu0 }
 0x212   : > { %v790_v55 = vadd.f32 %v2247_v53, %v789_v21 }
 0x213   : > { %v821_v15 = vmax.f32 %v795_v20, 0.0 }
 0x214   : > { %v820_v25 = vmax.f32 %v790_v55, 0.0  ;;  %1020 = vrot.lane.b32.xlu1 %v903_v18, %s1801_s19 }
 0x215   : > { %v837_v27 = vrot.slane %v821_v15, 7 }
 0x216   : > { %v836_v31 = vrot.slane %v820_v25, 7 }
 0x217   : > { %v2286_v28 = vsel %vm315_vm0, 0.0, %v837_v27  ;;  %v861_v62 = vsel %vm315_vm0, %v837_v27, 0.0 }
 0x218   : > { %1048 = vrot.lane.b32.xlu1 %v2286_v28, %s1802_s24  ;;  %978 = vrot.lane.b32.xlu0 %v2286_v28, %s1799_s16  ;;  %v890_v36 = vrot.slane %v861_v62, 1  ;;  %v2294_v37 = vsel %vm315_vm0, 0.0, %v836_v31  ;;  %v889_v38 = vrot.slane %v2286_v28, 1  ;;  %v911_v43 = vrot.slane %v861_v62, 2 }
 0x219   : > { %v910_v45 = vrot.slane %v2286_v28, 2  ;;  %v860_v16 = vsel %vm315_vm0, %v836_v31, 0.0  ;;  %v886_v50 = vrot.slane %v2294_v37, 1  ;;  %v907_v56 = vrot.slane %v2294_v37, 2 }
 0x21a   : > { %v891_v44 = vsel %vm350_vm2, %v889_v38, %v890_v36  ;;  %v887_v48 = vrot.slane %v860_v16, 1  ;;  %v908_v52 = vrot.slane %v860_v16, 2 }
 0x21b   : > { %v912_v49 = vsel %vm375_vm1, %v910_v45, %v911_v43 }
 0x21c   : > { %1046 = vrot.lane.b32.xlu0 %v2294_v37, %s1802_s24  ;;  %976 = vrot.lane.b32.xlu1 %v2294_v37, %s1799_s16  ;;  %v888_v54 = vsel %vm350_vm2, %v886_v50, %v887_v48  ;;  %v909_v58 = vsel %vm375_vm1, %v907_v56, %v908_v52 }
 0x220   : > { %936 = vrot.lane.b32.xlu0 %v891_v44, %s1798_s15  ;;  %1002 = vrot.lane.b32.xlu1 %v891_v44, %s1800_s17 }
 0x224   : > { %1026 = vrot.lane.b32.xlu0 %v912_v49, %s1801_s19  ;;  %957 = vrot.lane.b32.xlu1 %v912_v49, %s1797_s14 }
 0x228   : > { %1069 = vrot.lane.b32.xlu1 %v891_v44, %s1803_s23  ;;  %934 = vrot.lane.b32.xlu0 %v888_v54, %s1798_s15 }
 0x22c   : > { %1090 = vrot.lane.b32.xlu1 %v912_v49, %s1804_s26  ;;  %955 = vrot.lane.b32.xlu0 %v909_v58, %s1797_s14 }
 0x230   : > { %1000 = vrot.lane.b32.xlu1 %v888_v54, %s1800_s17  ;;  %1067 = vrot.lane.b32.xlu0 %v888_v54, %s1803_s23  ;;  %v1525_v59 = vpop.f32.mrb[4].mxu0 }
 0x231   : > { %v805_v60 = vadd.f32 %v1525_v59, %v2247_v53  ;;  %v799_v61 = vpop.f32.mrb[5].mxu0 }
 0x232   : > { %v800_v29 = vadd.f32 %v2247_v53, %v799_v61 }
 0x233   : > { %v823_v57 = vmax.f32 %v805_v60, 0.0 }
 0x234   : > { %v822_v63 = vmax.f32 %v800_v29, 0.0  ;;  %1088 = vrot.lane.b32.xlu1 %v909_v58, %s1804_s26  ;;  %1024 = vrot.lane.b32.xlu0 %v909_v58, %s1801_s19 }
 0x235   : > { %v839_v8 = vrot.slane %v823_v57, 7 }
 0x236   : > { %v838_v4 = vrot.slane %v822_v63, 7 }
 0x237   : > { %v2324_v3 = vsel %vm315_vm0, 0.0, %v839_v8  ;;  %v863_v5 = vsel %vm315_vm0, %v839_v8, 0.0 }
 0x238   : > { %1052 = vrot.lane.b32.xlu1 %v2324_v3, %s1802_s24  ;;  %982 = vrot.lane.b32.xlu0 %v2324_v3, %s1799_s16  ;;  %v896_v2 = vrot.slane %v863_v5, 1  ;;  %v2332_v6 = vsel %vm315_vm0, 0.0, %v838_v4  ;;  %v895_v7 = vrot.slane %v2324_v3, 1  ;;  %v917_v12 = vrot.slane %v863_v5, 2 }
 0x239   : > { %v916_v17 = vrot.slane %v2324_v3, 2  ;;  %v862_v18 = vsel %vm315_vm0, %v838_v4, 0.0  ;;  %v892_v21 = vrot.slane %v2332_v6, 1  ;;  %v913_v22 = vrot.slane %v2332_v6, 2 }
 0x23a   : > { %v897_v13 = vsel %vm350_vm2, %v895_v7, %v896_v2  ;;  %v893_v19 = vrot.slane %v862_v18, 1  ;;  %v914_v55 = vrot.slane %v862_v18, 2 }
 0x23b   : > { %v918_v20 = vsel %vm375_vm1, %v916_v17, %v917_v12 }
 0x23c   : > { %1050 = vrot.lane.b32.xlu0 %v2332_v6, %s1802_s24  ;;  %980 = vrot.lane.b32.xlu1 %v2332_v6, %s1799_s16  ;;  %v894_v15 = vsel %vm350_vm2, %v892_v21, %v893_v19  ;;  %v915_v26 = vsel %vm375_vm1, %v913_v22, %v914_v55 }
 0x23d   : > { %v1528_v10 = vpop.f32.mrb[6].mxu0 }
 0x23e   : > { %v809_v11 = vpop.f32.mrb[7].mxu0  ;;  %v815_v24 = vadd.f32 %v1528_v10, %v2247_v53 }
 0x23f   : > { %v810_v25 = vadd.f32 %v2247_v53, %v809_v11 }
 0x240   : > { %940 = vrot.lane.b32.xlu0 %v897_v13, %s1798_s15  ;;  %1006 = vrot.lane.b32.xlu1 %v897_v13, %s1800_s17  ;;  %v825_v27 = vmax.f32 %v815_v24, 0.0 }
 0x241   : > { %v824_v31 = vmax.f32 %v810_v25, 0.0 }
 0x242   : > { %v841_v32 = vrot.slane %v825_v27, 7 }
 0x243   : > { %v840_v33 = vrot.slane %v824_v31, 7 }
 0x244   : > { %1030 = vrot.lane.b32.xlu0 %v918_v20, %s1801_s19  ;;  %961 = vrot.lane.b32.xlu1 %v918_v20, %s1797_s14  ;;  %v865_v62 = vsel %vm315_vm0, %v841_v32, 0.0  ;;  %v857_v53 = vsel %vm315_vm0, 0.0, %v841_v32 }
 0x245   : > { %v928_v34 = vrot.slane %v865_v62, 2  ;;  %v2364_v36 = vsel %vm315_vm0, 0.0, %v840_v33  ;;  %v927_v38 = vrot.slane %v857_v53, 2  ;;  %v864_v39 = vsel %vm315_vm0, %v840_v33, 0.0 }
 0x246   : > { %v899_v40 = vrot.slane %v864_v39, 1  ;;  %v898_v43 = vrot.slane %v2364_v36, 1  ;;  %v925_v44 = vrot.slane %v865_v62, 1  ;;  %v920_v45 = vrot.slane %v864_v39, 2 }
 0x247   : > { %v929_v41 = vsel %vm375_vm1, %v927_v38, %v928_v34  ;;  %v924_v16 = vrot.slane %v857_v53, 1  ;;  %v919_v23 = vrot.slane %v2364_v36, 2 }
 0x248   : > { %1073 = vrot.lane.b32.xlu1 %v897_v13, %s1803_s23  ;;  %938 = vrot.lane.b32.xlu0 %v894_v15, %s1798_s15  ;;  %v900_v46 = vsel %vm350_vm2, %v898_v43, %v899_v40 }
 0x249   : > { %v926_v47 = vsel %vm350_vm2, %v924_v16, %v925_v44  ;;  %v921_v48 = vsel %vm375_vm1, %v919_v23, %v920_v45 }
 0x24c   : > { %1094 = vrot.lane.b32.xlu1 %v918_v20, %s1804_s26  ;;  %959 = vrot.lane.b32.xlu0 %v915_v26, %s1797_s14 }
 0x250   : > { %1004 = vrot.lane.b32.xlu1 %v894_v15, %s1800_s17  ;;  %1071 = vrot.lane.b32.xlu0 %v894_v15, %s1803_s23 }
 0x254   : > { %1092 = vrot.lane.b32.xlu1 %v915_v26, %s1804_s26  ;;  %1028 = vrot.lane.b32.xlu0 %v915_v26, %s1801_s19 }
 0x258   : > { %986 = vrot.lane.b32.xlu0 %v857_v53, %s1799_s16  ;;  %984 = vrot.lane.b32.xlu1 %v2364_v36, %s1799_s16 }
 0x25c   : > { %1056 = vrot.lane.b32.xlu0 %v857_v53, %s1802_s24  ;;  %1034 = vrot.lane.b32.xlu1 %v929_v41, %s1801_s19 }
 0x260   : > { %1054 = vrot.lane.b32.xlu0 %v2364_v36, %s1802_s24  ;;  %1008 = vrot.lane.b32.xlu1 %v900_v46, %s1800_s17 }
 0x264   : > { %1010 = vrot.lane.b32.xlu0 %v926_v47, %s1800_s17  ;;  %1032 = vrot.lane.b32.xlu1 %v921_v48, %s1801_s19 }
 0x268   : > { %1077 = vrot.lane.b32.xlu1 %v926_v47, %s1803_s23  ;;  %942 = vrot.lane.b32.xlu0 %v900_v46, %s1798_s15 }
 0x26a   : > { %v975_v49 = vpop.permute.xlu1 %974 }
 0x26b   : > { %v973_v50 = vpop.permute.xlu0 %972 }
 0x26c   : > { %963 = vrot.lane.b32.xlu0 %v921_v48, %s1797_s14  ;;  %v1121_v63 = vsel %vm618_vm5, %v2157_v0, %v973_v50 }
 0x26e   : > { %v1045_v51 = vpop.permute.xlu1 %1044 }
 0x26f   : > { %v999_v52 = vpop.permute.xlu0 %998 }
 0x270   : > { %1075 = vrot.lane.b32.xlu0 %v900_v46, %s1803_s23 }
 0x272   : > { %v933_v54 = vpop.permute.xlu1 %932 }
 0x273   : > { %v1023_v58 = vpop.permute.xlu0 %1022  ;;  %v1108_v33 = vsel %vm600_vm3, %v2252_v9, %v933_v54 }
 0x274   : > { %1096 = vrot.lane.b32.xlu0 %v921_v48, %s1804_s26 }
 0x276   : > { %v954_v56 = vpop.permute.xlu1 %953 }
 0x277   : > { %v931_v60 = vpop.permute.xlu0 %930  ;;  %v1115_v62 = vsel %vm609_vm4, %v1108_v33, %v954_v56 }
 0x278   : > { %1098 = vrot.lane.b32.xlu0 %v929_v41, %s1804_s26  ;;  %v1107_v21 = vsel %vm600_vm3, %v2258_v1, %v931_v60 }
 0x27a   : > { %v1066_v59 = vpop.permute.xlu1 %1065 }
 0x27b   : > { %v997_v57 = vpop.permute.xlu0 %996 }
 0x27c   : > { %v1129_v8 = vsel %vm627_vm6, %v1121_v63, %v997_v57 }
 0x27e   : > { %v1087_v61 = vpop.permute.xlu1 %1086 }
 0x282   : > { %v952_v29 = vpop.permute.xlu1 %951 }
 0x283   : > { %v1114_v22 = vsel %vm609_vm4, %v1107_v21, %v952_v29 }
 0x284   : > { %v1122_v24 = vsel %vm618_vm5, %v1114_v22, %v975_v49 }
 0x285   : > { %v1130_v27 = vsel %vm627_vm6, %v1122_v24, %v999_v52 }
 0x286   : > { %v1021_v4 = vpop.permute.xlu1 %1020  ;;  %v1138_v53 = vsel %vm636_vm7, %v1130_v27, %v1023_v58 }
 0x287   : > { %v1137_v5 = vsel %vm636_vm7, %v1129_v8, %v1021_v4 }
 0x288   : > { %v1145_v2 = vsel %vm645_vm8, %v1137_v5, %v1045_v51 }
 0x289   : > { %v1153_v7 = vsel %vm654_vm9, %v1145_v2, %v1066_v59 }
 0x28a   : > { %v1049_v10 = vpop.permute.xlu1 %1048  ;;  %v979_v11 = vpop.permute.xlu0 %978  ;;  %v1161_v12 = vsel %vm663_vm10, %v1153_v7, %v1087_v61 }
 0x28b   : > { %1547 = vmatprep.mubr.msk.f32.mxu1 %vm688_vm11, %v1161_v12 }
 0x28e   : > { %v977_v13 = vpop.permute.xlu1 %976  ;;  %v1047_v17 = vpop.permute.xlu0 %1046 }
 0x28f   : > { %v1123_v1 = vsel %vm618_vm5, %v1115_v62, %v977_v13  ;;  %v1146_v34 = vsel %vm645_vm8, %v1138_v53, %v1047_v17 }
 0x292   : > { %v1003_v18 = vpop.permute.xlu1 %1002  ;;  %v937_v19 = vpop.permute.xlu0 %936 }
 0x293   : > { %v1110_v4 = vsel %vm600_vm3, %v2286_v28, %v937_v19 }
 0x296   : > { %v958_v0 = vpop.permute.xlu1 %957  ;;  %v1027_v20 = vpop.permute.xlu0 %1026 }
 0x297   : > { %v1117_v5 = vsel %vm609_vm4, %v1110_v4, %v958_v0 }
 0x29a   : > { %v1070_v55 = vpop.permute.xlu1 %1069  ;;  %v935_v15 = vpop.permute.xlu0 %934 }
 0x29b   : > { %v1109_v54 = vsel %vm600_vm3, %v2294_v37, %v935_v15 }
 0x29e   : > { %v1091_v25 = vpop.permute.xlu1 %1090  ;;  %v956_v26 = vpop.permute.xlu0 %955 }
 0x29f   : > { %v1116_v59 = vsel %vm609_vm4, %v1109_v54, %v956_v26 }
 0x2a0   : > { %v1124_v60 = vsel %vm618_vm5, %v1116_v59, %v979_v11 }
 0x2a1   : > { %v1132_v57 = vsel %vm627_vm6, %v1124_v60, %v1003_v18 }
 0x2a2   : > { %v1001_v31 = vpop.permute.xlu1 %1000  ;;  %v1068_v32 = vpop.permute.xlu0 %1067  ;;  %v1140_v2 = vsel %vm636_vm7, %v1132_v57, %v1027_v20 }
 0x2a3   : > { %v1131_v38 = vsel %vm627_vm6, %v1123_v1, %v1001_v31  ;;  %v1154_v39 = vsel %vm654_vm9, %v1146_v34, %v1068_v32 }
 0x2a6   : > { %v1089_v40 = vpop.permute.xlu1 %1088  ;;  %v1025_v41 = vpop.permute.xlu0 %1024 }
 0x2a7   : > { %v1162_v43 = vsel %vm663_vm10, %v1154_v39, %v1089_v40  ;;  %v1139_v44 = vsel %vm636_vm7, %v1131_v38, %v1025_v41 }
 0x2a8   : > { %v1147_v9 = vsel %vm645_vm8, %v1139_v44, %v1049_v10  ;;  %1548 = vmatmul.mubr.msk.f32.vlgmr.msra.gmra.mrb[0].mxu1 %vm688_vm11, %v1162_v43 }
 0x2a9   : > { %v1155_v45 = vsel %vm654_vm9, %v1147_v9, %v1070_v55 }
 0x2aa   : > { %v1053_v16 = vpop.permute.xlu1 %1052  ;;  %v983_v46 = vpop.permute.xlu0 %982  ;;  %v1163_v23 = vsel %vm663_vm10, %v1155_v45, %v1091_v25 }
 0x2ab   : > { %1550 = vmatprep.mubr.msk.f32.mxu1 %vm688_vm11, %v1163_v23 }
 0x2ae   : > { %v981_v47 = vpop.permute.xlu1 %980  ;;  %v1051_v48 = vpop.permute.xlu0 %1050 }
 0x2af   : > { %v1125_v37 = vsel %vm618_vm5, %v1117_v5, %v981_v47  ;;  %v1148_v7 = vsel %vm645_vm8, %v1140_v2, %v1051_v48  ;;  %v1653_v2 = vld [vmem:[%s1997_s10 + $0x18] sm:$0xff] }
 0x2b2   : > { %v1007_v49 = vpop.permute.xlu1 %1006  ;;  %v941_v50 = vpop.permute.xlu0 %940 }
 0x2b6   : > { %v962_v51 = vpop.permute.xlu1 %961  ;;  %v1031_v52 = vpop.permute.xlu0 %1030 }
 0x2ba   : > { %v1074_v56 = vpop.permute.xlu1 %1073  ;;  %v939_v58 = vpop.permute.xlu0 %938 }
 0x2bb   : > { %v1111_v25 = vsel %vm600_vm3, %v2332_v6, %v939_v58  ;;  %v1112_v6 = vsel %vm600_vm3, %v2324_v3, %v941_v50 }
 0x2bc   : > { %v1119_v41 = vsel %vm609_vm4, %v1112_v6, %v962_v51 }
 0x2be   : > { %v1095_v61 = vpop.permute.xlu1 %1094  ;;  %v960_v29 = vpop.permute.xlu0 %959 }
 0x2bf   : > { %v1118_v27 = vsel %vm609_vm4, %v1111_v25, %v960_v29  ;;  %v1652_v29 = vld [vmem:[%s1997_s10] sm:$0xff] }
 0x2c0   : > { %v1126_v32 = vsel %vm618_vm5, %v1118_v27, %v983_v46 }
 0x2c1   : > { %v1134_v34 = vsel %vm627_vm6, %v1126_v32, %v1007_v49 }
 0x2c2   : > { %v1005_v63 = vpop.permute.xlu1 %1004  ;;  %v1072_v8 = vpop.permute.xlu0 %1071  ;;  %v1142_v44 = vsel %vm636_vm7, %v1134_v34, %v1031_v52 }
 0x2c3   : > { %v1133_v10 = vsel %vm627_vm6, %v1125_v37, %v1005_v63  ;;  %v1156_v11 = vsel %vm654_vm9, %v1148_v7, %v1072_v8  ;;  %v1654_v7 = vld [vmem:[%s1997_s10 + $0x10] sm:$0xff] }
 0x2c6   : > { %v1093_v12 = vpop.permute.xlu1 %1092  ;;  %v1029_v13 = vpop.permute.xlu0 %1028 }
 0x2c7   : > { %v1164_v17 = vsel %vm663_vm10, %v1156_v11, %v1093_v12  ;;  %v1141_v18 = vsel %vm636_vm7, %v1133_v10, %v1029_v13 }
 0x2c8   : > { %v1149_v28 = vsel %vm645_vm8, %v1141_v18, %v1053_v16  ;;  %1551 = vmatmul.mubr.msk.f32.gmra.mrb[2].mxu1 %vm688_vm11, %v1164_v17  ;;  %v1655_v18 = vld [vmem:[%s1997_s10 + $0x28] sm:$0xff] }
 0x2c9   : > { %v1157_v19 = vsel %vm654_vm9, %v1149_v28, %v1074_v56  ;;  %v1452_v56 = vld [vmem:[#allocation7] ss:$0 sm:$0xff] }
 0x2ca   : > { %v987_v0 = vpop.permute.xlu0 %986  ;;  %v1165_v20 = vsel %vm663_vm10, %v1157_v19, %v1095_v61  ;;  %v985_v55 = vpop.permute.xlu1 %984  ;;  %v1656_v19 = vld [vmem:[%s1997_s10 + $0x20] sm:$0xff] }
 0x2cb   : > { %1553 = vmatprep.mubr.msk.f32.mxu1 %vm688_vm11, %v1165_v20 }
 0x2ce   : > { %v1057_v21 = vpop.permute.xlu0 %1056  ;;  %v1035_v22 = vpop.permute.xlu1 %1034 }
 0x2d2   : > { %v1055_v15 = vpop.permute.xlu0 %1054  ;;  %v1009_v31 = vpop.permute.xlu1 %1008 }
 0x2d3   : > { %v1150_v45 = vsel %vm645_vm8, %v1142_v44, %v1055_v15 }
 0x2d6   : > { %v1011_v24 = vpop.permute.xlu0 %1010  ;;  %v1033_v38 = vpop.permute.xlu1 %1032 }
 0x2da   : > { %v943_v26 = vpop.permute.xlu0 %942  ;;  %v1078_v47 = vpop.permute.xlu1 %1077 }
 0x2db   : > { %v1113_v33 = vsel %vm600_vm3, %v2364_v36, %v943_v26  ;;  %v1127_v36 = vsel %vm618_vm5, %v1119_v41, %v985_v55 }
 0x2dc   : > { %v1135_v9 = vsel %vm627_vm6, %v1127_v36, %v1009_v31 }
 0x2dd   : > { %v1143_v16 = vsel %vm636_vm7, %v1135_v9, %v1033_v38 }
 0x2de   : > { %v964_v62 = vpop.permute.xlu0 %963  ;;  %v1151_v49 = vsel %vm645_vm8, %v1143_v16, %v1057_v21 }
 0x2df   : > { %v1120_v53 = vsel %vm609_vm4, %v1113_v33, %v964_v62  ;;  %v1159_v51 = vsel %vm654_vm9, %v1151_v49, %v1078_v47 }
 0x2e0   : > { %v1128_v1 = vsel %vm618_vm5, %v1120_v53, %v987_v0 }
 0x2e1   : > { %v1136_v39 = vsel %vm627_vm6, %v1128_v1, %v1011_v24  ;;  %v1657_v24 = vld [vmem:[%s1997_s10 + $0x30] sm:$0xff] }
 0x2e2   : > { %v1076_v40 = vpop.permute.xlu0 %1075  ;;  %v1144_v43 = vsel %vm636_vm7, %v1136_v39, %v1035_v22 }
 0x2e3   : > { %v1158_v46 = vsel %vm654_vm9, %v1150_v45, %v1076_v40  ;;  %v1152_v3 = vsel %vm645_vm8, %v1144_v43, %v2218_v30 }
 0x2e4   : > { %v1160_v50 = vsel %vm654_vm9, %v1152_v3, %v2228_v42 }
 0x2e5   : > { %v1168_v30 = vsel %vm663_vm10, %v1160_v50, %v2240_v14  ;;  %v1651_v14 = vld [vmem:[%s1997_s10 + $0x8] sm:$0xff] }
 0x2e6   : > { %v1097_v23 = vpop.permute.xlu0 %1096 }
 0x2e7   : > { %v1166_v48 = vsel %vm663_vm10, %v1158_v46, %v1097_v23 }
 0x2e8   : > { %1554 = vmatmul.mubr.msk.f32.gmra.mrb[4].mxu1 %vm688_vm11, %v1166_v48 }
 0x2ea   : > { %v1099_v52 = vpop.permute.xlu0 %1098 }
 0x2eb   : > { %v1167_v54 = vsel %vm663_vm10, %v1159_v51, %v1099_v52 }
 0x2ec   : > { %1556 = vmatprep.mubr.msk.f32.mxu1 %vm688_vm11, %v1167_v54 }
 0x2ed   : > { %1557 = vmatmul.mubr.msk.f32.gmra.mrb[6].mxu1 %vm688_vm11, %v1168_v30 }
 0x37b   : > { %v1549_v58 = vpop.f32.mrb[0].mxu1 }
 0x37c   : > { %v1281_v59 = vadd.f32 %v1549_v58, %v1452_v56  ;;  %v1275_v60 = vpop.f32.mrb[1].mxu1 }
 0x37d   : > { %v1276_v42 = vadd.f32 %v1452_v56, %v1275_v60 }
 0x37e   : > { %v1315_v61 = vadd.f32 %v1651_v14, %v1281_v59 }
 0x37f   : > { %v1314_v57 = vadd.f32 %v1652_v29, %v1276_v42 }
 0x380   : > { %1323 = vst.msk [vmem:[%s2475_s6 + $0x8] sm:$0xff] %vm600_vm3, %v1315_v61 }
 0x381   : > { %1322 = vst.msk [vmem:[%s2475_s6] sm:$0xff] %vm600_vm3, %v1314_v57 }
 0x39b   : > { %v1552_v63 = vpop.f32.mrb[2].mxu1 }
 0x39c   : > { %v1291_v8 = vadd.f32 %v1552_v63, %v1452_v56  ;;  %v1285_v4 = vpop.f32.mrb[3].mxu1 }
 0x39d   : > { %v1286_v5 = vadd.f32 %v1452_v56, %v1285_v4 }
 0x39e   : > { %v1317_v37 = vadd.f32 %v1653_v2, %v1291_v8 }
 0x39f   : > { %v1316_v10 = vadd.f32 %v1654_v7, %v1286_v5 }
 0x3a0   : > { %1325 = vst.msk [vmem:[%s2475_s6 + $0x18] sm:$0xff] %vm600_vm3, %v1317_v37 }
 0x3a1   : > { %1324 = vst.msk [vmem:[%s2475_s6 + $0x10] sm:$0xff] %vm600_vm3, %v1316_v10 }
 0x3bb   : > { %v1555_v11 = vpop.f32.mrb[4].mxu1 }
 0x3bc   : > { %v1301_v12 = vadd.f32 %v1555_v11, %v1452_v56  ;;  %v1295_v13 = vpop.f32.mrb[5].mxu1 }
 0x3bd   : > { %v1296_v17 = vadd.f32 %v1452_v56, %v1295_v13 }
 0x3be   : > { %v1319_v28 = vadd.f32 %v1655_v18, %v1301_v12 }
 0x3bf   : > { %v1318_v0 = vadd.f32 %v1656_v19, %v1296_v17 }
 0x3c0   : > { %1327 = vst.msk [vmem:[%s2475_s6 + $0x28] sm:$0xff] %vm600_vm3, %v1319_v28  ;;  %v1558_v20 = vpop.f32.mrb[6].mxu1 }
 0x3c1   : > { %1326 = vst.msk [vmem:[%s2475_s6 + $0x20] sm:$0xff] %vm600_vm3, %v1318_v0  ;;  %v1311_v21 = vadd.f32 %v1558_v20, %v1452_v56  ;;  %v1305_v55 = vpop.f32.mrb[7].mxu1 }
 0x3c2   : > { %v1306_v15 = vadd.f32 %v1452_v56, %v1305_v55 }
 0x3c3   : > { %v1321_v22 = vadd.f32 %v1311_v21, %v2122_v35 }
 0x3c4   : > { %v1320_v25 = vadd.f32 %v1657_v24, %v1306_v15 }
 0x3c5   : > { %1329 = vst.msk [vmem:[%s2475_s6 + $0x38] sm:$0xff] %vm600_vm3, %v1321_v22 }
 0x3c6   : > { %1328 = vst.msk [vmem:[%s2475_s6 + $0x30] sm:$0xff] %vm600_vm3, %v1320_v25 }
 0x3c7 PF: > { %s18_s18 = sadd.s32 1, %s1788_s18  }
 0x3c8   : > { %p15_p6 = scmp.ge.s32.totalorder %s18_s18, 4  }
 0x3ca   :  { %17 = sbr.rel (!%p15_p6) target bundleno = 3 (0x3), region = 87 }
 0x3d1   :  { %1351 = vsyncpa [#allocation3], 1 }
 0x3d2   :  { %1353 = vsyncpa [#allocation3 + $0x1], 1 }
 0x3d3   :  { %1354 = vsyncpa [#allocation5], 1 }
 0x3d4   :  { %1355 = vsyncpa [#allocation8], 1 }

// kernel: decoder_stage_forward.3
= control target key start
LH: loop header
LB: loop body
LE: loop exit
PB: predicated region body
PF: predicated region fallthrough
CT: control target
= control target key end

     0   :  { %s5739_s21 = smov 0   ;;  %s8175_s0 = inlined_call_operand.vmem [shape: f32[2,8,8,8], index: 0, kind: input, shape index: {}]   ;;  %s8176_s1 = inlined_call_operand.vmem [shape: f32[2,16,16,16], index: 1, kind: input, shape index: {}]   ;;  %s8177_s2 = inlined_call_operand.vmem [shape: f32[4,8,8], index: 2, kind: input, shape index: {}]   ;;  %s8178_s3 = inlined_call_operand.vmem [shape: f32[1,8], index: 3, kind: input, shape index: {}]   ;;  %s8179_s4 = inlined_call_operand.vmem [shape: f32[16,8], index: 4, kind: input, shape index: {}]   ;;  %s8180_s5 = inlined_call_operand.vmem [shape: f32[1,8], index: 5, kind: input, shape index: {}]   ;;  %s8181_s6 = inlined_call_operand.vmem [shape: f32[2,16,16,8], index: 6, kind: output, shape index: {}]  }
   0x1 LB: > { %s5414_s22 = sadd.s32 4294967295, %s5700_s21   ;;  %p5418_p0 = scmp.ge.s32.totalorder %s5700_s21, 1  ;;  %s5700_s21 = sphi %s5739_s21, %s16_s21  }
   0x2   : > { %p222_p1 = scmp.lt.s32.totalorder %s5700_s21, 3 }
   0x4   : > { %p223_p2 = pnand %p5418_p0, %p222_p1 }
   0x6   : > { %226 = sbr.rel (%p223_p2) target bundleno = 586 (0x24a), region = 44 }
   0xd   : > { %v280_v0 = vld [vmem:[%s8177_s2] sm:$0xff]  ;;  %v5433_v1 = vld [vmem:[%s8177_s2 + $0x8] sm:$0xff]  ;;  %p257_p3 = scmp.lt.s32.totalorder %s5414_s22, 1  ;;  %v5442_v2 = vld [vmem:[%s8177_s2 + $0x10] sm:$0xff]  ;;  %vm281_vm0 = vcmask 64512   ;;  %vm3425_vm1 = vcmask 130048   ;;  %v744_v49 = vlaneseq }
   0xe   : > { %5569 = vmatprep.subr.mxu0 %v280_v0  ;;  %5583 = vmatprep.subr.mxu1 %v5433_v1  ;;  %v5451_v3 = vld [vmem:[%s8177_s2 + $0x18] sm:$0xff]  ;;  %v3416_v4 = vld [vmem:[%s8179_s4] sm:$0xff]  ;;  %v3417_v5 = vld [vmem:[%s8179_s4 + $0x8] sm:$0xff]  ;;  %v5702_v47 = vmov 1966171168   ;;  %vm1916_vm2 = vcmask 1040384  }
   0xf   : > { %5570 = vmatpush3.msra.mxu0 %v280_v0  ;;  %5584 = vmatpush3.msra.mxu1 %v5433_v1  ;;  %s8793_s22 = smov (!%p257_p3, %s5414_s22), 1  ;;  %v5677_v9 = vpack.c.bf16 %v3417_v5, %v3416_v4  ;;  %v742_v48 = vunpack.c.l.s4 %v5702_v47  ;;  %v745_v51 = vshrl.u32 %v744_v49, 7  ;;  %v5703_v52 = vmov 1983009808   ;;  %v5880_v56 = vld [vmem:[%s8178_s3] ss:$0 sm:$0xff] }
  0x10   : > { %5597 = vmatprep.subr.mxu0 %v5442_v2  ;;  %5611 = vmatprep.subr.mxu1 %v5451_v3  ;;  %s5496_s7 = sshll.u32 %s8793_s22, 6  ;;  %s5497_s15 = sshll.u32 %s8793_s22, 8  ;;  %v3237_v53 = vunpack.c.l.s4 %v5703_v52 }
  0x11   : > { %s261_s14 = scalar_lea.vmem %s8175_s0, %s5496_s7  ;;  %s5803_s18 = scalar_lea.vmem %s8176_s1, %s5497_s15  ;;  %v743_v50 = vunpack.c.0.s8 %v742_v48 }
  0x12   : > { %v272_v6 = vld [vmem:[%s261_s14] sm:$0xff]  ;;  %v273_v7 = vld [vmem:[%s261_s14 + $0x8] sm:$0xff]  ;;  %v274_v8 = vld [vmem:[%s261_s14 + $0x10] sm:$0xff]  ;;  %v3238_v54 = vunpack.c.0.s8 %v3237_v53  ;;  %s7230_s27 = scalar_lea.vmem %s8181_s6, %s5497_s15 }
  0x13   : > { %5571 = vmatprep.mubr.msk.f32.mxu0 %vm281_vm0, %v272_v6  ;;  %5585 = vmatprep.mubr.msk.f32.mxu1 %vm281_vm0, %v272_v6  ;;  %v275_v10 = vld [vmem:[%s261_s14 + $0x18] sm:$0xff]  ;;  %v276_v11 = vld [vmem:[%s261_s14 + $0x20] sm:$0xff]  ;;  %v277_v12 = vld [vmem:[%s261_s14 + $0x28] sm:$0xff]  ;;  %v5875_v55 = vsub.s32 %v743_v50, %v745_v51 }
  0x14   : > { %5572 = vmatmul.mubr.msk.f32.vlgmr.msra.gmra.mrb[0].mxu0 %vm281_vm0, %v273_v7  ;;  %5586 = vmatmul.mubr.msk.f32.vlgmr.msra.gmra.mrb[0].mxu1 %vm281_vm0, %v273_v7  ;;  %v278_v13 = vld [vmem:[%s261_s14 + $0x30] sm:$0xff]  ;;  %v279_v14 = vld [vmem:[%s261_s14 + $0x38] sm:$0xff]  ;;  %v3384_v15 = vld [vmem:[%s5803_s18] sm:$0xff]  ;;  %v5882_v59 = vsub.s32 %v3238_v54, %v745_v51 }
  0x15   : > { %5598 = vmatpush3.msra.mxu0 %v5442_v2  ;;  %5612 = vmatpush3.msra.mxu1 %v5451_v3  ;;  %v3400_v16 = vld [vmem:[%s5803_s18 + $0x80] sm:$0xff]  ;;  %v3385_v17 = vld [vmem:[%s5803_s18 + $0x8] sm:$0xff]  ;;  %v3386_v19 = vld [vmem:[%s5803_s18 + $0x10] sm:$0xff]  ;;  %v5886_v2 = vsub.s32 0, %v745_v51 }
  0x16   : > { %5574 = vmatprep.mubr.msk.f32.mxu0 %vm281_vm0, %v274_v8  ;;  %5588 = vmatprep.mubr.msk.f32.mxu1 %vm281_vm0, %v274_v8  ;;  %v3401_v18 = vld [vmem:[%s5803_s18 + $0x88] sm:$0xff]  ;;  %v3402_v20 = vld [vmem:[%s5803_s18 + $0x90] sm:$0xff]  ;;  %v3387_v21 = vld [vmem:[%s5803_s18 + $0x18] sm:$0xff] }
  0x17   : > { %5678 = vmatprep.subr.bf16.mxu0 %v5677_v9  ;;  %5681 = vmatprep.subr.bf16.mxu1 %v5677_v9  ;;  %v3403_v22 = vld [vmem:[%s5803_s18 + $0x98] sm:$0xff]  ;;  %v3388_v23 = vld [vmem:[%s5803_s18 + $0x20] sm:$0xff]  ;;  %v3389_v25 = vld [vmem:[%s5803_s18 + $0x28] sm:$0xff] }
  0x18   : > { %5575 = vmatmul.mubr.msk.f32.gmra.mrb[2].mxu0 %vm281_vm0, %v275_v10  ;;  %5589 = vmatmul.mubr.msk.f32.gmra.mrb[2].mxu1 %vm281_vm0, %v275_v10  ;;  %v3404_v24 = vld [vmem:[%s5803_s18 + $0xa0] sm:$0xff]  ;;  %v3405_v26 = vld [vmem:[%s5803_s18 + $0xa8] sm:$0xff]  ;;  %v3390_v27 = vld [vmem:[%s5803_s18 + $0x30] sm:$0xff] }
  0x19   : > { %5577 = vmatprep.mubr.msk.f32.mxu0 %vm281_vm0, %v276_v11  ;;  %5591 = vmatprep.mubr.msk.f32.mxu1 %vm281_vm0, %v276_v11  ;;  %v3406_v28 = vld [vmem:[%s5803_s18 + $0xb0] sm:$0xff]  ;;  %v3391_v29 = vld [vmem:[%s5803_s18 + $0x38] sm:$0xff]  ;;  %v3392_v31 = vld [vmem:[%s5803_s18 + $0x40] sm:$0xff] }
  0x1a   : > { %v3407_v30 = vld [vmem:[%s5803_s18 + $0xb8] sm:$0xff]  ;;  %v3408_v32 = vld [vmem:[%s5803_s18 + $0xc0] sm:$0xff]  ;;  %v3393_v33 = vld [vmem:[%s5803_s18 + $0x48] sm:$0xff] }
  0x1b   : > { %v3409_v34 = vld [vmem:[%s5803_s18 + $0xc8] sm:$0xff]  ;;  %v3394_v35 = vld [vmem:[%s5803_s18 + $0x50] sm:$0xff]  ;;  %v3395_v37 = vld [vmem:[%s5803_s18 + $0x58] sm:$0xff] }
  0x1c   : > { %5578 = vmatmul.mubr.msk.f32.gmra.mrb[4].mxu0 %vm281_vm0, %v277_v12  ;;  %5592 = vmatmul.mubr.msk.f32.gmra.mrb[4].mxu1 %vm281_vm0, %v277_v12  ;;  %v3410_v36 = vld [vmem:[%s5803_s18 + $0xd0] sm:$0xff]  ;;  %v3411_v38 = vld [vmem:[%s5803_s18 + $0xd8] sm:$0xff]  ;;  %v3396_v39 = vld [vmem:[%s5803_s18 + $0x60] sm:$0xff] }
  0x1d   : > { %5580 = vmatprep.mubr.msk.f32.mxu0 %vm281_vm0, %v278_v13  ;;  %5594 = vmatprep.mubr.msk.f32.mxu1 %vm281_vm0, %v278_v13  ;;  %v3412_v40 = vld [vmem:[%s5803_s18 + $0xe0] sm:$0xff]  ;;  %v3397_v41 = vld [vmem:[%s5803_s18 + $0x68] sm:$0xff]  ;;  %v3398_v43 = vld [vmem:[%s5803_s18 + $0x70] sm:$0xff] }
  0x1e   : > { %v3413_v42 = vld [vmem:[%s5803_s18 + $0xe8] sm:$0xff]  ;;  %v3414_v44 = vld [vmem:[%s5803_s18 + $0xf0] sm:$0xff]  ;;  %v3399_v45 = vld [vmem:[%s5803_s18 + $0x78] sm:$0xff] }
  0x1f   : > { %v3415_v46 = vld [vmem:[%s5803_s18 + $0xf8] sm:$0xff] }
  0x20   : > { %5581 = vmatmul.mubr.msk.f32.gmra.mrb[6].mxu0 %vm281_vm0, %v279_v14  ;;  %5595 = vmatmul.mubr.msk.f32.gmra.mrb[6].mxu1 %vm281_vm0, %v279_v14 }
  0x21   : > { %5599 = vmatprep.mubr.msk.f32.mxu0 %vm281_vm0, %v272_v6  ;;  %5613 = vmatprep.mubr.msk.f32.mxu1 %vm281_vm0, %v272_v6 }
  0x24   : > { %5600 = vmatmul.mubr.msk.f32.vlgmr.msra.gmra.mrb[8].mxu0 %vm281_vm0, %v273_v7  ;;  %5614 = vmatmul.mubr.msk.f32.vlgmr.msra.gmra.mrb[8].mxu1 %vm281_vm0, %v273_v7 }
  0x25   : > { %5680 = vmatpush3.bf16.msra.mxu0 %v5677_v9  ;;  %5682 = vmatpush3.bf16.msra.mxu1 %v5677_v9 }
  0x26   : > { %5602 = vmatprep.mubr.msk.f32.mxu0 %vm281_vm0, %v274_v8  ;;  %5616 = vmatprep.mubr.msk.f32.mxu1 %vm281_vm0, %v274_v8 }
  0x28   : > { %5603 = vmatmul.mubr.msk.f32.gmra.mrb[10].mxu0 %vm281_vm0, %v275_v10  ;;  %5617 = vmatmul.mubr.msk.f32.gmra.mrb[10].mxu1 %vm281_vm0, %v275_v10 }
  0x29   : > { %5605 = vmatprep.mubr.msk.f32.mxu0 %vm281_vm0, %v276_v11  ;;  %5619 = vmatprep.mubr.msk.f32.mxu1 %vm281_vm0, %v276_v11 }
  0x2c   : > { %5606 = vmatmul.mubr.msk.f32.gmra.mrb[12].mxu0 %vm281_vm0, %v277_v12  ;;  %5620 = vmatmul.mubr.msk.f32.gmra.mrb[12].mxu1 %vm281_vm0, %v277_v12 }
  0x2d   : > { %5608 = vmatprep.mubr.msk.f32.mxu0 %vm281_vm0, %v278_v13  ;;  %5622 = vmatprep.mubr.msk.f32.mxu1 %vm281_vm0, %v278_v13 }
  0x30   : > { %5609 = vmatmul.mubr.msk.f32.gmra.mrb[14].mxu0 %vm281_vm0, %v279_v14  ;;  %5623 = vmatmul.mubr.msk.f32.gmra.mrb[14].mxu1 %vm281_vm0, %v279_v14  ;;  %v5905_v14 = vrot.slane %v5880_v56, %v5882_v59 }
  0x31   : > { %5629 = vmatprep.mubr.msk.f32.mxu0 %vm3425_vm1, %v3384_v15  ;;  %5653 = vmatprep.mubr.msk.f32.mxu1 %vm3425_vm1, %v3400_v16 }
  0x34   : > { %5630 = vmatmul.mubr.msk.f32.vlgmr.msra.gmra.mrb[16].mxu0 %vm3425_vm1, %v3385_v17  ;;  %5654 = vmatmul.mubr.msk.f32.vlgmr.msra.gmra.mrb[16].mxu1 %vm3425_vm1, %v3401_v18 }
  0x35   : > { %5632 = vmatprep.mubr.msk.f32.mxu0 %vm3425_vm1, %v3386_v19  ;;  %5656 = vmatprep.mubr.msk.f32.mxu1 %vm3425_vm1, %v3402_v20 }
  0x38   : > { %5633 = vmatmul.mubr.msk.f32.gmra.mrb[18].mxu0 %vm3425_vm1, %v3387_v21  ;;  %5657 = vmatmul.mubr.msk.f32.gmra.mrb[18].mxu1 %vm3425_vm1, %v3403_v22 }
  0x39   : > { %5635 = vmatprep.mubr.msk.f32.mxu0 %vm3425_vm1, %v3388_v23  ;;  %5659 = vmatprep.mubr.msk.f32.mxu1 %vm3425_vm1, %v3404_v24 }
  0x3c   : > { %5636 = vmatmul.mubr.msk.f32.gmra.mrb[20].mxu0 %vm3425_vm1, %v3389_v25  ;;  %5660 = vmatmul.mubr.msk.f32.gmra.mrb[20].mxu1 %vm3425_vm1, %v3405_v26 }
  0x3d   : > { %5638 = vmatprep.mubr.msk.f32.mxu0 %vm3425_vm1, %v3390_v27  ;;  %5662 = vmatprep.mubr.msk.f32.mxu1 %vm3425_vm1, %v3406_v28 }
  0x40   : > { %5639 = vmatmul.mubr.msk.f32.gmra.mrb[22].mxu0 %vm3425_vm1, %v3391_v29  ;;  %5663 = vmatmul.mubr.msk.f32.gmra.mrb[22].mxu1 %vm3425_vm1, %v3407_v30 }
  0x41   : > { %5641 = vmatprep.mubr.msk.f32.mxu0 %vm3425_vm1, %v3392_v31  ;;  %5665 = vmatprep.mubr.msk.f32.mxu1 %vm3425_vm1, %v3408_v32 }
  0x44   : > { %5642 = vmatmul.mubr.msk.f32.gmra.mrb[24].mxu0 %vm3425_vm1, %v3393_v33  ;;  %5666 = vmatmul.mubr.msk.f32.gmra.mrb[24].mxu1 %vm3425_vm1, %v3409_v34 }
  0x45   : > { %5644 = vmatprep.mubr.msk.f32.mxu0 %vm3425_vm1, %v3394_v35  ;;  %5668 = vmatprep.mubr.msk.f32.mxu1 %vm3425_vm1, %v3410_v36 }
  0x48   : > { %5645 = vmatmul.mubr.msk.f32.gmra.mrb[26].mxu0 %vm3425_vm1, %v3395_v37  ;;  %5669 = vmatmul.mubr.msk.f32.gmra.mrb[26].mxu1 %vm3425_vm1, %v3411_v38 }
  0x49   : > { %5647 = vmatprep.mubr.msk.f32.mxu0 %vm3425_vm1, %v3396_v39  ;;  %5671 = vmatprep.mubr.msk.f32.mxu1 %vm3425_vm1, %v3412_v40 }
  0x4c   : > { %5648 = vmatmul.mubr.msk.f32.gmra.mrb[28].mxu0 %vm3425_vm1, %v3397_v41  ;;  %5672 = vmatmul.mubr.msk.f32.gmra.mrb[28].mxu1 %vm3425_vm1, %v3413_v42 }
  0x4d   : > { %5650 = vmatprep.mubr.msk.f32.mxu0 %vm3425_vm1, %v3398_v43  ;;  %5674 = vmatprep.mubr.msk.f32.mxu1 %vm3425_vm1, %v3414_v44 }
  0x50   : > { %5651 = vmatmul.mubr.msk.f32.gmra.mrb[30].mxu0 %vm3425_vm1, %v3399_v45  ;;  %5675 = vmatmul.mubr.msk.f32.gmra.mrb[30].mxu1 %vm3425_vm1, %v3415_v46 }
  0xe7   : > { %v5573_v57 = vpop.f32.mrb[0].mxu0  ;;  %v5587_v58 = vpop.f32.mrb[0].mxu1 }
  0xe8   : > { %v789_v60 = vcombine.high %v5573_v57, %v5573_v57  ;;  %v796_v61 = vrot.slane %v5573_v57, %v5875_v55  ;;  %v1253_v62 = vcombine.high %v5587_v58, %v5587_v58  ;;  %v1260_v63 = vrot.slane %v5587_v58, %v5875_v55  ;;  %v372_v0 = vpop.f32.mrb[1].mxu0  ;;  %v479_v1 = vpop.f32.mrb[1].mxu1 }
  0xe9   : > { %v740_v3 = vcombine.high %v372_v0, %v372_v0  ;;  %v747_v8 = vrot.slane %v372_v0, %v5875_v55  ;;  %v1204_v27 = vcombine.high %v479_v1, %v479_v1  ;;  %v1211_v28 = vrot.slane %v479_v1, %v5875_v55 }
  0xea   : > { %v803_v5 = vrot.slane %v789_v60, %v5875_v55  ;;  %v804_v6 = vcombine.high %v796_v61, %v796_v61  ;;  %v1267_v7 = vrot.slane %v1253_v62, %v5875_v55  ;;  %v5894_v9 = vrot.slane %v796_v61, %v5875_v55 }
  0xeb   : > { %v1268_v10 = vcombine.high %v1260_v63, %v1260_v63  ;;  %v5897_v11 = vrot.slane %v1260_v63, %v5875_v55  ;;  %v5899_v12 = vpop.f32.mrb[2].mxu0  ;;  %v5901_v13 = vpop.f32.mrb[2].mxu1  ;;  %v754_v18 = vrot.slane %v740_v3, %v5875_v55  ;;  %v755_v26 = vcombine.high %v747_v8, %v747_v8 }
  0xec   : > { %8330 = vst [vmem:[#allocation2_spill] sm:$0xff] %v5894_v9  ;;  %v805_v15 = vcombine.high %v803_v5, %v803_v5  ;;  %v5908_v16 = vrot.slane %v803_v5, %v5875_v55  ;;  %v5911_v17 = vrot.slane %v804_v6, %v5875_v55  ;;  %v5914_v19 = vpop.f32.mrb[3].mxu0  ;;  %v5916_v20 = vpop.f32.mrb[3].mxu1  ;;  %v1269_v21 = vcombine.high %v1267_v7, %v1267_v7 }
  0xed   : > { %8331 = vst [vmem:[#allocation3_spill] sm:$0xff] %v5897_v11  ;;  %v5919_v22 = vrot.slane %v1267_v7, %v5875_v55  ;;  %v5922_v23 = vrot.slane %v1268_v10, %v5875_v55  ;;  %v1298_v24 = vcombine.high %v5897_v11, %v5897_v11  ;;  %v756_v38 = vcombine.high %v754_v18, %v754_v18 }
  0xee   : > { %8332 = vst [vmem:[#allocation4_spill] sm:$0xff] %v5908_v16  ;;  %8333 = vst [vmem:[#allocation5_spill] sm:$0xff] %v5911_v17  ;;  %v5927_v25 = vrot.slane %v805_v15, %v5875_v55  ;;  %v5935_v31 = vrot.slane %v1269_v21, %v5875_v55  ;;  %v5968_v47 = vrot.slane %v747_v8, %v5875_v55 }
  0xef   : > { %8334 = vst [vmem:[#allocation6_spill] sm:$0xff] %v5919_v22  ;;  %8335 = vst [vmem:[#allocation7_spill] sm:$0xff] %v5922_v23  ;;  %v1300_v32 = vcombine.high %v5922_v23, %v5922_v23  ;;  %v5939_v33 = vpop.f32.mrb[4].mxu0  ;;  %v5941_v34 = vpop.f32.mrb[4].mxu1  ;;  %v1299_v36 = vcombine.high %v5919_v22, %v5919_v22  ;;  %v5960_v44 = vrot.slane %v1298_v24, %v5886_v2 }
  0xf0   : > { %8336 = vst [vmem:[#allocation8_spill] sm:$0xff] %v5927_v25  ;;  %8337 = vst [vmem:[#allocation9_spill] sm:$0xff] %v5935_v31  ;;  %v5949_v39 = vpop.f32.mrb[5].mxu0  ;;  %v5951_v40 = vpop.f32.mrb[5].mxu1  ;;  %v1301_v42 = vcombine.high %v5935_v31, %v5935_v31  ;;  %v5971_v48 = vrot.slane %v754_v18, %v5875_v55  ;;  %v5974_v49 = vrot.slane %v755_v26, %v5875_v55 }
  0xf1   : > { %8338 = vst [vmem:[#allocation10_spill] sm:$0xff] %v5960_v44  ;;  %v5963_v45 = vrot.slane %v1300_v32, %v5886_v2  ;;  %v1218_v50 = vrot.slane %v1204_v27, %v5875_v55  ;;  %v1219_v51 = vcombine.high %v1211_v28, %v1211_v28  ;;  %v5978_v52 = vrot.slane %v1211_v28, %v5875_v55 }
  0xf2   : > { %v5987_v58 = vrot.slane %v1299_v36, %v5886_v2  ;;  %v5990_v60 = vrot.slane %v1301_v42, %v5886_v2  ;;  %v5993_v61 = vrot.slane %v756_v38, %v5875_v55  ;;  %v887_v8 = vcombine.high %v5899_v12, %v5899_v12 }
  0xf3   : > { %8339 = vst [vmem:[#allocation11_spill] sm:$0xff] %v5963_v45  ;;  %v5980_v53 = vpop.f32.mrb[6].mxu0  ;;  %v5982_v54 = vpop.f32.mrb[6].mxu1  ;;  %v1220_v0 = vcombine.high %v1218_v50, %v1218_v50  ;;  %v6000_v1 = vrot.slane %v1218_v50, %v5875_v55  ;;  %v6003_v3 = vrot.slane %v1219_v51, %v5875_v55  ;;  %v1249_v5 = vcombine.high %v5978_v52, %v5978_v52 }
  0xf4   : > { %8340 = vst [vmem:[#allocation12_spill] sm:$0xff] %v5987_v58  ;;  %8341 = vst [vmem:[#allocation13_spill] sm:$0xff] %v5990_v60  ;;  %v5995_v62 = vpop.f32.mrb[7].mxu0  ;;  %v5997_v63 = vpop.f32.mrb[7].mxu1  ;;  %v894_v10 = vrot.slane %v5899_v12, %v5875_v55  ;;  %v1351_v24 = vcombine.high %v5901_v13, %v5901_v13  ;;  %v901_v32 = vrot.slane %v887_v8, %v5875_v55 }
  0xf5   : > { %v6018_v18 = vrot.slane %v1220_v0, %v5875_v55  ;;  %v1251_v21 = vcombine.high %v6003_v3, %v6003_v3  ;;  %v1250_v12 = vcombine.high %v6000_v1, %v6000_v1  ;;  %v6042_v0 = vrot.slane %v1249_v5, %v5886_v2 }
  0xf6   : > { %v902_v36 = vcombine.high %v894_v10, %v894_v10  ;;  %v903_v43 = vcombine.high %v901_v32, %v901_v32  ;;  %v6052_v37 = vrot.slane %v894_v10, %v5875_v55  ;;  %v1358_v5 = vrot.slane %v5901_v13, %v5875_v55 }
  0xf7   : > { %v6024_v26 = vpop.f32.mrb[8].mxu0  ;;  %v6026_v27 = vpop.f32.mrb[8].mxu1  ;;  %v1252_v8 = vcombine.high %v6018_v18, %v6018_v18  ;;  %v6049_v29 = vrot.slane %v1251_v21, %v5886_v2  ;;  %v1365_v30 = vrot.slane %v1351_v24, %v5875_v55  ;;  %v838_v57 = vcombine.high %v5914_v19, %v5914_v19 }
  0xf8   : > { %v6033_v38 = vpop.f32.mrb[9].mxu0  ;;  %v6035_v42 = vpop.f32.mrb[9].mxu1  ;;  %8342 = vst [vmem:[#allocation14_spill] sm:$0xff] %v6052_v37  ;;  %v6066_v21 = vrot.slane %v1250_v12, %v5886_v2  ;;  %v6069_v10 = vrot.slane %v901_v32, %v5875_v55  ;;  %v6072_v6 = vrot.slane %v902_v36, %v5875_v55  ;;  %v6075_v13 = vrot.slane %v903_v43, %v5875_v55 }
  0xf9   : > { %v1366_v50 = vcombine.high %v1358_v5, %v1358_v5  ;;  %v1367_v4 = vcombine.high %v1365_v30, %v1365_v30  ;;  %v6082_v28 = vrot.slane %v1358_v5, %v5875_v55  ;;  %v6085_v12 = vrot.slane %v1365_v30, %v5875_v55 }
  0xfa   : > { %8343 = vst [vmem:[#allocation15_spill] sm:$0xff] %v6069_v10  ;;  %8344 = vst [vmem:[#allocation16_spill] sm:$0xff] %v6072_v6  ;;  %v6088_v32 = vrot.slane %v1252_v8, %v5886_v2  ;;  %v845_v43 = vrot.slane %v5914_v19, %v5875_v55  ;;  %v852_v7 = vrot.slane %v838_v57, %v5875_v55 }
  0xfb   : > { %v6061_v46 = vpop.f32.mrb[10].mxu0  ;;  %v6063_v15 = vpop.f32.mrb[10].mxu1  ;;  %8345 = vst [vmem:[#allocation17_spill] sm:$0xff] %v6075_v13  ;;  %8346 = vst [vmem:[#allocation18_spill] sm:$0xff] %v6082_v28  ;;  %v6096_v41 = vrot.slane %v1366_v50, %v5875_v55  ;;  %v6099_v5 = vrot.slane %v1367_v4, %v5875_v55  ;;  %v1396_v30 = vcombine.high %v6082_v28, %v6082_v28 }
  0xfc   : > { %v6077_v24 = vpop.f32.mrb[11].mxu0  ;;  %v6079_v51 = vpop.f32.mrb[11].mxu1  ;;  %8347 = vst [vmem:[#allocation19_spill] sm:$0xff] %v6085_v12  ;;  %v1397_v8 = vcombine.high %v6085_v12, %v6085_v12  ;;  %v1302_v50 = vcombine.high %v5916_v20, %v5916_v20  ;;  %v853_v19 = vcombine.high %v845_v43, %v845_v43  ;;  %v854_v10 = vcombine.high %v852_v7, %v852_v7 }
  0xfd   : > { %8348 = vst [vmem:[#allocation20_spill] sm:$0xff] %v6096_v41  ;;  %8349 = vst [vmem:[#allocation21_spill] sm:$0xff] %v6099_v5  ;;  %v1398_v44 = vcombine.high %v6096_v41, %v6096_v41  ;;  %v1399_v17 = vcombine.high %v6099_v5, %v6099_v5  ;;  %v6130_v6 = vrot.slane %v1396_v30, %v5886_v2 }
  0xfe   : > { %v6137_v9 = vrot.slane %v1397_v8, %v5886_v2  ;;  %v6140_v11 = vrot.slane %v845_v43, %v5875_v55  ;;  %v6143_v57 = vrot.slane %v852_v7, %v5875_v55  ;;  %v1309_v8 = vrot.slane %v5916_v20, %v5875_v55 }
  0xff   : > { %v6105_v35 = vpop.f32.mrb[12].mxu0  ;;  %v6107_v36 = vpop.f32.mrb[12].mxu1  ;;  %8350 = vst [vmem:[#allocation22_spill] sm:$0xff] %v6130_v6  ;;  %v6150_v30 = vrot.slane %v1398_v44, %v5886_v2  ;;  %v6153_v13 = vrot.slane %v1399_v17, %v5886_v2  ;;  %v1316_v23 = vrot.slane %v1302_v50, %v5875_v55  ;;  %v6163_v7 = vrot.slane %v853_v19, %v5875_v55 }
 0x100   : > { %v6117_v37 = vpop.f32.mrb[13].mxu0  ;;  %v6119_v45 = vpop.f32.mrb[13].mxu1  ;;  %8351 = vst [vmem:[#allocation23_spill] sm:$0xff] %v6137_v9  ;;  %8352 = vst [vmem:[#allocation24_spill] sm:$0xff] %v6140_v11  ;;  %v6166_v41 = vrot.slane %v854_v10, %v5875_v55  ;;  %v985_v44 = vcombine.high %v5939_v33, %v5939_v33  ;;  %v992_v17 = vrot.slane %v5939_v33, %v5875_v55 }
 0x101   : > { %8353 = vst [vmem:[#allocation25_spill] sm:$0xff] %v6143_v57  ;;  %8354 = vst [vmem:[#allocation26_spill] sm:$0xff] %v6150_v30  ;;  %v1317_v30 = vcombine.high %v1309_v8, %v1309_v8  ;;  %v1318_v20 = vcombine.high %v1316_v23, %v1316_v23  ;;  %v6173_v50 = vrot.slane %v1309_v8, %v5875_v55 }
 0x102   : > { %8355 = vst [vmem:[#allocation27_spill] sm:$0xff] %v6153_v13  ;;  %8356 = vst [vmem:[#allocation28_spill] sm:$0xff] %v6163_v7  ;;  %v6176_v13 = vrot.slane %v1316_v23, %v5875_v55  ;;  %v999_v9 = vrot.slane %v985_v44, %v5875_v55  ;;  %v1000_v5 = vcombine.high %v992_v17, %v992_v17 }
 0x103   : > { %v6145_v28 = vpop.f32.mrb[14].mxu0  ;;  %v6147_v4 = vpop.f32.mrb[14].mxu1  ;;  %8357 = vst [vmem:[#allocation29_spill] sm:$0xff] %v6166_v41  ;;  %8358 = vst [vmem:[#allocation30_spill] sm:$0xff] %v6173_v50  ;;  %v6188_v60 = vrot.slane %v1317_v30, %v5875_v55  ;;  %v6191_v8 = vrot.slane %v1318_v20, %v5875_v55  ;;  %v1347_v23 = vcombine.high %v6173_v50, %v6173_v50 }
 0x104   : > { %v6158_v43 = vpop.f32.mrb[15].mxu0  ;;  %v6160_v6 = vpop.f32.mrb[15].mxu1  ;;  %8359 = vst [vmem:[#allocation31_spill] sm:$0xff] %v6176_v13  ;;  %v1348_v19 = vcombine.high %v6176_v13, %v6176_v13  ;;  %v1001_v57 = vcombine.high %v999_v9, %v999_v9  ;;  %v1449_v30 = vcombine.high %v5941_v34, %v5941_v34  ;;  %v6212_v31 = vrot.slane %v992_v17, %v5875_v55 }
 0x105   : > { %8360 = vst [vmem:[#allocation32_spill] sm:$0xff] %v6188_v60  ;;  %8361 = vst [vmem:[#allocation33_spill] sm:$0xff] %v6191_v8  ;;  %v1349_v20 = vcombine.high %v6188_v60, %v6188_v60  ;;  %v1350_v58 = vcombine.high %v6191_v8, %v6191_v8  ;;  %v6217_v11 = vrot.slane %v1347_v23, %v5886_v2 }
 0x106   : > { %8362 = vst [vmem:[#allocation34_spill] sm:$0xff] %v6212_v31  ;;  %v6222_v41 = vrot.slane %v999_v9, %v5875_v55  ;;  %v6229_v17 = vrot.slane %v1348_v19, %v5886_v2  ;;  %v6232_v50 = vrot.slane %v1000_v5, %v5875_v55  ;;  %v6235_v23 = vrot.slane %v1001_v57, %v5875_v55 }
 0x107   : > { %v6183_v12 = vpop.f32.mrb[16].mxu0  ;;  %v6185_v33 = vpop.f32.mrb[16].mxu1  ;;  %8363 = vst [vmem:[#allocation35_spill] sm:$0xff] %v6217_v11  ;;  %v6238_v44 = vrot.slane %v1349_v20, %v5886_v2  ;;  %v6241_v9 = vrot.slane %v1350_v58, %v5886_v2  ;;  %v1456_v7 = vrot.slane %v5941_v34, %v5875_v55  ;;  %v1463_v25 = vrot.slane %v1449_v30, %v5875_v55 }
 0x108   : > { %v6197_v10 = vpop.f32.mrb[17].mxu0  ;;  %8364 = vst [vmem:[#allocation36_spill] sm:$0xff] %v6222_v41  ;;  %v6224_v16 = vpop.f32.mrb[17].mxu1  ;;  %8366 = vst [vmem:[#allocation38_spill] sm:$0xff] %v6229_v17  ;;  %v936_v5 = vcombine.high %v5949_v39, %v5949_v39  ;;  %v943_v57 = vrot.slane %v5949_v39, %v5875_v55  ;;  %v1400_v20 = vcombine.high %v5951_v40, %v5951_v40 }
 0x109   : > { %8365 = vst [vmem:[#allocation37_spill] sm:$0xff] %v6224_v16  ;;  %8367 = vst [vmem:[#allocation39_spill] sm:$0xff] %v6232_v50  ;;  %v1465_v58 = vcombine.high %v1463_v25, %v1463_v25  ;;  %v6255_v11 = vrot.slane %v1456_v7, %v5875_v55  ;;  %v6258_v34 = vrot.slane %v1463_v25, %v5875_v55 }
 0x10a   : > { %8368 = vst [vmem:[#allocation40_spill] sm:$0xff] %v6235_v23  ;;  %8369 = vst [vmem:[#allocation41_spill] sm:$0xff] %v6238_v44  ;;  %v1464_v44 = vcombine.high %v1456_v7, %v1456_v7  ;;  %v950_v60 = vrot.slane %v936_v5, %v5875_v55  ;;  %v951_v39 = vcombine.high %v943_v57, %v943_v57 }
 0x10b   : > { %8370 = vst [vmem:[#allocation42_spill] sm:$0xff] %v6241_v9  ;;  %8371 = vst [vmem:[#allocation43_spill] sm:$0xff] %v6255_v11  ;;  %v6269_v17 = vrot.slane %v1465_v58, %v5875_v55  ;;  %v1494_v7 = vcombine.high %v6255_v11, %v6255_v11  ;;  %v1495_v25 = vcombine.high %v6258_v34, %v6258_v34  ;;  %v6282_v13 = vpop.f32.mrb[18].mxu1 }
 0x10c   : > { %8372 = vst [vmem:[#allocation44_spill] sm:$0xff] %v6258_v34  ;;  %v6266_v9 = vrot.slane %v1464_v44, %v5875_v55  ;;  %v952_v8 = vcombine.high %v950_v60, %v950_v60  ;;  %v1407_v5 = vrot.slane %v5951_v40, %v5875_v55  ;;  %v1414_v19 = vrot.slane %v1400_v20, %v5875_v55  ;;  %v6280_v44 = vpop.f32.mrb[18].mxu0 }
 0x10d   : > { %8374 = vst [vmem:[#allocation46_spill] sm:$0xff] %v6269_v17  ;;  %8375 = vst [vmem:[#allocation47_spill] sm:$0xff] %v6280_v44  ;;  %v1497_v50 = vcombine.high %v6269_v17, %v6269_v17  ;;  %v6291_v30 = vrot.slane %v943_v57, %v5875_v55  ;;  %v6296_v20 = vrot.slane %v1494_v7, %v5886_v2  ;;  %v6375_v16 = vpop.f32.mrb[19].mxu0 }
 0x10e   : > { %8373 = vst [vmem:[#allocation45_spill] sm:$0xff] %v6266_v9  ;;  %8376 = vst [vmem:[#allocation48_spill] sm:$0xff] %v6282_v13  ;;  %v1496_v58 = vcombine.high %v6266_v9, %v6266_v9  ;;  %v6301_v41 = vrot.slane %v950_v60, %v5875_v55  ;;  %v6306_v31 = vrot.slane %v1495_v25, %v5886_v2 }
 0x10f   : > { %8377 = vst [vmem:[#allocation49_spill] sm:$0xff] %v6296_v20  ;;  %v6309_v57 = vrot.slane %v951_v39, %v5875_v55  ;;  %v6312_v40 = vrot.slane %v952_v8, %v5875_v55  ;;  %v6318_v23 = vrot.slane %v1497_v50, %v5886_v2  ;;  %v1415_v60 = vcombine.high %v1407_v5, %v1407_v5 }
 0x110   : > { %8378 = vst [vmem:[#allocation50_spill] sm:$0xff] %v6306_v31  ;;  %v6315_v7 = vrot.slane %v1496_v58, %v5886_v2  ;;  %v1416_v20 = vcombine.high %v1414_v19, %v1414_v19  ;;  %v6321_v9 = vrot.slane %v1407_v5, %v5875_v55  ;;  %v6324_v25 = vrot.slane %v1414_v19, %v5875_v55 }
 0x111   : > { %8379 = vst [vmem:[#allocation51_spill] sm:$0xff] %v6309_v57  ;;  %8381 = vst [vmem:[#allocation53_spill] sm:$0xff] %v6318_v23  ;;  %v1083_v39 = vcombine.high %v5980_v53, %v5980_v53  ;;  %v1090_v8 = vrot.slane %v5980_v53, %v5875_v55  ;;  %v6333_v50 = vrot.slane %v1415_v60, %v5875_v55  ;;  %v6377_v57 = vpop.f32.mrb[19].mxu1 }
 0x112   : > { %8380 = vst [vmem:[#allocation52_spill] sm:$0xff] %v6315_v7  ;;  %v6336_v22 = vrot.slane %v1416_v20, %v5875_v55  ;;  %v1547_v5 = vcombine.high %v5982_v54, %v5982_v54  ;;  %v1554_v58 = vrot.slane %v5982_v54, %v5875_v55  ;;  %v1445_v60 = vcombine.high %v6321_v9, %v6321_v9 }
 0x113   : > { %v1446_v20 = vcombine.high %v6324_v25, %v6324_v25  ;;  %v1447_v7 = vcombine.high %v6333_v50, %v6333_v50  ;;  %v1097_v54 = vrot.slane %v1083_v39, %v5875_v55  ;;  %v1098_v23 = vcombine.high %v1090_v8, %v1090_v8  ;;  %8385 = vst [vmem:[#allocation57_spill] sm:$0xff] %v6375_v16 }
 0x114   : > { %v1448_v53 = vcombine.high %v6336_v22, %v6336_v22  ;;  %v6366_v11 = vrot.slane %v1090_v8, %v5875_v55  ;;  %v1561_v19 = vrot.slane %v1547_v5, %v5875_v55  ;;  %v1562_v39 = vcombine.high %v1554_v58, %v1554_v58  ;;  %8386 = vst [vmem:[#allocation58_spill] sm:$0xff] %v6377_v57 }
 0x115   : > { %v1099_v34 = vcombine.high %v1097_v54, %v1097_v54  ;;  %v6370_v13 = vrot.slane %v1097_v54, %v5875_v55  ;;  %v6373_v44 = vrot.slane %v1098_v23, %v5875_v55  ;;  %v6380_v31 = vrot.slane %v1445_v60, %v5886_v2 }
 0x116   : > { %8382 = vst [vmem:[#allocation54_spill] sm:$0xff] %v6366_v11  ;;  %v1563_v17 = vcombine.high %v1561_v19, %v1561_v19  ;;  %v6383_v8 = vrot.slane %v1554_v58, %v5875_v55  ;;  %v6386_v5 = vrot.slane %v1561_v19, %v5875_v55  ;;  %v6389_v54 = vrot.slane %v1447_v7, %v5886_v2 }
 0x117   : > { %8383 = vst [vmem:[#allocation55_spill] sm:$0xff] %v6370_v13  ;;  %8384 = vst [vmem:[#allocation56_spill] sm:$0xff] %v6373_v44  ;;  %v6392_v23 = vrot.slane %v1446_v20, %v5886_v2  ;;  %v6395_v16 = vrot.slane %v1099_v34, %v5875_v55  ;;  %v6398_v57 = vrot.slane %v1562_v39, %v5875_v55 }
 0x118   : > { %8387 = vst [vmem:[#allocation59_spill] sm:$0xff] %v6380_v31  ;;  %8388 = vst [vmem:[#allocation60_spill] sm:$0xff] %v6383_v8  ;;  %v6401_v60 = vrot.slane %v1448_v53, %v5886_v2  ;;  %v6406_v19 = vrot.slane %v1563_v17, %v5875_v55  ;;  %v1592_v7 = vcombine.high %v6383_v8, %v6383_v8 }
 0x119   : > { %8389 = vst [vmem:[#allocation61_spill] sm:$0xff] %v6386_v5  ;;  %8390 = vst [vmem:[#allocation62_spill] sm:$0xff] %v6389_v54  ;;  %v1593_v39 = vcombine.high %v6386_v5, %v6386_v5  ;;  %v1594_v17 = vcombine.high %v6398_v57, %v6398_v57  ;;  %v1034_v44 = vcombine.high %v5995_v62, %v5995_v62 }
 0x11a   : > { %8391 = vst [vmem:[#allocation63_spill] sm:$0xff] %v6395_v16  ;;  %8392 = vst [vmem:[#allocation64_spill] sm:$0xff] %v6398_v57  ;;  %v1595_v34 = vcombine.high %v6406_v19, %v6406_v19  ;;  %v1041_v53 = vrot.slane %v5995_v62, %v5875_v55  ;;  %v1498_v58 = vcombine.high %v5997_v63, %v5997_v63 }
 0x11b   : > { %8393 = vst [vmem:[#allocation65_spill] sm:$0xff] %v6406_v19  ;;  %v6435_v8 = vrot.slane %v1592_v7, %v5886_v2  ;;  %v1505_v20 = vrot.slane %v5997_v63, %v5875_v55  ;;  %v2038_v57 = vcombine.high %v6024_v26, %v6024_v26  ;;  %v1048_v16 = vrot.slane %v1034_v44, %v5875_v55 }
 0x11c   : > { %v1049_v13 = vcombine.high %v1041_v53, %v1041_v53  ;;  %v1512_v62 = vrot.slane %v1498_v58, %v5875_v55  ;;  %v2045_v5 = vrot.slane %v6024_v26, %v5875_v55  ;;  %v6448_v7 = vrot.slane %v1593_v39, %v5886_v2 }
 0x11d   : > { %8394 = vst [vmem:[#allocation66_spill] sm:$0xff] %v6435_v8  ;;  %v6451_v8 = vrot.slane %v1041_v53, %v5875_v55  ;;  %v1513_v11 = vcombine.high %v1505_v20, %v1505_v20  ;;  %v6454_v63 = vrot.slane %v1505_v20, %v5875_v55  ;;  %v1050_v19 = vcombine.high %v1048_v16, %v1048_v16 }
 0x11e   : > { %8395 = vst [vmem:[#allocation67_spill] sm:$0xff] %v6448_v7  ;;  %v6457_v54 = vrot.slane %v1048_v16, %v5875_v55  ;;  %v6460_v44 = vrot.slane %v1049_v13, %v5875_v55  ;;  %v2052_v58 = vrot.slane %v2038_v57, %v5875_v55  ;;  %v1514_v26 = vcombine.high %v1512_v62, %v1512_v62 }
 0x11f   : > { %8396 = vst [vmem:[#allocation68_spill] sm:$0xff] %v6451_v8  ;;  %8397 = vst [vmem:[#allocation69_spill] sm:$0xff] %v6454_v63  ;;  %v6464_v39 = vrot.slane %v1512_v62, %v5875_v55  ;;  %v6467_v53 = vrot.slane %v1513_v11, %v5875_v55  ;;  %v1543_v20 = vcombine.high %v6454_v63, %v6454_v63  ;;  %v6495_v62 = vpop.f32.mrb[20].mxu0 }
 0x120   : > { %8398 = vst [vmem:[#allocation70_spill] sm:$0xff] %v6457_v54  ;;  %8399 = vst [vmem:[#allocation71_spill] sm:$0xff] %v6460_v44  ;;  %v6472_v7 = vrot.slane %v1594_v17, %v5886_v2  ;;  %v6475_v16 = vrot.slane %v1595_v34, %v5886_v2  ;;  %v6478_v13 = vrot.slane %v1050_v19, %v5875_v55  ;;  %v6543_v54 = vpop.f32.mrb[20].mxu1 }
 0x121   : > { %8400 = vst [vmem:[#allocation72_spill] sm:$0xff] %v6464_v39  ;;  %8401 = vst [vmem:[#allocation73_spill] sm:$0xff] %v6467_v53  ;;  %v2053_v57 = vcombine.high %v2045_v5, %v2045_v5  ;;  %v6485_v31 = vrot.slane %v1514_v26, %v5875_v55  ;;  %v1545_v17 = vcombine.high %v6467_v53, %v6467_v53 }
 0x122   : > { %8402 = vst [vmem:[#allocation74_spill] sm:$0xff] %v6472_v7  ;;  %8403 = vst [vmem:[#allocation75_spill] sm:$0xff] %v6475_v16  ;;  %v1544_v19 = vcombine.high %v6464_v39, %v6464_v39  ;;  %v2054_v16 = vcombine.high %v2052_v58, %v2052_v58  ;;  %v6504_v34 = vrot.slane %v1543_v20, %v5886_v2 }
 0x123   : > { %8404 = vst [vmem:[#allocation76_spill] sm:$0xff] %v6478_v13  ;;  %8405 = vst [vmem:[#allocation77_spill] sm:$0xff] %v6485_v31  ;;  %v1546_v26 = vcombine.high %v6485_v31, %v6485_v31  ;;  %v6509_v7 = vrot.slane %v2045_v5, %v5875_v55  ;;  %v6512_v63 = vrot.slane %v2052_v58, %v5875_v55 }
 0x124   : > { %8406 = vst [vmem:[#allocation78_spill] sm:$0xff] %v6495_v62  ;;  %8407 = vst [vmem:[#allocation79_spill] sm:$0xff] %v6504_v34  ;;  %v6515_v11 = vrot.slane %v2053_v57, %v5875_v55  ;;  %v6518_v13 = vrot.slane %v1545_v17, %v5886_v2  ;;  %v2502_v8 = vcombine.high %v6026_v27, %v6026_v27 }
 0x125   : > { %8408 = vst [vmem:[#allocation80_spill] sm:$0xff] %v6509_v7  ;;  %8409 = vst [vmem:[#allocation81_spill] sm:$0xff] %v6512_v63  ;;  %v2509_v20 = vrot.slane %v6026_v27, %v5875_v55  ;;  %v1989_v44 = vcombine.high %v6033_v38, %v6033_v38  ;;  %v6529_v58 = vrot.slane %v1544_v19, %v5886_v2 }
 0x126   : > { %8410 = vst [vmem:[#allocation82_spill] sm:$0xff] %v6515_v11  ;;  %8411 = vst [vmem:[#allocation83_spill] sm:$0xff] %v6518_v13  ;;  %v6532_v57 = vrot.slane %v1546_v26, %v5886_v2  ;;  %v6535_v17 = vrot.slane %v2054_v16, %v5875_v55  ;;  %v2516_v13 = vrot.slane %v2502_v8, %v5875_v55 }
 0x127   : > { %8412 = vst [vmem:[#allocation84_spill] sm:$0xff] %v6529_v58  ;;  %v2517_v34 = vcombine.high %v2509_v20, %v2509_v20  ;;  %v6539_v27 = vrot.slane %v2509_v20, %v5875_v55  ;;  %v1996_v53 = vrot.slane %v6033_v38, %v5875_v55  ;;  %8416 = vst [vmem:[#allocation88_spill] sm:$0xff] %v6543_v54 }
 0x128   : > { %8413 = vst [vmem:[#allocation85_spill] sm:$0xff] %v6532_v57  ;;  %8414 = vst [vmem:[#allocation86_spill] sm:$0xff] %v6535_v17  ;;  %v2003_v8 = vrot.slane %v1989_v44, %v5875_v55  ;;  %v2518_v5 = vcombine.high %v2516_v13, %v2516_v13  ;;  %v6553_v20 = vrot.slane %v2516_v13, %v5875_v55 }
 0x129   : > { %8415 = vst [vmem:[#allocation87_spill] sm:$0xff] %v6539_v27  ;;  %v6556_v57 = vrot.slane %v2517_v34, %v5875_v55  ;;  %v2547_v38 = vcombine.high %v6539_v27, %v6539_v27  ;;  %v2004_v58 = vcombine.high %v1996_v53, %v1996_v53  ;;  %v2453_v26 = vcombine.high %v6035_v42, %v6035_v42 }
 0x12a   : > { %8417 = vst [vmem:[#allocation89_spill] sm:$0xff] %v6553_v20  ;;  %v2460_v44 = vrot.slane %v6035_v42, %v5875_v55  ;;  %v6567_v16 = vrot.slane %v2518_v5, %v5875_v55  ;;  %v2548_v13 = vcombine.high %v6553_v20, %v6553_v20  ;;  %v2005_v31 = vcombine.high %v2003_v8, %v2003_v8 }
 0x12b   : > { %8418 = vst [vmem:[#allocation90_spill] sm:$0xff] %v6556_v57  ;;  %v2549_v34 = vcombine.high %v6556_v57, %v6556_v57  ;;  %v6576_v39 = vrot.slane %v1996_v53, %v5875_v55  ;;  %v6579_v11 = vrot.slane %v2003_v8, %v5875_v55  ;;  %v2136_v42 = vcombine.high %v6061_v46, %v6061_v46  ;;  %v6610_v57 = vpop.f32.mrb[21].mxu0 }
 0x12c   : > { %8419 = vst [vmem:[#allocation91_spill] sm:$0xff] %v6567_v16  ;;  %v6586_v7 = vrot.slane %v2547_v38, %v5886_v2  ;;  %v6591_v19 = vrot.slane %v2004_v58, %v5875_v55  ;;  %v2550_v53 = vcombine.high %v6567_v16, %v6567_v16  ;;  %v6601_v5 = vrot.slane %v2548_v13, %v5886_v2 }
 0x12d   : > { %8420 = vst [vmem:[#allocation92_spill] sm:$0xff] %v6576_v39  ;;  %v6596_v8 = vrot.slane %v2549_v34, %v5886_v2  ;;  %v6604_v38 = vrot.slane %v2005_v31, %v5875_v55  ;;  %v2467_v17 = vrot.slane %v2453_v26, %v5875_v55  ;;  %v6608_v58 = vrot.slane %v2460_v44, %v5875_v55 }
 0x12e   : > { %8421 = vst [vmem:[#allocation93_spill] sm:$0xff] %v6586_v7  ;;  %8422 = vst [vmem:[#allocation94_spill] sm:$0xff] %v6591_v19  ;;  %v2468_v7 = vcombine.high %v2460_v44, %v2460_v44  ;;  %v2143_v13 = vrot.slane %v6061_v46, %v5875_v55  ;;  %v2150_v31 = vrot.slane %v2136_v42, %v5875_v55  ;;  %v6695_v19 = vpop.f32.mrb[22].mxu0 }
 0x12f   : > { %8423 = vst [vmem:[#allocation95_spill] sm:$0xff] %v6596_v8  ;;  %8424 = vst [vmem:[#allocation96_spill] sm:$0xff] %v6601_v5  ;;  %v2469_v8 = vcombine.high %v2467_v17, %v2467_v17  ;;  %v6620_v26 = vrot.slane %v2467_v17, %v5875_v55  ;;  %v2498_v5 = vcombine.high %v6608_v58, %v6608_v58 }
 0x130   : > { %8425 = vst [vmem:[#allocation97_spill] sm:$0xff] %v6608_v58  ;;  %8426 = vst [vmem:[#allocation98_spill] sm:$0xff] %v6610_v57  ;;  %v6623_v44 = vrot.slane %v2468_v7, %v5875_v55  ;;  %v6628_v34 = vrot.slane %v2550_v53, %v5886_v2  ;;  %v2151_v16 = vcombine.high %v2143_v13, %v2143_v13 }
 0x131   : > { %v2600_v46 = vcombine.high %v6063_v15, %v6063_v15  ;;  %v6635_v42 = vrot.slane %v2469_v8, %v5875_v55  ;;  %v2499_v7 = vcombine.high %v6620_v26, %v6620_v26  ;;  %v2152_v63 = vcombine.high %v2150_v31, %v2150_v31  ;;  %v6651_v8 = vpop.f32.mrb[21].mxu1  ;;  %8438 = vst [vmem:[#allocation110_spill] sm:$0xff] %v6695_v19 }
 0x132   : > { %8427 = vst [vmem:[#allocation99_spill] sm:$0xff] %v6623_v44  ;;  %8428 = vst [vmem:[#allocation100_spill] sm:$0xff] %v6628_v34  ;;  %v2500_v17 = vcombine.high %v6623_v44, %v6623_v44  ;;  %v6646_v34 = vrot.slane %v2143_v13, %v5875_v55  ;;  %v6649_v20 = vrot.slane %v2150_v31, %v5875_v55  ;;  %v6764_v58 = vpop.f32.mrb[22].mxu1 }
 0x133   : > { %8431 = vst [vmem:[#allocation103_spill] sm:$0xff] %v6651_v8  ;;  %v6656_v54 = vrot.slane %v2498_v5, %v5886_v2  ;;  %v6661_v62 = vrot.slane %v2151_v16, %v5875_v55  ;;  %v2501_v13 = vcombine.high %v6635_v42, %v6635_v42  ;;  %v6671_v57 = vrot.slane %v2499_v7, %v5886_v2 }
 0x134   : > { %8429 = vst [vmem:[#allocation101_spill] sm:$0xff] %v6646_v34  ;;  %8430 = vst [vmem:[#allocation102_spill] sm:$0xff] %v6649_v20  ;;  %v6666_v31 = vrot.slane %v2500_v17, %v5886_v2  ;;  %v6674_v5 = vrot.slane %v2152_v63, %v5875_v55  ;;  %v2607_v53 = vrot.slane %v6063_v15, %v5875_v55 }
 0x135   : > { %8432 = vst [vmem:[#allocation104_spill] sm:$0xff] %v6656_v54  ;;  %8433 = vst [vmem:[#allocation105_spill] sm:$0xff] %v6661_v62  ;;  %v2614_v16 = vrot.slane %v2600_v46, %v5875_v55  ;;  %v2087_v8 = vcombine.high %v6077_v24, %v6077_v24  ;;  %v2094_v7 = vrot.slane %v6077_v24, %v5875_v55 }
 0x136   : > { %8434 = vst [vmem:[#allocation106_spill] sm:$0xff] %v6666_v31  ;;  %8435 = vst [vmem:[#allocation107_spill] sm:$0xff] %v6674_v5  ;;  %v2551_v63 = vcombine.high %v6079_v51, %v6079_v51  ;;  %v2615_v31 = vcombine.high %v2607_v53, %v2607_v53  ;;  %v6690_v15 = vrot.slane %v2607_v53, %v5875_v55 }
 0x137   : > { %v2616_v54 = vcombine.high %v2614_v16, %v2614_v16  ;;  %v6693_v46 = vrot.slane %v2614_v16, %v5875_v55  ;;  %v6698_v17 = vrot.slane %v2501_v13, %v5886_v2  ;;  %v2101_v24 = vrot.slane %v2087_v8, %v5875_v55  ;;  %8451 = vst [vmem:[#allocation123_spill] sm:$0xff] %v6764_v58 }
 0x138   : > { %8436 = vst [vmem:[#allocation108_spill] sm:$0xff] %v6690_v15  ;;  %v2102_v34 = vcombine.high %v2094_v7, %v2094_v7  ;;  %v6704_v20 = vrot.slane %v2615_v31, %v5875_v55  ;;  %v2645_v16 = vcombine.high %v6690_v15, %v6690_v15  ;;  %v2558_v8 = vrot.slane %v6079_v51, %v5875_v55 }
 0x139   : > { %8437 = vst [vmem:[#allocation109_spill] sm:$0xff] %v6693_v46  ;;  %v6707_v53 = vrot.slane %v2616_v54, %v5875_v55  ;;  %v2646_v19 = vcombine.high %v6693_v46, %v6693_v46  ;;  %v2103_v44 = vcombine.high %v2101_v24, %v2101_v24  ;;  %v2565_v27 = vrot.slane %v2551_v63, %v5875_v55 }
 0x13a   : > { %8439 = vst [vmem:[#allocation111_spill] sm:$0xff] %v6704_v20  ;;  %v2647_v31 = vcombine.high %v6704_v20, %v6704_v20  ;;  %v6725_v39 = vrot.slane %v2094_v7, %v5875_v55  ;;  %v6730_v5 = vrot.slane %v2645_v16, %v5886_v2  ;;  %v6735_v63 = vrot.slane %v2101_v24, %v5875_v55 }
 0x13b   : > { %8440 = vst [vmem:[#allocation112_spill] sm:$0xff] %v6707_v53  ;;  %v2648_v54 = vcombine.high %v6707_v53, %v6707_v53  ;;  %v6740_v62 = vrot.slane %v2646_v19, %v5886_v2  ;;  %v6743_v7 = vrot.slane %v2102_v34, %v5875_v55  ;;  %v6746_v13 = vrot.slane %v2103_v44, %v5875_v55 }
 0x13c   : > { %8441 = vst [vmem:[#allocation113_spill] sm:$0xff] %v6725_v39  ;;  %8442 = vst [vmem:[#allocation114_spill] sm:$0xff] %v6730_v5  ;;  %v6749_v16 = vrot.slane %v2647_v31, %v5886_v2  ;;  %v2566_v24 = vcombine.high %v2558_v8, %v2558_v8  ;;  %v2567_v5 = vcombine.high %v2565_v27, %v2565_v27 }
 0x13d   : > { %8443 = vst [vmem:[#allocation115_spill] sm:$0xff] %v6735_v63  ;;  %8444 = vst [vmem:[#allocation116_spill] sm:$0xff] %v6740_v62  ;;  %v6752_v51 = vrot.slane %v2648_v54, %v5886_v2  ;;  %v6755_v20 = vrot.slane %v2558_v8, %v5875_v55  ;;  %v6758_v19 = vrot.slane %v2565_v27, %v5875_v55 }
 0x13e   : > { %8445 = vst [vmem:[#allocation117_spill] sm:$0xff] %v6743_v7  ;;  %8446 = vst [vmem:[#allocation118_spill] sm:$0xff] %v6746_v13  ;;  %v2234_v34 = vcombine.high %v6105_v35, %v6105_v35  ;;  %v2241_v44 = vrot.slane %v6105_v35, %v5875_v55  ;;  %v6769_v54 = vrot.slane %v2566_v24, %v5875_v55  ;;  %v6805_v7 = vpop.f32.mrb[23].mxu0 }
 0x13f   : > { %8447 = vst [vmem:[#allocation119_spill] sm:$0xff] %v6749_v16  ;;  %8448 = vst [vmem:[#allocation120_spill] sm:$0xff] %v6752_v51  ;;  %v6772_v8 = vrot.slane %v2567_v5, %v5875_v55  ;;  %v2698_v27 = vcombine.high %v6107_v36, %v6107_v36  ;;  %v2705_v31 = vrot.slane %v6107_v36, %v5875_v55 }
 0x140   : > { %8449 = vst [vmem:[#allocation121_spill] sm:$0xff] %v6755_v20  ;;  %8450 = vst [vmem:[#allocation122_spill] sm:$0xff] %v6758_v19  ;;  %v2596_v24 = vcombine.high %v6755_v20, %v6755_v20  ;;  %v2597_v5 = vcombine.high %v6758_v19, %v6758_v19  ;;  %v2598_v35 = vcombine.high %v6769_v54, %v6769_v54 }
 0x141   : > { %8452 = vst [vmem:[#allocation124_spill] sm:$0xff] %v6769_v54  ;;  %8453 = vst [vmem:[#allocation125_spill] sm:$0xff] %v6772_v8  ;;  %v2599_v15 = vcombine.high %v6772_v8, %v6772_v8  ;;  %v2248_v36 = vrot.slane %v2234_v34, %v5875_v55  ;;  %v2249_v62 = vcombine.high %v2241_v44, %v2241_v44 }
 0x142   : > { %v6802_v51 = vrot.slane %v2241_v44, %v5875_v55  ;;  %v2712_v16 = vrot.slane %v2698_v27, %v5875_v55  ;;  %8455 = vst [vmem:[#allocation127_spill] sm:$0xff] %v6805_v7  ;;  %v2713_v13 = vcombine.high %v2705_v31, %v2705_v31  ;;  %v6814_v53 = vrot.slane %v2596_v24, %v5886_v2  ;;  %v6916_v7 = vpop.f32.mrb[24].mxu0 }
 0x143   : > { %v2250_v39 = vcombine.high %v2248_v36, %v2248_v36  ;;  %v6808_v20 = vrot.slane %v2248_v36, %v5875_v55  ;;  %v6811_v34 = vrot.slane %v2249_v62, %v5875_v55  ;;  %v6817_v46 = vrot.slane %v2705_v31, %v5875_v55  ;;  %8474 = vst [vmem:[#allocation146_spill] sm:$0xff] %v6916_v7 }
 0x144   : > { %8454 = vst [vmem:[#allocation126_spill] sm:$0xff] %v6802_v51  ;;  %8458 = vst [vmem:[#allocation130_spill] sm:$0xff] %v6814_v53  ;;  %v2714_v54 = vcombine.high %v2712_v16, %v2712_v16  ;;  %v6820_v44 = vrot.slane %v2712_v16, %v5875_v55  ;;  %v6823_v27 = vrot.slane %v2598_v35, %v5886_v2 }
 0x145   : > { %8456 = vst [vmem:[#allocation128_spill] sm:$0xff] %v6808_v20  ;;  %8457 = vst [vmem:[#allocation129_spill] sm:$0xff] %v6811_v34  ;;  %v6826_v36 = vrot.slane %v2597_v5, %v5886_v2  ;;  %v6829_v62 = vrot.slane %v2250_v39, %v5875_v55  ;;  %v6832_v8 = vrot.slane %v2713_v13, %v5875_v55 }
 0x146   : > { %8459 = vst [vmem:[#allocation131_spill] sm:$0xff] %v6817_v46  ;;  %8460 = vst [vmem:[#allocation132_spill] sm:$0xff] %v6820_v44  ;;  %v6835_v24 = vrot.slane %v2599_v15, %v5886_v2  ;;  %v6840_v16 = vrot.slane %v2714_v54, %v5875_v55  ;;  %v2743_v35 = vcombine.high %v6817_v46, %v6817_v46 }
 0x147   : > { %8461 = vst [vmem:[#allocation133_spill] sm:$0xff] %v6823_v27  ;;  %8462 = vst [vmem:[#allocation134_spill] sm:$0xff] %v6826_v36  ;;  %v2744_v13 = vcombine.high %v6820_v44, %v6820_v44  ;;  %v6852_v27 = vpop.f32.mrb[23].mxu1  ;;  %v2745_v31 = vcombine.high %v6832_v8, %v6832_v8  ;;  %v2185_v15 = vcombine.high %v6117_v37, %v6117_v37 }
 0x148   : > { %8463 = vst [vmem:[#allocation135_spill] sm:$0xff] %v6829_v62  ;;  %8464 = vst [vmem:[#allocation136_spill] sm:$0xff] %v6832_v8  ;;  %v2746_v53 = vcombine.high %v6840_v16, %v6840_v16  ;;  %v2649_v54 = vcombine.high %v6119_v45, %v6119_v45  ;;  %v6871_v36 = vrot.slane %v2743_v35, %v5886_v2 }
 0x149   : > { %8465 = vst [vmem:[#allocation137_spill] sm:$0xff] %v6835_v24  ;;  %8466 = vst [vmem:[#allocation138_spill] sm:$0xff] %v6840_v16  ;;  %v2192_v24 = vrot.slane %v6117_v37, %v5875_v55  ;;  %v2656_v39 = vrot.slane %v6119_v45, %v5875_v55  ;;  %v2332_v63 = vcombine.high %v6145_v28, %v6145_v28  ;;  %v6961_v16 = vpop.f32.mrb[24].mxu1 }
 0x14a   : > { %8467 = vst [vmem:[#allocation139_spill] sm:$0xff] %v6852_v27  ;;  %8468 = vst [vmem:[#allocation140_spill] sm:$0xff] %v6871_v36  ;;  %v2199_v19 = vrot.slane %v2185_v15, %v5875_v55  ;;  %v2663_v37 = vrot.slane %v2649_v54, %v5875_v55  ;;  %v2339_v34 = vrot.slane %v6145_v28, %v5875_v55 }
 0x14b   : > { %v2200_v27 = vcombine.high %v2192_v24, %v2192_v24  ;;  %v6884_v35 = vrot.slane %v2744_v13, %v5886_v2  ;;  %v6887_v36 = vrot.slane %v2192_v24, %v5875_v55  ;;  %v2664_v5 = vcombine.high %v2656_v39, %v2656_v39  ;;  %8479 = vst [vmem:[#allocation151_spill] sm:$0xff] %v6961_v16 }
 0x14c   : > { %v6890_v45 = vrot.slane %v2656_v39, %v5875_v55  ;;  %v2201_v8 = vcombine.high %v2199_v19, %v2199_v19  ;;  %v6893_v51 = vrot.slane %v2199_v19, %v5875_v55  ;;  %v2346_v54 = vrot.slane %v2332_v63, %v5875_v55 }
 0x14d   : > { %8469 = vst [vmem:[#allocation141_spill] sm:$0xff] %v6884_v35  ;;  %v6896_v15 = vrot.slane %v2200_v27, %v5875_v55  ;;  %v2665_v28 = vcombine.high %v2663_v37, %v2663_v37  ;;  %v6900_v13 = vrot.slane %v2663_v37, %v5875_v55  ;;  %v6903_v24 = vrot.slane %v2664_v5, %v5875_v55 }
 0x14e   : > { %v2694_v39 = vcombine.high %v6890_v45, %v6890_v45  ;;  %v6908_v46 = vrot.slane %v2745_v31, %v5886_v2  ;;  %v6911_v19 = vrot.slane %v2746_v53, %v5886_v2  ;;  %v6914_v27 = vrot.slane %v2201_v8, %v5875_v55 }
 0x14f   : > { %8470 = vst [vmem:[#allocation142_spill] sm:$0xff] %v6896_v15  ;;  %8471 = vst [vmem:[#allocation143_spill] sm:$0xff] %v6903_v24  ;;  %v2347_v63 = vcombine.high %v2339_v34, %v2339_v34  ;;  %v6923_v58 = vrot.slane %v2665_v28, %v5875_v55  ;;  %v2696_v31 = vcombine.high %v6903_v24, %v6903_v24 }
 0x150   : > { %8472 = vst [vmem:[#allocation144_spill] sm:$0xff] %v6908_v46  ;;  %8473 = vst [vmem:[#allocation145_spill] sm:$0xff] %v6911_v19  ;;  %v2695_v8 = vcombine.high %v6900_v13, %v6900_v13  ;;  %v2348_v46 = vcombine.high %v2346_v54, %v2346_v54  ;;  %v6940_v19 = vrot.slane %v2694_v39, %v5886_v2 }
 0x151   : > { %v2697_v28 = vcombine.high %v6923_v58, %v6923_v58  ;;  %v6943_v53 = vrot.slane %v2696_v31, %v5886_v2  ;;  %v6948_v7 = vrot.slane %v2339_v34, %v5875_v55  ;;  %v6951_v5 = vrot.slane %v2346_v54, %v5875_v55 }
 0x152   : > { %8475 = vst [vmem:[#allocation147_spill] sm:$0xff] %v6940_v19  ;;  %v2796_v37 = vcombine.high %v6147_v4, %v6147_v4  ;;  %v2803_v39 = vrot.slane %v6147_v4, %v5875_v55  ;;  %v2283_v31 = vcombine.high %v6158_v43, %v6158_v43  ;;  %v6964_v34 = vrot.slane %v2695_v8, %v5886_v2 }
 0x153   : > { %8476 = vst [vmem:[#allocation148_spill] sm:$0xff] %v6943_v53  ;;  %8477 = vst [vmem:[#allocation149_spill] sm:$0xff] %v6948_v7  ;;  %v6967_v54 = vrot.slane %v2697_v28, %v5886_v2  ;;  %v6970_v35 = vrot.slane %v2347_v63, %v5875_v55  ;;  %v6973_v62 = vrot.slane %v2348_v46, %v5875_v55 }
 0x154   : > { %8478 = vst [vmem:[#allocation150_spill] sm:$0xff] %v6951_v5  ;;  %v2810_v20 = vrot.slane %v2796_v37, %v5875_v55  ;;  %v2811_v4 = vcombine.high %v2803_v39, %v2803_v39  ;;  %v6977_v44 = vrot.slane %v2803_v39, %v5875_v55  ;;  %v2290_v16 = vrot.slane %v6158_v43, %v5875_v55  ;;  %v7003_v5 = vpop.f32.mrb[25].mxu0 }
 0x155   : > { %8480 = vst [vmem:[#allocation152_spill] sm:$0xff] %v6970_v35  ;;  %8481 = vst [vmem:[#allocation153_spill] sm:$0xff] %v6973_v62  ;;  %v2297_v63 = vrot.slane %v2283_v31, %v5875_v55  ;;  %v8483_v46 = vrot.slane %v6000_v1, %v5886_v2  ;;  %v2747_v31 = vcombine.high %v6160_v6, %v6160_v6 }
 0x156   : > { %8482 = vst [vmem:[#allocation154_spill] sm:$0xff] %v6977_v44  ;;  %v2812_v35 = vcombine.high %v2810_v20, %v2810_v20  ;;  %v6992_v39 = vrot.slane %v2810_v20, %v5875_v55  ;;  %v6995_v43 = vrot.slane %v2811_v4, %v5875_v55  ;;  %v2841_v8 = vcombine.high %v6977_v44, %v6977_v44 }
 0x157   : > { %v1921_v37 = vsel %vm1916_vm2, %v5971_v48, %v8483_v46  ;;  %v2298_v7 = vcombine.high %v2290_v16, %v2290_v16  ;;  %v2299_v28 = vcombine.high %v2297_v63, %v2297_v63  ;;  %v2754_v1 = vrot.slane %v6160_v6, %v5875_v55  ;;  %8486 = vst [vmem:[#allocation157_spill] sm:$0xff] %v7003_v5 }
 0x158   : > { %8484 = vst [vmem:[#allocation155_spill] sm:$0xff] %v6992_v39  ;;  %8485 = vst [vmem:[#allocation156_spill] sm:$0xff] %v6995_v43  ;;  %v7006_v46 = vrot.slane %v2812_v35, %v5875_v55  ;;  %v2842_v20 = vcombine.high %v6992_v39, %v6992_v39  ;;  %v2843_v4 = vcombine.high %v6995_v43, %v6995_v43 }
 0x159   : > { %v7013_v53 = vrot.slane %v2290_v16, %v5875_v55  ;;  %v7022_v35 = vrot.slane %v2297_v63, %v5875_v55  ;;  %v7027_v24 = vrot.slane %v2841_v8, %v5886_v2  ;;  %v7032_v19 = vrot.slane %v2298_v7, %v5875_v55 }
 0x15a   : > { %8487 = vst [vmem:[#allocation158_spill] sm:$0xff] %v7006_v46  ;;  %v2844_v15 = vcombine.high %v7006_v46, %v7006_v46  ;;  %v7035_v6 = vrot.slane %v2843_v4, %v5886_v2  ;;  %v7040_v63 = vrot.slane %v2842_v20, %v5886_v2  ;;  %v7043_v43 = vrot.slane %v2299_v28, %v5875_v55 }
 0x15b   : > { %8488 = vst [vmem:[#allocation159_spill] sm:$0xff] %v7013_v53  ;;  %8489 = vst [vmem:[#allocation160_spill] sm:$0xff] %v7027_v24  ;;  %v2761_v16 = vrot.slane %v2747_v31, %v5875_v55  ;;  %v2762_v24 = vcombine.high %v2754_v1, %v2754_v1  ;;  %v7049_v7 = vrot.slane %v2754_v1, %v5875_v55 }
 0x15c   : > { %8490 = vst [vmem:[#allocation161_spill] sm:$0xff] %v7032_v19  ;;  %8491 = vst [vmem:[#allocation162_spill] sm:$0xff] %v7035_v6  ;;  %v8494_v5 = vrot.slane %v6018_v18, %v5886_v2  ;;  %v8495_v28 = vcombine.high %v5971_v48, %v5971_v48  ;;  %v8496_v31 = vcombine.high %v5993_v61, %v5993_v61 }
 0x15d   : > { %8492 = vst [vmem:[#allocation163_spill] sm:$0xff] %v7040_v63  ;;  %8493 = vst [vmem:[#allocation164_spill] sm:$0xff] %v7049_v7  ;;  %v2763_v6 = vcombine.high %v2761_v16, %v2761_v16  ;;  %v7069_v4 = vrot.slane %v2761_v16, %v5875_v55  ;;  %v7072_v18 = vrot.slane %v2762_v24, %v5875_v55  ;;  %v7089_v24 = vpop.f32.mrb[25].mxu1 }
 0x15e   : > { %v1922_v20 = vsel %vm1916_vm2, %v5993_v61, %v8494_v5  ;;  %v1923_v8 = vsel %vm1916_vm2, %v8495_v28, %v6066_v21  ;;  %v1924_v1 = vsel %vm1916_vm2, %v8496_v31, %v6088_v32  ;;  %v2792_v5 = vcombine.high %v7049_v7, %v7049_v7 }
 0x15f   : > { %8497 = vst [vmem:[#allocation165_spill] sm:$0xff] %v7072_v18  ;;  %v7077_v48 = vrot.slane %v2844_v15, %v5886_v2  ;;  %v8499_v32 = vcombine.high %v5880_v56, %v5880_v56  ;;  %v7092_v28 = vrot.slane %v2763_v6, %v5875_v55  ;;  %v2793_v15 = vcombine.high %v7069_v4, %v7069_v4  ;;  %v7105_v56 = vld [vmem:[%s8180_s5] ss:$0 sm:$0xff] }
 0x160   : > { %v2794_v31 = vcombine.high %v7072_v18, %v7072_v18  ;;  %v7100_v21 = vcombine.high %v5905_v14, %v5905_v14  ;;  %v7112_v6 = vrot.slane %v2792_v5, %v5886_v2  ;;  %v3260_v61 = vadd.f32 %v5905_v14, %v1921_v37 }
 0x161   : > { %8498 = vst [vmem:[#allocation166_spill] sm:$0xff] %v7077_v48  ;;  %v7087_v16 = vrot.slane %v8499_v32, %v5882_v59  ;;  %v2795_v44 = vcombine.high %v7092_v28, %v7092_v28  ;;  %v3594_v37 = vadd.f32 %v6183_v12, %v7105_v56  ;;  %v8502_v55 = vrot.slane %v6324_v25, %v5886_v2 }
 0x162   : > { %8500 = vst [vmem:[#allocation167_spill] sm:$0xff] %v7112_v6  ;;  %v3261_v32 = vadd.f32 %v7100_v21, %v1922_v20  ;;  %v7125_v62 = vrot.slane %v2794_v31, %v5886_v2  ;;  %v7137_v46 = vrot.slane %v2793_v15, %v5886_v2  ;;  %v8503_v20 = vrot.slane %v6336_v22, %v5886_v2  ;;  %v7154_v15 = vpop.f32.mrb[26].mxu0 }
 0x163   : > { %v7121_v63 = vcombine.high %v7087_v16, %v7087_v16  ;;  %v1953_v48 = vsel %vm1916_vm2, %v6301_v41, %v8502_v55  ;;  %v8504_v5 = vcombine.high %v6301_v41, %v6301_v41  ;;  %v8505_v25 = vcombine.high %v6312_v40, %v6312_v40 }
 0x164   : > { %8501 = vst [vmem:[#allocation168_spill] sm:$0xff] %v7125_v62  ;;  %v1954_v31 = vsel %vm1916_vm2, %v6312_v40, %v8503_v20  ;;  %v7157_v39 = vrot.slane %v2795_v44, %v5886_v2  ;;  %v3262_v22 = vadd.f32 %v7087_v16, %v1923_v8  ;;  %v3748_v62 = vmax.f32 %v3594_v37, 0.0 }
 0x165   : > { %v1955_v12 = vsel %vm1916_vm2, %v8504_v5, %v6392_v23  ;;  %v1956_v55 = vsel %vm1916_vm2, %v8505_v25, %v6401_v60  ;;  %v3263_v20 = vadd.f32 %v7121_v63, %v1924_v1  ;;  %v3324_v41 = vadd.f32 %v5905_v14, %v1953_v48 }
 0x166   : > { %v3674_v23 = vadd.f32 %v6185_v33, %v7105_v56  ;;  %v8506_v40 = vrot.slane %v5978_v52, %v5886_v2  ;;  %v8507_v44 = vrot.slane %v6003_v3, %v5886_v2  ;;  %v3828_v5 = vcombine.high %v3748_v62, %v3748_v62 }
 0x167   : > { %v3835_v1 = vrot.slane %v3748_v62, %v5882_v59  ;;  %v8508_v48 = vcombine.high %v5968_v47, %v5968_v47  ;;  %v8509_v52 = vcombine.high %v5974_v49, %v5974_v49  ;;  %v3325_v3 = vadd.f32 %v7100_v21, %v1954_v31 }
 0x168   : > { %v1917_v60 = vsel %vm1916_vm2, %v5968_v47, %v8506_v40  ;;  %v1918_v8 = vsel %vm1916_vm2, %v5974_v49, %v8507_v44  ;;  %v3326_v25 = vadd.f32 %v7087_v16, %v1955_v12  ;;  %v3327_v40 = vadd.f32 %v7121_v63, %v1956_v55 }
 0x169   : > { %v1919_v33 = vsel %vm1916_vm2, %v8508_v48, %v6042_v0  ;;  %v1920_v37 = vsel %vm1916_vm2, %v8509_v52, %v6049_v29  ;;  %v3764_v44 = vmax.f32 %v3674_v23, 0.0  ;;  %v3842_v62 = vrot.slane %v3828_v5, %v5882_v59  ;;  %v7190_v0 = vpop.f32.mrb[26].mxu1 }
 0x16a   : > { %v3843_v6 = vcombine.high %v3835_v1, %v3835_v1  ;;  %v4487_v19 = vadd.f32 %v3835_v1, %v3260_v61  ;;  %v3256_v47 = vadd.f32 %v5905_v14, %v1917_v60  ;;  %v3589_v29 = vadd.f32 %v7105_v56, %v6197_v10  ;;  %v8512_v60 = vld [vmem:[#allocation51_spill] sm:$0xff] }
 0x16b   : > { %v4100_v48 = vcombine.high %v3764_v44, %v3764_v44  ;;  %v4107_v49 = vrot.slane %v3764_v44, %v5882_v59  ;;  %v8510_v31 = vrot.slane %v6321_v9, %v5886_v2  ;;  %v3844_v55 = vcombine.high %v3842_v62, %v3842_v62  ;;  %v8513_v9 = vld [vmem:[#allocation59_spill] sm:$0xff] }
 0x16c   : > { %v4488_v23 = vadd.f32 %v3843_v6, %v3261_v32  ;;  %v4489_v5 = vadd.f32 %v3842_v62, %v3262_v22  ;;  %v8511_v61 = vrot.slane %v6333_v50, %v5886_v2  ;;  %v3747_v10 = vmax.f32 %v3589_v29, 0.0  ;;  %v8515_v6 = vld [vmem:[#allocation62_spill] sm:$0xff] }
 0x16d   : > { %v1949_v12 = vsel %vm1916_vm2, %v6291_v30, %v8510_v31  ;;  %v4114_v52 = vrot.slane %v4100_v48, %v5882_v59  ;;  %v4115_v44 = vcombine.high %v4107_v49, %v4107_v49  ;;  %v4551_v18 = vadd.f32 %v4107_v49, %v3324_v41 }
 0x16e   : > { %v1950_v1 = vsel %vm1916_vm2, %v8512_v60, %v8511_v61  ;;  %v4490_v53 = vadd.f32 %v3844_v55, %v3263_v20  ;;  %v4756_v7 = vcombine.low %v4487_v19, %v4488_v23  ;;  %v8514_v31 = vcombine.high %v6291_v30, %v6291_v30 }
 0x16f   : > { %v8516_v50 = vcombine.high %v8512_v60, %v8512_v60  ;;  %v4116_v62 = vcombine.high %v4114_v52, %v4114_v52  ;;  %v4552_v61 = vadd.f32 %v4115_v44, %v3325_v3  ;;  %v4553_v48 = vadd.f32 %v4114_v52, %v3326_v25  ;;  %v7223_v52 = vpop.f32.mrb[27].mxu0 }
 0x170   : > { %v1951_v32 = vsel %vm1916_vm2, %v8514_v31, %v8513_v9  ;;  %v3811_v41 = vcombine.high %v3747_v10, %v3747_v10  ;;  %v4757_v49 = vcombine.low %v4489_v5, %v4490_v53  ;;  %v3257_v19 = vadd.f32 %v7100_v21, %v1918_v8  ;;  %v8517_v5 = vld [vmem:[#allocation37_spill] sm:$0xff] }
 0x171   : > { %v1952_v22 = vsel %vm1916_vm2, %v8516_v50, %v8515_v6  ;;  %v3258_v20 = vadd.f32 %v7087_v16, %v1919_v33  ;;  %v3818_v30 = vrot.slane %v3747_v10, %v5882_v59  ;;  %v4554_v29 = vadd.f32 %v4116_v62, %v3327_v40 }
 0x172   : > { %v5028_v55 = vcombine.low %v4551_v18, %v4552_v61  ;;  %v3259_v23 = vadd.f32 %v7121_v63, %v1920_v37  ;;  %v3825_v60 = vrot.slane %v3811_v41, %v5882_v59  ;;  %v4764_v9 = vrot.slane %v4756_v7, %v5882_v59 }
 0x173   : > { %v4771_v3 = vrot.slane %v4757_v49, %v5882_v59  ;;  %v3826_v44 = vcombine.high %v3818_v30, %v3818_v30  ;;  %v4483_v25 = vadd.f32 %v3818_v30, %v3256_v47  ;;  %v5029_v53 = vcombine.low %v4553_v48, %v4554_v29 }
 0x174   : > { %v3827_v18 = vcombine.high %v3825_v60, %v3825_v60  ;;  %v4485_v8 = vadd.f32 %v3825_v60, %v3258_v20  ;;  %v3320_v33 = vadd.f32 %v5905_v14, %v1949_v12  ;;  %v5036_v7 = vrot.slane %v5028_v55, %v5882_v59  ;;  %v7261_v55 = vpop.f32.mrb[27].mxu1 }
 0x175   : > { %v4772_v37 = vcombine.low %v4764_v9, %v4771_v3  ;;  %v4484_v40 = vadd.f32 %v3826_v44, %v3257_v19  ;;  %v3669_v47 = vadd.f32 %v7105_v56, %v8517_v5  ;;  %v5043_v10 = vrot.slane %v5029_v53, %v5882_v59  ;;  %v8522_v9 = vld [vmem:[#allocation47_spill] sm:$0xff] }
 0x176   : > { %v4486_v31 = vadd.f32 %v3827_v18, %v3259_v23  ;;  %v8518_v6 = vrot.slane %v6620_v26, %v5886_v2  ;;  %v8519_v62 = vrot.slane %v6635_v42, %v5886_v2  ;;  %v8520_v41 = vcombine.high %v6579_v11, %v6579_v11 }
 0x177   : > { %5316 = vst.msk [vmem:[%s7230_s27 + $0x8] sm:$0xff] %vm281_vm0, %v4772_v37  ;;  %v4739_v61 = vcombine.low %v4483_v25, %v4484_v40  ;;  %v3763_v48 = vmax.f32 %v3669_v47, 0.0  ;;  %v8521_v49 = vcombine.high %v6604_v38, %v6604_v38  ;;  %v5044_v19 = vcombine.low %v5036_v7, %v5043_v10 }
 0x178   : > { %v3169_v50 = vsel %vm1916_vm2, %v6579_v11, %v8518_v6  ;;  %v3170_v12 = vsel %vm1916_vm2, %v6604_v38, %v8519_v62  ;;  %v3171_v26 = vsel %vm1916_vm2, %v8520_v41, %v6671_v57  ;;  %v4740_v20 = vcombine.low %v4485_v8, %v4486_v31  ;;  %v7294_v31 = vpop.f32.mrb[28].mxu0 }
 0x179   : > { %v3172_v42 = vsel %vm1916_vm2, %v8521_v49, %v6698_v17  ;;  %v3321_v30 = vadd.f32 %v7100_v21, %v1950_v1  ;;  %v3322_v29 = vadd.f32 %v7087_v16, %v1951_v32  ;;  %v3323_v23 = vadd.f32 %v7121_v63, %v1952_v22  ;;  %5332 = vst.msk [vmem:[%s7230_s27 + $0x88] sm:$0xff] %vm281_vm0, %v5044_v19  ;;  %v8528_v19 = vld [vmem:[#allocation97_spill] sm:$0xff] }
 0x17a   : > { %v4083_v60 = vcombine.high %v3763_v48, %v3763_v48  ;;  %v4090_v11 = vrot.slane %v3763_v48, %v5882_v59  ;;  %v3268_v57 = vadd.f32 %v5905_v14, %v3169_v50  ;;  %v4747_v38 = vrot.slane %v4739_v61, %v5882_v59  ;;  %v8527_v61 = vld [vmem:[#allocation48_spill] sm:$0xff] }
 0x17b   : > { %v4754_v17 = vrot.slane %v4740_v20, %v5882_v59  ;;  %v3604_v1 = vadd.f32 %v8522_v9, %v7105_v56  ;;  %v8523_v32 = vrot.slane %v6900_v13, %v5886_v2  ;;  %v8524_v53 = vrot.slane %v6923_v58, %v5886_v2 }
 0x17c   : > { %v4097_v3 = vrot.slane %v4083_v60, %v5882_v59  ;;  %v4098_v44 = vcombine.high %v4090_v11, %v4090_v11  ;;  %v4547_v25 = vadd.f32 %v4090_v11, %v3320_v33  ;;  %v8525_v7 = vcombine.high %v6893_v51, %v6893_v51  ;;  %v8531_v60 = vld [vmem:[#allocation99_spill] sm:$0xff] }
 0x17d   : > { %v3201_v22 = vsel %vm1916_vm2, %v6893_v51, %v8523_v32  ;;  %v3202_v18 = vsel %vm1916_vm2, %v6914_v27, %v8524_v53  ;;  %v4755_v8 = vcombine.low %v4747_v38, %v4754_v17  ;;  %v3750_v37 = vmax.f32 %v3604_v1, 0.0  ;;  %v8533_v38 = vld [vmem:[#allocation94_spill] sm:$0xff] }
 0x17e   : > { %v3203_v13 = vsel %vm1916_vm2, %v8525_v7, %v6964_v34  ;;  %v8526_v40 = vcombine.high %v6914_v27, %v6914_v27  ;;  %v4099_v5 = vcombine.high %v4097_v3, %v4097_v3  ;;  %v4548_v47 = vadd.f32 %v4098_v44, %v3321_v30 }
 0x17f   : > { %v4549_v58 = vadd.f32 %v4097_v3, %v3322_v29  ;;  %v3269_v10 = vadd.f32 %v7100_v21, %v3170_v12  ;;  %5315 = vst.msk [vmem:[%s7230_s27] sm:$0xff] %vm281_vm0, %v4755_v8  ;;  %v3270_v6 = vadd.f32 %v7087_v16, %v3171_v26  ;;  %v3271_v51 = vadd.f32 %v7121_v63, %v3172_v42  ;;  %v8530_v26 = vld [vmem:[#allocation92_spill] sm:$0xff]  ;;  %v8536_v8 = vld [vmem:[#allocation106_spill] sm:$0xff] }
 0x180   : > { %v3204_v33 = vsel %vm1916_vm2, %v8526_v40, %v6967_v54  ;;  %v3862_v34 = vcombine.high %v3750_v37, %v3750_v37  ;;  %v3869_v50 = vrot.slane %v3750_v37, %v5882_v59  ;;  %v4550_v62 = vadd.f32 %v4099_v5, %v3323_v23 }
 0x181   : > { %v5011_v27 = vcombine.low %v4547_v25, %v4548_v47  ;;  %v3332_v54 = vadd.f32 %v5905_v14, %v3201_v22  ;;  %v3684_v48 = vadd.f32 %v8527_v61, %v7105_v56  ;;  %v8529_v20 = vrot.slane %v8528_v19, %v5886_v2 }
 0x182   : > { %v3876_v12 = vrot.slane %v3862_v34, %v5882_v59  ;;  %v3877_v41 = vcombine.high %v3869_v50, %v3869_v50  ;;  %v4495_v49 = vadd.f32 %v3869_v50, %v3268_v57  ;;  %v5012_v30 = vcombine.low %v4549_v58, %v4550_v62  ;;  %v8534_v57 = vld [vmem:[#allocation104_spill] sm:$0xff]  ;;  %v7331_v62 = vpop.f32.mrb[28].mxu1 }
 0x183   : > { %v3165_v42 = vsel %vm1916_vm2, %v8530_v26, %v8529_v20  ;;  %v5019_v29 = vrot.slane %v5011_v27, %v5882_v59  ;;  %v3766_v23 = vmax.f32 %v3684_v48, 0.0  ;;  %v8532_v11 = vrot.slane %v8531_v60, %v5886_v2 }
 0x184   : > { %v3878_v9 = vcombine.high %v3876_v12, %v3876_v12  ;;  %v4496_v1 = vadd.f32 %v3877_v41, %v3269_v10  ;;  %v4497_v32 = vadd.f32 %v3876_v12, %v3270_v6  ;;  %v8535_v22 = vcombine.high %v8530_v26, %v8530_v26  ;;  %v8540_v26 = vld [vmem:[#allocation143_spill] sm:$0xff] }
 0x185   : > { %v3166_v17 = vsel %vm1916_vm2, %v8533_v38, %v8532_v11  ;;  %v5026_v44 = vrot.slane %v5012_v30, %v5882_v59  ;;  %v4134_v25 = vcombine.high %v3766_v23, %v3766_v23  ;;  %v4141_v53 = vrot.slane %v3766_v23, %v5882_v59 }
 0x186   : > { %v3167_v3 = vsel %vm1916_vm2, %v8535_v22, %v8534_v57  ;;  %v8537_v37 = vcombine.high %v8533_v38, %v8533_v38  ;;  %v4498_v40 = vadd.f32 %v3878_v9, %v3271_v51  ;;  %v4790_v5 = vcombine.low %v4495_v49, %v4496_v1 }
 0x187   : > { %v3333_v47 = vadd.f32 %v7100_v21, %v3202_v18  ;;  %v3334_v58 = vadd.f32 %v7087_v16, %v3203_v13  ;;  %v5027_v10 = vcombine.low %v5019_v29, %v5026_v44  ;;  %v4148_v6 = vrot.slane %v4134_v25, %v5882_v59  ;;  %v8538_v13 = vld [vmem:[#allocation57_spill] sm:$0xff]  ;;  %v8543_v29 = vld [vmem:[#allocation147_spill] sm:$0xff] }
 0x188   : > { %v3168_v7 = vsel %vm1916_vm2, %v8537_v37, %v8536_v8  ;;  %v4149_v34 = vcombine.high %v4141_v53, %v4141_v53  ;;  %v4559_v50 = vadd.f32 %v4141_v53, %v3332_v54  ;;  %v4791_v27 = vcombine.low %v4497_v32, %v4498_v40  ;;  %v7364_v53 = vpop.f32.mrb[29].mxu0 }
 0x189   : > { %v4798_v61 = vrot.slane %v4790_v5, %v5882_v59  ;;  %v3335_v48 = vadd.f32 %v7121_v63, %v3204_v33  ;;  %v3264_v12 = vadd.f32 %v5905_v14, %v3165_v42  ;;  %5331 = vst.msk [vmem:[%s7230_s27 + $0x80] sm:$0xff] %vm281_vm0, %v5027_v10  ;;  %v4150_v51 = vcombine.high %v4148_v6, %v4148_v6  ;;  %v8542_v42 = vld [vmem:[#allocation142_spill] sm:$0xff]  ;;  %v8550_v10 = vld [vmem:[#allocation4_spill] sm:$0xff] }
 0x18a   : > { %v4560_v18 = vadd.f32 %v4149_v34, %v3333_v47  ;;  %v4561_v41 = vadd.f32 %v4148_v6, %v3334_v58  ;;  %v3599_v49 = vadd.f32 %v7105_v56, %v8538_v13  ;;  %v4805_v19 = vrot.slane %v4791_v27, %v5882_v59  ;;  %v8547_v47 = vld [vmem:[#allocation58_spill] sm:$0xff]  ;;  %v8551_v6 = vld [vmem:[#allocation9_spill] sm:$0xff] }
 0x18b   : > { %v8539_v54 = vrot.slane %v6890_v45, %v5886_v2  ;;  %v8541_v33 = vrot.slane %v8540_v26, %v5886_v2  ;;  %v8544_v23 = vcombine.high %v6887_v36, %v6887_v36  ;;  %v4562_v11 = vadd.f32 %v4150_v51, %v3335_v48  ;;  %v8545_v45 = vld [vmem:[#allocation148_spill] sm:$0xff] }
 0x18c   : > { %v5062_v38 = vcombine.low %v4559_v50, %v4560_v18  ;;  %v3749_v9 = vmax.f32 %v3599_v49, 0.0  ;;  %v8546_v1 = vcombine.high %v8542_v42, %v8542_v42  ;;  %v4806_v57 = vcombine.low %v4798_v61, %v4805_v19  ;;  %v8553_v50 = vld [vmem:[#allocation8_spill] sm:$0xff] }
 0x18d   : > { %v3197_v20 = vsel %vm1916_vm2, %v6887_v36, %v8539_v54  ;;  %v3198_v30 = vsel %vm1916_vm2, %v8542_v42, %v8541_v33  ;;  %v3199_v60 = vsel %vm1916_vm2, %v8544_v23, %v8543_v29  ;;  %v3265_v22 = vadd.f32 %v7100_v21, %v3166_v17  ;;  %v8548_v17 = vld [vmem:[#allocation6_spill] sm:$0xff]  ;;  %v8554_v49 = vld [vmem:[#allocation12_spill] sm:$0xff] }
 0x18e   : > { %v3200_v32 = vsel %vm1916_vm2, %v8546_v1, %v8545_v45  ;;  %v3266_v44 = vadd.f32 %v7087_v16, %v3167_v3  ;;  %v3267_v25 = vadd.f32 %v7121_v63, %v3168_v7  ;;  %v5063_v36 = vcombine.low %v4561_v41, %v4562_v11  ;;  %5318 = vst.msk [vmem:[%s7230_s27 + $0x18] sm:$0xff] %vm281_vm0, %v4806_v57 }
 0x18f   : > { %v3845_v8 = vcombine.high %v3749_v9, %v3749_v9  ;;  %v3852_v37 = vrot.slane %v3749_v9, %v5882_v59  ;;  %v3328_v40 = vadd.f32 %v5905_v14, %v3197_v20  ;;  %v5070_v5 = vrot.slane %v5062_v38, %v5882_v59  ;;  %v8556_v20 = vld [vmem:[#allocation13_spill] sm:$0xff] }
 0x190   : > { %v3679_v58 = vadd.f32 %v7105_v56, %v8547_v47  ;;  %v8549_v3 = vrot.slane %v8548_v17, %v5886_v2  ;;  %v8552_v34 = vrot.slane %v8551_v6, %v5886_v2  ;;  %v5077_v61 = vrot.slane %v5063_v36, %v5882_v59  ;;  %v8559_v47 = vld [vmem:[#allocation44_spill] sm:$0xff] }
 0x191   : > { %v3859_v48 = vrot.slane %v3845_v8, %v5882_v59  ;;  %v3860_v51 = vcombine.high %v3852_v37, %v3852_v37  ;;  %v4491_v18 = vadd.f32 %v3852_v37, %v3264_v12  ;;  %v3329_v41 = vadd.f32 %v7100_v21, %v3198_v30  ;;  %v7396_v12 = vpop.f32.mrb[29].mxu1  ;;  %v8558_v8 = vld [vmem:[#allocation78_spill] sm:$0xff]  ;;  %v8564_v6 = vld [vmem:[#allocation40_spill] sm:$0xff] }
 0x192   : > { %v1929_v7 = vsel %vm1916_vm2, %v8550_v10, %v8549_v3  ;;  %v1930_v27 = vsel %vm1916_vm2, %v8553_v50, %v8552_v34  ;;  %v3765_v13 = vmax.f32 %v3679_v58, 0.0  ;;  %v8555_v19 = vcombine.high %v8550_v10, %v8550_v10  ;;  %v8562_v10 = vld [vmem:[#allocation46_spill] sm:$0xff] }
 0x193   : > { %v8557_v26 = vcombine.high %v8553_v50, %v8553_v50  ;;  %v5078_v42 = vcombine.low %v5070_v5, %v5077_v61  ;;  %v3861_v29 = vcombine.high %v3859_v48, %v3859_v48  ;;  %v4492_v23 = vadd.f32 %v3860_v51, %v3265_v22 }
 0x194   : > { %v1931_v54 = vsel %vm1916_vm2, %v8555_v19, %v8554_v49  ;;  %v4493_v11 = vadd.f32 %v3859_v48, %v3266_v44  ;;  %v3330_v30 = vadd.f32 %v7087_v16, %v3199_v60  ;;  %v3331_v38 = vadd.f32 %v7121_v63, %v3200_v32  ;;  %v8561_v32 = vld [vmem:[#allocation36_spill] sm:$0xff] }
 0x195   : > { %v1932_v33 = vsel %vm1916_vm2, %v8557_v26, %v8556_v20  ;;  %v4117_v9 = vcombine.high %v3765_v13, %v3765_v13  ;;  %v4124_v45 = vrot.slane %v3765_v13, %v5882_v59  ;;  %5334 = vst.msk [vmem:[%s7230_s27 + $0x98] sm:$0xff] %vm281_vm0, %v5078_v42  ;;  %v4494_v1 = vadd.f32 %v3861_v29, %v3267_v25  ;;  %v8567_v20 = vld [vmem:[#allocation53_spill] sm:$0xff] }
 0x196   : > { %v4773_v57 = vcombine.low %v4491_v18, %v4492_v23  ;;  %v3276_v36 = vadd.f32 %v5905_v14, %v1929_v7  ;;  %v3614_v37 = vadd.f32 %v8558_v8, %v7105_v56  ;;  %v8560_v60 = vrot.slane %v8559_v47, %v5886_v2 }
 0x197   : > { %v4131_v22 = vrot.slane %v4117_v9, %v5882_v59  ;;  %v4132_v44 = vcombine.high %v4124_v45, %v4124_v45  ;;  %v4555_v5 = vadd.f32 %v4124_v45, %v3328_v40  ;;  %v4774_v17 = vcombine.low %v4493_v11, %v4494_v1  ;;  %v8565_v40 = vld [vmem:[#allocation50_spill] sm:$0xff] }
 0x198   : > { %v1961_v58 = vsel %vm1916_vm2, %v8561_v32, %v8560_v60  ;;  %v4781_v3 = vrot.slane %v4773_v57, %v5882_v59  ;;  %v3752_v25 = vmax.f32 %v3614_v37, 0.0  ;;  %v8563_v7 = vrot.slane %v8562_v10, %v5886_v2  ;;  %v7433_v57 = vpop.f32.mrb[30].mxu0 }
 0x199   : > { %v4133_v50 = vcombine.high %v4131_v22, %v4131_v22  ;;  %v4556_v61 = vadd.f32 %v4132_v44, %v3329_v41  ;;  %v4557_v48 = vadd.f32 %v4131_v22, %v3330_v30  ;;  %v8566_v51 = vcombine.high %v8561_v32, %v8561_v32 }
 0x19a   : > { %v1962_v34 = vsel %vm1916_vm2, %v8564_v6, %v8563_v7  ;;  %v4788_v13 = vrot.slane %v4774_v17, %v5882_v59  ;;  %v3896_v49 = vcombine.high %v3752_v25, %v3752_v25  ;;  %v3903_v19 = vrot.slane %v3752_v25, %v5882_v59  ;;  %v8572_v17 = vld [vmem:[#allocation2_spill] sm:$0xff]  ;;  %v8573_v25 = vld [vmem:[#allocation7_spill] sm:$0xff] }
 0x19b   : > { %v1963_v18 = vsel %vm1916_vm2, %v8566_v51, %v8565_v40  ;;  %v8568_v26 = vcombine.high %v8564_v6, %v8564_v6  ;;  %v4558_v41 = vadd.f32 %v4133_v50, %v3331_v38  ;;  %v5045_v29 = vcombine.low %v4555_v5, %v4556_v61  ;;  %v8576_v7 = vld [vmem:[#allocation10_spill] sm:$0xff]  ;;  %v8578_v51 = vld [vmem:[#allocation11_spill] sm:$0xff] }
 0x19c   : > { %v3277_v23 = vadd.f32 %v7100_v21, %v1930_v27  ;;  %v3278_v11 = vadd.f32 %v7087_v16, %v1931_v54  ;;  %v4789_v30 = vcombine.low %v4781_v3, %v4788_v13  ;;  %v3910_v9 = vrot.slane %v3896_v49, %v5882_v59  ;;  %v8569_v54 = vld [vmem:[#allocation88_spill] sm:$0xff] }
 0x19d   : > { %v1964_v42 = vsel %vm1916_vm2, %v8568_v26, %v8567_v20  ;;  %v3911_v45 = vcombine.high %v3903_v19, %v3903_v19  ;;  %v4503_v1 = vadd.f32 %v3903_v19, %v3276_v36  ;;  %v5046_v8 = vcombine.low %v4557_v48, %v4558_v41  ;;  %v8570_v36 = vld [vmem:[#allocation3_spill] sm:$0xff] }
 0x19e   : > { %v5053_v37 = vrot.slane %v5045_v29, %v5882_v59  ;;  %v3279_v22 = vadd.f32 %v7121_v63, %v1932_v33  ;;  %v3340_v44 = vadd.f32 %v5905_v14, %v1961_v58  ;;  %5317 = vst.msk [vmem:[%s7230_s27 + $0x10] sm:$0xff] %vm281_vm0, %v4789_v30  ;;  %v3912_v38 = vcombine.high %v3910_v9, %v3910_v9  ;;  %v8575_v58 = vld [vmem:[#allocation5_spill] sm:$0xff]  ;;  %v7466_v29 = vpop.f32.mrb[30].mxu1 }
 0x19f   : > { %v4504_v27 = vadd.f32 %v3911_v45, %v3277_v23  ;;  %v4505_v5 = vadd.f32 %v3910_v9, %v3278_v11  ;;  %v3694_v47 = vadd.f32 %v8569_v54, %v7105_v56  ;;  %v5060_v60 = vrot.slane %v5046_v8, %v5882_v59 }
 0x1a0   : > { %v8571_v32 = vrot.slane %v8570_v36, %v5886_v2  ;;  %v8574_v33 = vrot.slane %v8573_v25, %v5886_v2  ;;  %v8577_v6 = vcombine.high %v8572_v17, %v8572_v17  ;;  %v4506_v61 = vadd.f32 %v3912_v38, %v3279_v22  ;;  %v8584_v22 = vld [vmem:[#allocation45_spill] sm:$0xff] }
 0x1a1   : > { %v4824_v48 = vcombine.low %v4503_v1, %v4504_v27  ;;  %v3768_v40 = vmax.f32 %v3694_v47, 0.0  ;;  %v8579_v13 = vcombine.high %v8575_v58, %v8575_v58  ;;  %v5061_v19 = vcombine.low %v5053_v37, %v5060_v60  ;;  %v8580_v1 = vld [vmem:[#allocation98_spill] sm:$0xff]  ;;  %v8586_v27 = vld [vmem:[#allocation39_spill] sm:$0xff] }
 0x1a2   : > { %v1925_v3 = vsel %vm1916_vm2, %v8572_v17, %v8571_v32  ;;  %v1926_v10 = vsel %vm1916_vm2, %v8575_v58, %v8574_v33  ;;  %v1927_v50 = vsel %vm1916_vm2, %v8577_v6, %v8576_v7  ;;  %v3341_v20 = vadd.f32 %v7100_v21, %v1962_v34  ;;  %v8581_v34 = vld [vmem:[#allocation43_spill] sm:$0xff]  ;;  %v8583_v37 = vld [vmem:[#allocation34_spill] sm:$0xff]  ;;  %v8589_v58 = vld [vmem:[#allocation52_spill] sm:$0xff] }
 0x1a3   : > { %v1928_v49 = vsel %vm1916_vm2, %v8579_v13, %v8578_v51  ;;  %v3342_v26 = vadd.f32 %v7087_v16, %v1963_v18  ;;  %v3343_v41 = vadd.f32 %v7121_v63, %v1964_v42  ;;  %v4825_v23 = vcombine.low %v4505_v5, %v4506_v61  ;;  %5333 = vst.msk [vmem:[%s7230_s27 + $0x90] sm:$0xff] %vm281_vm0, %v5061_v19 }
 0x1a4   : > { %v4168_v11 = vcombine.high %v3768_v40, %v3768_v40  ;;  %v4175_v30 = vrot.slane %v3768_v40, %v5882_v59  ;;  %v3272_v9 = vadd.f32 %v5905_v14, %v1925_v3  ;;  %v4832_v45 = vrot.slane %v4824_v48, %v5882_v59  ;;  %v8587_v3 = vld [vmem:[#allocation49_spill] sm:$0xff] }
 0x1a5   : > { %v3609_v8 = vadd.f32 %v7105_v56, %v8580_v1  ;;  %v8582_v18 = vrot.slane %v8581_v34, %v5886_v2  ;;  %v8585_v38 = vrot.slane %v8584_v22, %v5886_v2  ;;  %v4839_v54 = vrot.slane %v4825_v23, %v5882_v59 }
 0x1a6   : > { %v4182_v47 = vrot.slane %v4168_v11, %v5882_v59  ;;  %v4183_v60 = vcombine.high %v4175_v30, %v4175_v30  ;;  %v4567_v36 = vadd.f32 %v4175_v30, %v3340_v44  ;;  %v3273_v32 = vadd.f32 %v7100_v21, %v1926_v10  ;;  %v7498_v44 = vpop.f32.mrb[31].mxu0 }
 0x1a7   : > { %v1957_v42 = vsel %vm1916_vm2, %v8583_v37, %v8582_v18  ;;  %v1958_v5 = vsel %vm1916_vm2, %v8586_v27, %v8585_v38  ;;  %v3751_v17 = vmax.f32 %v3609_v8, 0.0  ;;  %v8588_v25 = vcombine.high %v8583_v37, %v8583_v37  ;;  %v8591_v8 = vld [vmem:[#allocation103_spill] sm:$0xff]  ;;  %v8592_v18 = vld [vmem:[#allocation89_spill] sm:$0xff] }
 0x1a8   : > { %v8590_v7 = vcombine.high %v8586_v27, %v8586_v27  ;;  %v4840_v61 = vcombine.low %v4832_v45, %v4839_v54  ;;  %v4184_v48 = vcombine.high %v4182_v47, %v4182_v47  ;;  %v4568_v40 = vadd.f32 %v4183_v60, %v3341_v20  ;;  %v8595_v27 = vld [vmem:[#allocation91_spill] sm:$0xff]  ;;  %v8597_v54 = vld [vmem:[#allocation86_spill] sm:$0xff] }
 0x1a9   : > { %v1959_v33 = vsel %vm1916_vm2, %v8588_v25, %v8587_v3  ;;  %v4569_v51 = vadd.f32 %v4182_v47, %v3342_v26  ;;  %v3274_v10 = vadd.f32 %v7087_v16, %v1927_v50  ;;  %v3275_v13 = vadd.f32 %v7121_v63, %v1928_v49  ;;  %v8594_v49 = vld [vmem:[#allocation81_spill] sm:$0xff] }
 0x1aa   : > { %v1960_v6 = vsel %vm1916_vm2, %v8590_v7, %v8589_v58  ;;  %v3879_v19 = vcombine.high %v3751_v17, %v3751_v17  ;;  %v3886_v23 = vrot.slane %v3751_v17, %v5882_v59  ;;  %5320 = vst.msk [vmem:[%s7230_s27 + $0x28] sm:$0xff] %vm281_vm0, %v4840_v61  ;;  %v4570_v11 = vadd.f32 %v4184_v48, %v3343_v41  ;;  %v8600_v48 = vld [vmem:[#allocation100_spill] sm:$0xff] }
 0x1ab   : > { %v5096_v30 = vcombine.low %v4567_v36, %v4568_v40  ;;  %v3336_v1 = vadd.f32 %v5905_v14, %v1957_v42  ;;  %v3689_v45 = vadd.f32 %v7105_v56, %v8591_v8  ;;  %v8593_v50 = vrot.slane %v8592_v18, %v5886_v2 }
 0x1ac   : > { %v3893_v20 = vrot.slane %v3879_v19, %v5882_v59  ;;  %v3894_v26 = vcombine.high %v3886_v23, %v3886_v23  ;;  %v4499_v34 = vadd.f32 %v3886_v23, %v3272_v9  ;;  %v5097_v22 = vcombine.low %v4569_v51, %v4570_v11  ;;  %v8598_v9 = vld [vmem:[#allocation96_spill] sm:$0xff] }
 0x1ad   : > { %v3177_v37 = vsel %vm1916_vm2, %v8594_v49, %v8593_v50  ;;  %v5104_v38 = vrot.slane %v5096_v30, %v5882_v59  ;;  %v3767_v41 = vmax.f32 %v3689_v45, 0.0  ;;  %v8596_v42 = vrot.slane %v8595_v27, %v5886_v2  ;;  %v8605_v27 = vld [vmem:[#allocation128_spill] sm:$0xff] }
 0x1ae   : > { %v3895_v60 = vcombine.high %v3893_v20, %v3893_v20  ;;  %v4500_v36 = vadd.f32 %v3894_v26, %v3273_v32  ;;  %v4501_v17 = vadd.f32 %v3893_v20, %v3274_v10  ;;  %v8599_v3 = vcombine.high %v8594_v49, %v8594_v49  ;;  %v7535_v20 = vpop.f32.mrb[31].mxu1 }
 0x1af   : > { %v3178_v47 = vsel %vm1916_vm2, %v8597_v54, %v8596_v42  ;;  %v5111_v58 = vrot.slane %v5097_v22, %v5882_v59  ;;  %v4151_v7 = vcombine.high %v3767_v41, %v3767_v41  ;;  %v4158_v61 = vrot.slane %v3767_v41, %v5882_v59 }
 0x1b0   : > { %v3179_v25 = vsel %vm1916_vm2, %v8599_v3, %v8598_v9  ;;  %v8601_v40 = vcombine.high %v8597_v54, %v8597_v54  ;;  %v4502_v32 = vadd.f32 %v3895_v60, %v3275_v13  ;;  %v4807_v10 = vcombine.low %v4499_v34, %v4500_v36  ;;  %v8608_v54 = vld [vmem:[#allocation135_spill] sm:$0xff]  ;;  %v8609_v36 = vld [vmem:[#allocation141_spill] sm:$0xff] }
 0x1b1   : > { %v3337_v19 = vadd.f32 %v7100_v21, %v1958_v5  ;;  %v3338_v23 = vadd.f32 %v7087_v16, %v1959_v33  ;;  %v5112_v11 = vcombine.low %v5104_v38, %v5111_v58  ;;  %v4165_v30 = vrot.slane %v4151_v7, %v5882_v59  ;;  %v8602_v33 = vld [vmem:[#allocation110_spill] sm:$0xff] }
 0x1b2   : > { %v3180_v51 = vsel %vm1916_vm2, %v8601_v40, %v8600_v48  ;;  %v4166_v8 = vcombine.high %v4158_v61, %v4158_v61  ;;  %v4563_v45 = vadd.f32 %v4158_v61, %v3336_v1  ;;  %v4808_v26 = vcombine.low %v4501_v17, %v4502_v32  ;;  %v8603_v1 = vld [vmem:[#allocation132_spill] sm:$0xff]  ;;  %v8611_v61 = vld [vmem:[#allocation145_spill] sm:$0xff] }
 0x1b3   : > { %v4815_v18 = vrot.slane %v4807_v10, %v5882_v59  ;;  %v3339_v50 = vadd.f32 %v7121_v63, %v1960_v6  ;;  %v3284_v49 = vadd.f32 %v5905_v14, %v3177_v37  ;;  %5336 = vst.msk [vmem:[%s7230_s27 + $0xa8] sm:$0xff] %vm281_vm0, %v5112_v11  ;;  %v4167_v13 = vcombine.high %v4165_v30, %v4165_v30  ;;  %v8606_v6 = vld [vmem:[#allocation138_spill] sm:$0xff] }
 0x1b4   : > { %v4564_v5 = vadd.f32 %v4166_v8, %v3337_v19  ;;  %v4565_v34 = vadd.f32 %v4165_v30, %v3338_v23  ;;  %v3624_v22 = vadd.f32 %v8602_v33, %v7105_v56  ;;  %v4822_v38 = vrot.slane %v4808_v26, %v5882_v59  ;;  %v8619_v33 = vld [vmem:[#allocation82_spill] sm:$0xff] }
 0x1b5   : > { %v8604_v41 = vrot.slane %v8603_v1, %v5886_v2  ;;  %v8607_v37 = vrot.slane %v8606_v6, %v5886_v2  ;;  %v8610_v17 = vcombine.high %v8605_v27, %v8605_v27  ;;  %v4566_v3 = vadd.f32 %v4167_v13, %v3339_v50  ;;  %v8613_v50 = vld [vmem:[#allocation123_spill] sm:$0xff] }
 0x1b6   : > { %v5079_v58 = vcombine.low %v4563_v45, %v4564_v5  ;;  %v3754_v7 = vmax.f32 %v3624_v22, 0.0  ;;  %v8612_v48 = vcombine.high %v8608_v54, %v8608_v54  ;;  %v4823_v32 = vcombine.low %v4815_v18, %v4822_v38  ;;  %v8614_v18 = vld [vmem:[#allocation87_spill] sm:$0xff]  ;;  %v8616_v5 = vld [vmem:[#allocation80_spill] sm:$0xff] }
 0x1b7   : > { %v3209_v42 = vsel %vm1916_vm2, %v8605_v27, %v8604_v41  ;;  %v3210_v60 = vsel %vm1916_vm2, %v8608_v54, %v8607_v37  ;;  %v3211_v9 = vsel %vm1916_vm2, %v8610_v17, %v8609_v36  ;;  %v3285_v10 = vadd.f32 %v7100_v21, %v3178_v47  ;;  %v8620_v37 = vld [vmem:[#allocation93_spill] sm:$0xff]  ;;  %v8622_v17 = vld [vmem:[#allocation95_spill] sm:$0xff] }
 0x1b8   : > { %v3212_v40 = vsel %vm1916_vm2, %v8612_v48, %v8611_v61  ;;  %v3286_v19 = vadd.f32 %v7087_v16, %v3179_v25  ;;  %v3287_v23 = vadd.f32 %v7121_v63, %v3180_v51  ;;  %v5080_v11 = vcombine.low %v4565_v34, %v4566_v3  ;;  %5319 = vst.msk [vmem:[%s7230_s27 + $0x20] sm:$0xff] %vm281_vm0, %v4823_v32  ;;  %v8617_v51 = vld [vmem:[#allocation90_spill] sm:$0xff] }
 0x1b9   : > { %v3930_v30 = vcombine.high %v3754_v7, %v3754_v7  ;;  %v3937_v8 = vrot.slane %v3754_v7, %v5882_v59  ;;  %v3348_v45 = vadd.f32 %v5905_v14, %v3209_v42  ;;  %v5087_v26 = vrot.slane %v5079_v58, %v5882_v59 }
 0x1ba   : > { %v3704_v13 = vadd.f32 %v8613_v50, %v7105_v56  ;;  %v8615_v47 = vrot.slane %v8614_v18, %v5886_v2  ;;  %v8618_v34 = vrot.slane %v8617_v51, %v5886_v2  ;;  %v5094_v38 = vrot.slane %v5080_v11, %v5882_v59  ;;  %v8624_v18 = vld [vmem:[#allocation127_spill] sm:$0xff] }
 0x1bb   : > { %v3944_v1 = vrot.slane %v3930_v30, %v5882_v59  ;;  %v3945_v41 = vcombine.high %v3937_v8, %v3937_v8  ;;  %v4511_v27 = vadd.f32 %v3937_v8, %v3284_v49  ;;  %v3349_v42 = vadd.f32 %v7100_v21, %v3210_v60 }
 0x1bc   : > { %v3173_v25 = vsel %vm1916_vm2, %v8616_v5, %v8615_v47  ;;  %v3174_v22 = vsel %vm1916_vm2, %v8619_v33, %v8618_v34  ;;  %v3770_v6 = vmax.f32 %v3704_v13, 0.0  ;;  %v8621_v54 = vcombine.high %v8616_v5, %v8616_v5  ;;  %v8625_v5 = vld [vmem:[#allocation131_spill] sm:$0xff] }
 0x1bd   : > { %v8623_v3 = vcombine.high %v8619_v33, %v8619_v33  ;;  %v5095_v7 = vcombine.low %v5087_v26, %v5094_v38  ;;  %v3946_v61 = vcombine.high %v3944_v1, %v3944_v1  ;;  %v4512_v48 = vadd.f32 %v3945_v41, %v3285_v10  ;;  %v8628_v38 = vld [vmem:[#allocation136_spill] sm:$0xff] }
 0x1be   : > { %v3175_v36 = vsel %vm1916_vm2, %v8621_v54, %v8620_v37  ;;  %v4513_v32 = vadd.f32 %v3944_v1, %v3286_v19  ;;  %v3350_v49 = vadd.f32 %v7087_v16, %v3211_v9  ;;  %v3351_v60 = vadd.f32 %v7121_v63, %v3212_v40  ;;  %v8627_v40 = vld [vmem:[#allocation126_spill] sm:$0xff]  ;;  %v8630_v1 = vld [vmem:[#allocation129_spill] sm:$0xff] }
 0x1bf   : > { %v3176_v58 = vsel %vm1916_vm2, %v8623_v3, %v8622_v17  ;;  %v4202_v11 = vcombine.high %v3770_v6, %v3770_v6  ;;  %v4209_v30 = vrot.slane %v3770_v6, %v5882_v59  ;;  %5335 = vst.msk [vmem:[%s7230_s27 + $0xa0] sm:$0xff] %vm281_vm0, %v5095_v7  ;;  %v4514_v8 = vadd.f32 %v3946_v61, %v3287_v23 }
 0x1c0   : > { %v4858_v50 = vcombine.low %v4511_v27, %v4512_v48  ;;  %v3280_v13 = vadd.f32 %v5905_v14, %v3173_v25  ;;  %v3619_v47 = vadd.f32 %v7105_v56, %v8624_v18  ;;  %v8626_v9 = vrot.slane %v8625_v5, %v5886_v2  ;;  %v8633_v48 = vld [vmem:[#allocation144_spill] sm:$0xff] }
 0x1c1   : > { %v4216_v26 = vrot.slane %v4202_v11, %v5882_v59  ;;  %v4217_v10 = vcombine.high %v4209_v30, %v4209_v30  ;;  %v4575_v19 = vadd.f32 %v4209_v30, %v3348_v45  ;;  %v4859_v34 = vcombine.low %v4513_v32, %v4514_v8  ;;  %v8631_v45 = vld [vmem:[#allocation140_spill] sm:$0xff] }
 0x1c2   : > { %v3205_v51 = vsel %vm1916_vm2, %v8627_v40, %v8626_v9  ;;  %v4866_v33 = vrot.slane %v4858_v50, %v5882_v59  ;;  %v3753_v23 = vmax.f32 %v3619_v47, 0.0  ;;  %v8629_v25 = vrot.slane %v8628_v38, %v5886_v2  ;;  %v8638_v38 = vld [vmem:[#allocation25_spill] sm:$0xff] }
 0x1c3   : > { %v4218_v27 = vcombine.high %v4216_v26, %v4216_v26  ;;  %v4576_v6 = vadd.f32 %v4217_v10, %v3349_v42  ;;  %v4577_v37 = vadd.f32 %v4216_v26, %v3350_v49  ;;  %v8632_v54 = vcombine.high %v8627_v40, %v8627_v40 }
 0x1c4   : > { %v3206_v41 = vsel %vm1916_vm2, %v8630_v1, %v8629_v25  ;;  %v4873_v3 = vrot.slane %v4859_v34, %v5882_v59  ;;  %v3913_v7 = vcombine.high %v3753_v23, %v3753_v23  ;;  %v3920_v61 = vrot.slane %v3753_v23, %v5882_v59  ;;  %v8636_v23 = vld [vmem:[#allocation31_spill] sm:$0xff] }
 0x1c5   : > { %v3207_v17 = vsel %vm1916_vm2, %v8632_v54, %v8631_v45  ;;  %v8634_v32 = vcombine.high %v8630_v1, %v8630_v1  ;;  %v4578_v42 = vadd.f32 %v4218_v27, %v3351_v60  ;;  %v5130_v49 = vcombine.low %v4575_v19, %v4576_v6  ;;  %v8641_v1 = vld [vmem:[#allocation29_spill] sm:$0xff]  ;;  %v8642_v6 = vld [vmem:[#allocation38_spill] sm:$0xff] }
 0x1c6   : > { %v3281_v30 = vadd.f32 %v7100_v21, %v3174_v22  ;;  %v3282_v8 = vadd.f32 %v7087_v16, %v3175_v36  ;;  %v4874_v50 = vcombine.low %v4866_v33, %v4873_v3  ;;  %v3927_v18 = vrot.slane %v3913_v7, %v5882_v59  ;;  %v8635_v22 = vld [vmem:[#allocation139_spill] sm:$0xff] }
 0x1c7   : > { %v3208_v11 = vsel %vm1916_vm2, %v8634_v32, %v8633_v48  ;;  %v3928_v47 = vcombine.high %v3920_v61, %v3920_v61  ;;  %v4507_v26 = vadd.f32 %v3920_v61, %v3280_v13  ;;  %v5131_v10 = vcombine.low %v4577_v37, %v4578_v42  ;;  %v8644_v61 = vld [vmem:[#allocation42_spill] sm:$0xff] }
 0x1c8   : > { %v5138_v5 = vrot.slane %v5130_v49, %v5882_v59  ;;  %v3283_v9 = vadd.f32 %v7121_v63, %v3176_v58  ;;  %v3344_v40 = vadd.f32 %v5905_v14, %v3205_v51  ;;  %5322 = vst.msk [vmem:[%s7230_s27 + $0x38] sm:$0xff] %vm281_vm0, %v4874_v50  ;;  %v3929_v60 = vcombine.high %v3927_v18, %v3927_v18  ;;  %v8639_v58 = vld [vmem:[#allocation33_spill] sm:$0xff] }
 0x1c9   : > { %v4508_v19 = vadd.f32 %v3928_v47, %v3281_v30  ;;  %v4509_v34 = vadd.f32 %v3927_v18, %v3282_v8  ;;  %v3699_v36 = vadd.f32 %v7105_v56, %v8635_v22  ;;  %v5145_v33 = vrot.slane %v5131_v10, %v5882_v59  ;;  %v8652_v22 = vld [vmem:[#allocation76_spill] sm:$0xff] }
 0x1ca   : > { %v8637_v13 = vrot.slane %v8636_v23, %v5886_v2  ;;  %v8640_v51 = vrot.slane %v8639_v58, %v5886_v2  ;;  %v8643_v37 = vcombine.high %v8638_v38, %v8638_v38  ;;  %v4510_v54 = vadd.f32 %v3929_v60, %v3283_v9  ;;  %v8646_v9 = vld [vmem:[#allocation146_spill] sm:$0xff] }
 0x1cb   : > { %v4841_v3 = vcombine.low %v4507_v26, %v4508_v19  ;;  %v3769_v7 = vmax.f32 %v3699_v36, 0.0  ;;  %v8645_v48 = vcombine.high %v8641_v1, %v8641_v1  ;;  %v5146_v42 = vcombine.low %v5138_v5, %v5145_v33  ;;  %v8647_v5 = vld [vmem:[#allocation72_spill] sm:$0xff]  ;;  %v8649_v19 = vld [vmem:[#allocation70_spill] sm:$0xff] }
 0x1cc   : > { %v1937_v25 = vsel %vm1916_vm2, %v8638_v38, %v8637_v13  ;;  %v1938_v27 = vsel %vm1916_vm2, %v8641_v1, %v8640_v51  ;;  %v1939_v45 = vsel %vm1916_vm2, %v8643_v37, %v8642_v6  ;;  %v3345_v49 = vadd.f32 %v7100_v21, %v3206_v41  ;;  %v8653_v51 = vld [vmem:[#allocation84_spill] sm:$0xff]  ;;  %v8655_v37 = vld [vmem:[#allocation85_spill] sm:$0xff] }
 0x1cd   : > { %v1940_v32 = vsel %vm1916_vm2, %v8645_v48, %v8644_v61  ;;  %v3346_v30 = vadd.f32 %v7087_v16, %v3207_v17  ;;  %v3347_v8 = vadd.f32 %v7121_v63, %v3208_v11  ;;  %v4842_v50 = vcombine.low %v4509_v34, %v4510_v54  ;;  %5338 = vst.msk [vmem:[%s7230_s27 + $0xb8] sm:$0xff] %vm281_vm0, %v5146_v42  ;;  %v8650_v11 = vld [vmem:[#allocation77_spill] sm:$0xff] }
 0x1ce   : > { %v4185_v18 = vcombine.high %v3769_v7, %v3769_v7  ;;  %v4192_v47 = vrot.slane %v3769_v7, %v5882_v59  ;;  %v3292_v26 = vadd.f32 %v5905_v14, %v1937_v25  ;;  %v4849_v10 = vrot.slane %v4841_v3, %v5882_v59 }
 0x1cf   : > { %v3634_v60 = vadd.f32 %v8646_v9, %v7105_v56  ;;  %v8648_v41 = vrot.slane %v8647_v5, %v5886_v2  ;;  %v8651_v34 = vrot.slane %v8650_v11, %v5886_v2  ;;  %v4856_v33 = vrot.slane %v4842_v50, %v5882_v59  ;;  %v8657_v5 = vld [vmem:[#allocation151_spill] sm:$0xff] }
 0x1d0   : > { %v4199_v23 = vrot.slane %v4185_v18, %v5882_v59  ;;  %v4200_v13 = vcombine.high %v4192_v47, %v4192_v47  ;;  %v4571_v38 = vadd.f32 %v4192_v47, %v3344_v40  ;;  %v3293_v25 = vadd.f32 %v7100_v21, %v1938_v27 }
 0x1d1   : > { %v1969_v17 = vsel %vm1916_vm2, %v8649_v19, %v8648_v41  ;;  %v1970_v36 = vsel %vm1916_vm2, %v8652_v22, %v8651_v34  ;;  %v3756_v58 = vmax.f32 %v3634_v60, 0.0  ;;  %v8654_v1 = vcombine.high %v8649_v19, %v8649_v19  ;;  %v8658_v19 = vld [vmem:[#allocation30_spill] sm:$0xff] }
 0x1d2   : > { %v8656_v54 = vcombine.high %v8652_v22, %v8652_v22  ;;  %v4857_v7 = vcombine.low %v4849_v10, %v4856_v33  ;;  %v4201_v61 = vcombine.high %v4199_v23, %v4199_v23  ;;  %v4572_v48 = vadd.f32 %v4200_v13, %v3345_v49  ;;  %v8661_v33 = vld [vmem:[#allocation32_spill] sm:$0xff] }
 0x1d3   : > { %v1971_v6 = vsel %vm1916_vm2, %v8654_v1, %v8653_v51  ;;  %v4573_v42 = vadd.f32 %v4199_v23, %v3346_v30  ;;  %v3294_v40 = vadd.f32 %v7087_v16, %v1939_v45  ;;  %v3295_v27 = vadd.f32 %v7121_v63, %v1940_v32  ;;  %v8660_v32 = vld [vmem:[#allocation24_spill] sm:$0xff] }
 0x1d4   : > { %v1972_v3 = vsel %vm1916_vm2, %v8656_v54, %v8655_v37  ;;  %v3964_v50 = vcombine.high %v3756_v58, %v3756_v58  ;;  %v3971_v18 = vrot.slane %v3756_v58, %v5882_v59  ;;  %5321 = vst.msk [vmem:[%s7230_s27 + $0x30] sm:$0xff] %vm281_vm0, %v4857_v7  ;;  %v4574_v47 = vadd.f32 %v4201_v61, %v3347_v8  ;;  %v8663_v23 = vld [vmem:[#allocation28_spill] sm:$0xff] }
 0x1d5   : > { %v5113_v9 = vcombine.low %v4571_v38, %v4572_v48  ;;  %v3356_v60 = vadd.f32 %v5905_v14, %v1969_v17  ;;  %v3714_v41 = vadd.f32 %v8657_v5, %v7105_v56  ;;  %v8659_v45 = vrot.slane %v8658_v19, %v5886_v2  ;;  %v8666_v48 = vld [vmem:[#allocation41_spill] sm:$0xff] }
 0x1d6   : > { %v3978_v10 = vrot.slane %v3964_v50, %v5882_v59  ;;  %v3979_v49 = vcombine.high %v3971_v18, %v3971_v18  ;;  %v4519_v30 = vadd.f32 %v3971_v18, %v3292_v26  ;;  %v5114_v34 = vcombine.low %v4573_v42, %v4574_v47  ;;  %v8664_v26 = vld [vmem:[#allocation35_spill] sm:$0xff] }
 0x1d7   : > { %v1933_v11 = vsel %vm1916_vm2, %v8660_v32, %v8659_v45  ;;  %v5121_v22 = vrot.slane %v5113_v9, %v5882_v59  ;;  %v3772_v8 = vmax.f32 %v3714_v41, 0.0  ;;  %v8662_v17 = vrot.slane %v8661_v33, %v5886_v2  ;;  %v8671_v33 = vld [vmem:[#allocation68_spill] sm:$0xff] }
 0x1d8   : > { %v3980_v38 = vcombine.high %v3978_v10, %v3978_v10  ;;  %v4520_v58 = vadd.f32 %v3979_v49, %v3293_v25  ;;  %v4521_v51 = vadd.f32 %v3978_v10, %v3294_v40  ;;  %v8665_v1 = vcombine.high %v8660_v32, %v8660_v32 }
 0x1d9   : > { %v1934_v13 = vsel %vm1916_vm2, %v8663_v23, %v8662_v17  ;;  %v5128_v54 = vrot.slane %v5114_v34, %v5882_v59  ;;  %v4236_v7 = vcombine.high %v3772_v8, %v3772_v8  ;;  %v4243_v61 = vrot.slane %v3772_v8, %v5882_v59  ;;  %v8669_v8 = vld [vmem:[#allocation69_spill] sm:$0xff] }
 0x1da   : > { %v1935_v37 = vsel %vm1916_vm2, %v8665_v1, %v8664_v26  ;;  %v8667_v42 = vcombine.high %v8663_v23, %v8663_v23  ;;  %v4522_v25 = vadd.f32 %v3980_v38, %v3295_v27  ;;  %v4892_v40 = vcombine.low %v4519_v30, %v4520_v58  ;;  %v8674_v23 = vld [vmem:[#allocation71_spill] sm:$0xff] }
 0x1db   : > { %v3357_v18 = vadd.f32 %v7100_v21, %v1970_v36  ;;  %v3358_v47 = vadd.f32 %v7087_v16, %v1971_v6  ;;  %v5129_v9 = vcombine.low %v5121_v22, %v5128_v54  ;;  %v4250_v5 = vrot.slane %v4236_v7, %v5882_v59  ;;  %v8668_v36 = vld [vmem:[#allocation157_spill] sm:$0xff]  ;;  %v8675_v58 = vld [vmem:[#allocation79_spill] sm:$0xff] }
 0x1dc   : > { %v1936_v50 = vsel %vm1916_vm2, %v8667_v42, %v8666_v48  ;;  %v4251_v41 = vcombine.high %v4243_v61, %v4243_v61  ;;  %v4583_v10 = vadd.f32 %v4243_v61, %v3356_v60  ;;  %v4893_v49 = vcombine.low %v4521_v51, %v4522_v25  ;;  %v8677_v61 = vld [vmem:[#allocation83_spill] sm:$0xff] }
 0x1dd   : > { %v4900_v19 = vrot.slane %v4892_v40, %v5882_v59  ;;  %v3359_v45 = vadd.f32 %v7121_v63, %v1972_v3  ;;  %v3288_v32 = vadd.f32 %v5905_v14, %v1933_v11  ;;  %5337 = vst.msk [vmem:[%s7230_s27 + $0xb0] sm:$0xff] %vm281_vm0, %v5129_v9  ;;  %v4252_v27 = vcombine.high %v4250_v5, %v4250_v5  ;;  %v8672_v3 = vld [vmem:[#allocation73_spill] sm:$0xff] }
 0x1de   : > { %v4584_v30 = vadd.f32 %v4251_v41, %v3357_v18  ;;  %v4585_v34 = vadd.f32 %v4250_v5, %v3358_v47  ;;  %v3629_v6 = vadd.f32 %v7105_v56, %v8668_v36  ;;  %v4907_v22 = vrot.slane %v4893_v49, %v5882_v59 }
 0x1df   : > { %v8670_v60 = vrot.slane %v8669_v8, %v5886_v2  ;;  %v8673_v11 = vrot.slane %v8672_v3, %v5886_v2  ;;  %v8676_v51 = vcombine.high %v8671_v33, %v8671_v33  ;;  %v4586_v1 = vadd.f32 %v4252_v27, %v3359_v45  ;;  %v8681_v27 = vld [vmem:[#allocation115_spill] sm:$0xff] }
 0x1e0   : > { %v5164_v54 = vcombine.low %v4583_v10, %v4584_v30  ;;  %v3755_v7 = vmax.f32 %v3629_v6, 0.0  ;;  %v8678_v48 = vcombine.high %v8674_v23, %v8674_v23  ;;  %v4908_v25 = vcombine.low %v4900_v19, %v4907_v22  ;;  %v8679_v19 = vld [vmem:[#allocation122_spill] sm:$0xff] }
 0x1e1   : > { %v1965_v17 = vsel %vm1916_vm2, %v8671_v33, %v8670_v60  ;;  %v1966_v38 = vsel %vm1916_vm2, %v8674_v23, %v8673_v11  ;;  %v1967_v26 = vsel %vm1916_vm2, %v8676_v51, %v8675_v58  ;;  %v3289_v40 = vadd.f32 %v7100_v21, %v1934_v13  ;;  %v8687_v23 = vld [vmem:[#allocation137_spill] sm:$0xff] }
 0x1e2   : > { %v1968_v42 = vsel %vm1916_vm2, %v8678_v48, %v8677_v61  ;;  %v3290_v18 = vadd.f32 %v7087_v16, %v1935_v37  ;;  %v3291_v47 = vadd.f32 %v7121_v63, %v1936_v50  ;;  %v5165_v9 = vcombine.low %v4585_v34, %v4586_v1  ;;  %5324 = vst.msk [vmem:[%s7230_s27 + $0x48] sm:$0xff] %vm281_vm0, %v4908_v25  ;;  %v8682_v50 = vld [vmem:[#allocation125_spill] sm:$0xff]  ;;  %v8684_v34 = vld [vmem:[#allocation118_spill] sm:$0xff] }
 0x1e3   : > { %v3947_v5 = vcombine.high %v3755_v7, %v3755_v7  ;;  %v3954_v41 = vrot.slane %v3755_v7, %v5882_v59  ;;  %v3352_v10 = vadd.f32 %v5905_v14, %v1965_v17  ;;  %v5172_v49 = vrot.slane %v5164_v54, %v5882_v59  ;;  %v8685_v17 = vld [vmem:[#allocation134_spill] sm:$0xff] }
 0x1e4   : > { %v3709_v45 = vadd.f32 %v7105_v56, %v7089_v24  ;;  %v8680_v13 = vrot.slane %v8679_v19, %v5886_v2  ;;  %v8683_v30 = vrot.slane %v8682_v50, %v5886_v2  ;;  %v5179_v6 = vrot.slane %v5165_v9, %v5882_v59 }
 0x1e5   : > { %v3961_v22 = vrot.slane %v3947_v5, %v5882_v59  ;;  %v3962_v8 = vcombine.high %v3954_v41, %v3954_v41  ;;  %v4515_v60 = vadd.f32 %v3954_v41, %v3288_v32  ;;  %v3353_v24 = vadd.f32 %v7100_v21, %v1966_v38 }
 0x1e6   : > { %v3185_v37 = vsel %vm1916_vm2, %v8681_v27, %v8680_v13  ;;  %v3186_v36 = vsel %vm1916_vm2, %v8684_v34, %v8683_v30  ;;  %v3771_v33 = vmax.f32 %v3709_v45, 0.0  ;;  %v8686_v3 = vcombine.high %v8681_v27, %v8681_v27 }
 0x1e7   : > { %v8688_v58 = vcombine.high %v8684_v34, %v8684_v34  ;;  %v5180_v1 = vcombine.low %v5172_v49, %v5179_v6  ;;  %v3963_v54 = vcombine.high %v3961_v22, %v3961_v22  ;;  %v4516_v7 = vadd.f32 %v3962_v8, %v3289_v40 }
 0x1e8   : > { %v3187_v11 = vsel %vm1916_vm2, %v8686_v3, %v8685_v17  ;;  %v4517_v61 = vadd.f32 %v3961_v22, %v3290_v18  ;;  %v3354_v32 = vadd.f32 %v7087_v16, %v1967_v26  ;;  %v3355_v38 = vadd.f32 %v7121_v63, %v1968_v42 }
 0x1e9   : > { %v3188_v51 = vsel %vm1916_vm2, %v8688_v58, %v8687_v23  ;;  %v4219_v48 = vcombine.high %v3771_v33, %v3771_v33  ;;  %v4226_v25 = vrot.slane %v3771_v33, %v5882_v59  ;;  %5340 = vst.msk [vmem:[%s7230_s27 + $0xc8] sm:$0xff] %vm281_vm0, %v5180_v1  ;;  %v4518_v9 = vadd.f32 %v3963_v54, %v3291_v47 }
 0x1ea   : > { %v4875_v5 = vcombine.low %v4515_v60, %v4516_v7  ;;  %v3300_v41 = vadd.f32 %v5905_v14, %v3185_v37  ;;  %v3644_v45 = vadd.f32 %v7154_v15, %v7105_v56  ;;  %v8689_v26 = vrot.slane %v7069_v4, %v5886_v2 }
 0x1eb   : > { %v4233_v49 = vrot.slane %v4219_v48, %v5882_v59  ;;  %v4234_v40 = vcombine.high %v4226_v25, %v4226_v25  ;;  %v4579_v18 = vadd.f32 %v4226_v25, %v3352_v10  ;;  %v4876_v19 = vcombine.low %v4517_v61, %v4518_v9  ;;  %v8696_v25 = vld [vmem:[#allocation124_spill] sm:$0xff] }
 0x1ec   : > { %v3217_v42 = vsel %vm1916_vm2, %v7022_v35, %v8689_v26  ;;  %v4883_v13 = vrot.slane %v4875_v5, %v5882_v59  ;;  %v3758_v47 = vmax.f32 %v3644_v45, 0.0  ;;  %v8690_v27 = vrot.slane %v7092_v28, %v5886_v2  ;;  %v8698_v5 = vld [vmem:[#allocation117_spill] sm:$0xff]  ;;  %v8699_v45 = vld [vmem:[#allocation130_spill] sm:$0xff] }
 0x1ed   : > { %v4235_v15 = vcombine.high %v4233_v49, %v4233_v49  ;;  %v4580_v37 = vadd.f32 %v4234_v40, %v3353_v24  ;;  %v4581_v50 = vadd.f32 %v4233_v49, %v3354_v32  ;;  %v8691_v4 = vcombine.high %v7022_v35, %v7022_v35  ;;  %v8693_v32 = vld [vmem:[#allocation121_spill] sm:$0xff] }
 0x1ee   : > { %v3218_v56 = vsel %vm1916_vm2, %v7043_v43, %v8690_v27  ;;  %v4890_v30 = vrot.slane %v4876_v19, %v5882_v59  ;;  %v3998_v34 = vcombine.high %v3758_v47, %v3758_v47  ;;  %v4005_v6 = vrot.slane %v3758_v47, %v5882_v59 }
 0x1ef   : > { %v3219_v10 = vsel %vm1916_vm2, %v8691_v4, %v7137_v46  ;;  %v8692_v28 = vcombine.high %v7043_v43, %v7043_v43  ;;  %v4582_v8 = vadd.f32 %v4235_v15, %v3355_v38  ;;  %v5147_v60 = vcombine.low %v4579_v18, %v4580_v37  ;;  %v8695_v38 = vld [vmem:[#allocation113_spill] sm:$0xff] }
 0x1f0   : > { %v3301_v24 = vadd.f32 %v7100_v21, %v3186_v36  ;;  %v3302_v35 = vadd.f32 %v7087_v16, %v3187_v11  ;;  %v4891_v33 = vcombine.low %v4883_v13, %v4890_v30  ;;  %v4012_v46 = vrot.slane %v3998_v34, %v5882_v59  ;;  %v7833_v36 = vld [vmem:[%s8180_s5] ss:$0 sm:$0xff] }
 0x1f1   : > { %v3220_v22 = vsel %vm1916_vm2, %v8692_v28, %v7157_v39  ;;  %v4013_v17 = vcombine.high %v4005_v6, %v4005_v6  ;;  %v4527_v3 = vadd.f32 %v4005_v6, %v3300_v41  ;;  %v5148_v23 = vcombine.low %v4581_v50, %v4582_v8  ;;  %v8703_v8 = vld [vmem:[#allocation164_spill] sm:$0xff] }
 0x1f2   : > { %v5155_v58 = vrot.slane %v5147_v60, %v5882_v59  ;;  %v3303_v1 = vadd.f32 %v7121_v63, %v3188_v51  ;;  %v3364_v43 = vadd.f32 %v5905_v14, %v3217_v42  ;;  %5323 = vst.msk [vmem:[%s7230_s27 + $0x40] sm:$0xff] %vm281_vm0, %v4891_v33  ;;  %v4014_v39 = vcombine.high %v4012_v46, %v4012_v46  ;;  %v8701_v42 = vld [vmem:[#allocation133_spill] sm:$0xff]  ;;  %v8705_v60 = vld [vmem:[#allocation159_spill] sm:$0xff] }
 0x1f3   : > { %v4528_v54 = vadd.f32 %v4013_v17, %v3301_v24  ;;  %v4529_v7 = vadd.f32 %v4012_v46, %v3302_v35  ;;  %v3724_v11 = vadd.f32 %v7833_v36, %v7190_v0  ;;  %v5162_v61 = vrot.slane %v5148_v23, %v5882_v59  ;;  %v8708_v35 = vld [vmem:[#allocation161_spill] sm:$0xff] }
 0x1f4   : > { %v8694_v51 = vrot.slane %v8693_v32, %v5886_v2  ;;  %v8697_v9 = vrot.slane %v8696_v25, %v5886_v2  ;;  %v8700_v49 = vcombine.high %v8695_v38, %v8695_v38  ;;  %v4530_v40 = vadd.f32 %v4014_v39, %v3303_v1  ;;  %v8709_v1 = vld [vmem:[#allocation167_spill] sm:$0xff] }
 0x1f5   : > { %v4926_v18 = vcombine.low %v4527_v3, %v4528_v54  ;;  %v3774_v26 = vmax.f32 %v3724_v11, 0.0  ;;  %v8702_v19 = vcombine.high %v8698_v5, %v8698_v5  ;;  %v5163_v47 = vcombine.low %v5155_v58, %v5162_v61 }
 0x1f6   : > { %v3181_v48 = vsel %vm1916_vm2, %v8695_v38, %v8694_v51  ;;  %v3182_v41 = vsel %vm1916_vm2, %v8698_v5, %v8697_v9  ;;  %v3183_v0 = vsel %vm1916_vm2, %v8700_v49, %v8699_v45  ;;  %v3365_v27 = vadd.f32 %v7100_v21, %v3218_v56 }
 0x1f7   : > { %v3184_v13 = vsel %vm1916_vm2, %v8702_v19, %v8701_v42  ;;  %v3366_v15 = vadd.f32 %v7087_v16, %v3219_v10  ;;  %v3367_v37 = vadd.f32 %v7121_v63, %v3220_v22  ;;  %v4927_v50 = vcombine.low %v4529_v7, %v4530_v40  ;;  %5339 = vst.msk [vmem:[%s7230_s27 + $0xc0] sm:$0xff] %vm281_vm0, %v5163_v47  ;;  %v8706_v22 = vld [vmem:[#allocation165_spill] sm:$0xff]  ;;  %v8711_v7 = vld [vmem:[#allocation168_spill] sm:$0xff]  ;;  %v8713_v19 = vld [vmem:[#allocation19_spill] sm:$0xff] }
 0x1f8   : > { %v4270_v4 = vcombine.high %v3774_v26, %v3774_v26  ;;  %v4277_v30 = vrot.slane %v3774_v26, %v5882_v59  ;;  %v3296_v34 = vadd.f32 %v5905_v14, %v3181_v48  ;;  %v4934_v6 = vrot.slane %v4926_v18, %v5882_v59 }
 0x1f9   : > { %v3639_v28 = vadd.f32 %v7833_v36, %v7223_v52  ;;  %v8704_v56 = vrot.slane %v8703_v8, %v5886_v2  ;;  %v8707_v24 = vrot.slane %v8706_v22, %v5886_v2  ;;  %v4941_v46 = vrot.slane %v4927_v50, %v5882_v59  ;;  %v8716_v50 = vld [vmem:[#allocation21_spill] sm:$0xff] }
 0x1fa   : > { %v4284_v17 = vrot.slane %v4270_v4, %v5882_v59  ;;  %v4285_v3 = vcombine.high %v4277_v30, %v4277_v30  ;;  %v4591_v23 = vadd.f32 %v4277_v30, %v3364_v43  ;;  %v3297_v52 = vadd.f32 %v7100_v21, %v3182_v41  ;;  %v8718_v30 = vld [vmem:[#allocation17_spill] sm:$0xff] }
 0x1fb   : > { %v3213_v10 = vsel %vm1916_vm2, %v8705_v60, %v8704_v56  ;;  %v3214_v33 = vsel %vm1916_vm2, %v8708_v35, %v8707_v24  ;;  %v3757_v58 = vmax.f32 %v3639_v28, 0.0  ;;  %v8710_v39 = vcombine.high %v8705_v60, %v8705_v60 }
 0x1fc   : > { %v8712_v11 = vcombine.high %v8708_v35, %v8708_v35  ;;  %v4942_v32 = vcombine.low %v4934_v6, %v4941_v46  ;;  %v4286_v51 = vcombine.high %v4284_v17, %v4284_v17  ;;  %v4592_v38 = vadd.f32 %v4285_v3, %v3365_v27  ;;  %v8721_v35 = vld [vmem:[#allocation27_spill] sm:$0xff] }
 0x1fd   : > { %v3215_v54 = vsel %vm1916_vm2, %v8710_v39, %v8709_v1  ;;  %v4593_v48 = vadd.f32 %v4284_v17, %v3366_v15  ;;  %v3298_v43 = vadd.f32 %v7087_v16, %v3183_v0  ;;  %v3299_v25 = vadd.f32 %v7121_v63, %v3184_v13  ;;  %v8715_v13 = vld [vmem:[#allocation15_spill] sm:$0xff] }
 0x1fe   : > { %v3216_v61 = vsel %vm1916_vm2, %v8712_v11, %v8711_v7  ;;  %v3981_v9 = vcombine.high %v3757_v58, %v3757_v58  ;;  %v3988_v5 = vrot.slane %v3757_v58, %v5882_v59  ;;  %5326 = vst.msk [vmem:[%s7230_s27 + $0x58] sm:$0xff] %vm281_vm0, %v4942_v32  ;;  %v4594_v41 = vadd.f32 %v4286_v51, %v3367_v37 }
 0x1ff   : > { %v5198_v45 = vcombine.low %v4591_v23, %v4592_v38  ;;  %v3360_v49 = vadd.f32 %v5905_v14, %v3213_v10  ;;  %v3719_v40 = vadd.f32 %v7833_v36, %v7261_v55  ;;  %v8714_v0 = vrot.slane %v8713_v19, %v5886_v2 }
 0x200   : > { %v3995_v18 = vrot.slane %v3981_v9, %v5882_v59  ;;  %v3996_v26 = vcombine.high %v3988_v5, %v3988_v5  ;;  %v4523_v42 = vadd.f32 %v3988_v5, %v3296_v34  ;;  %v5199_v27 = vcombine.low %v4593_v48, %v4594_v41  ;;  %v8719_v34 = vld [vmem:[#allocation23_spill] sm:$0xff]  ;;  %v8723_v5 = vld [vmem:[#allocation61_spill] sm:$0xff] }
 0x201   : > { %v1945_v47 = vsel %vm1916_vm2, %v8715_v13, %v8714_v0  ;;  %v5206_v15 = vrot.slane %v5198_v45, %v5882_v59  ;;  %v3773_v37 = vmax.f32 %v3719_v40, 0.0  ;;  %v8717_v4 = vrot.slane %v8716_v50, %v5886_v2  ;;  %v8725_v45 = vld [vmem:[#allocation55_spill] sm:$0xff] }
 0x202   : > { %v3997_v6 = vcombine.high %v3995_v18, %v3995_v18  ;;  %v4524_v28 = vadd.f32 %v3996_v26, %v3297_v52  ;;  %v4525_v8 = vadd.f32 %v3995_v18, %v3298_v43  ;;  %v8720_v56 = vcombine.high %v8715_v13, %v8715_v13  ;;  %v8728_v18 = vld [vmem:[#allocation63_spill] sm:$0xff] }
 0x203   : > { %v1946_v55 = vsel %vm1916_vm2, %v8718_v30, %v8717_v4  ;;  %v5213_v10 = vrot.slane %v5199_v27, %v5882_v59  ;;  %v4253_v22 = vcombine.high %v3773_v37, %v3773_v37  ;;  %v4260_v24 = vrot.slane %v3773_v37, %v5882_v59  ;;  %v8731_v27 = vld [vmem:[#allocation75_spill] sm:$0xff] }
 0x204   : > { %v1947_v60 = vsel %vm1916_vm2, %v8720_v56, %v8719_v34  ;;  %v8722_v46 = vcombine.high %v8718_v30, %v8718_v30  ;;  %v4526_v3 = vadd.f32 %v3997_v6, %v3299_v25  ;;  %v4909_v23 = vcombine.low %v4523_v42, %v4524_v28  ;;  %v8729_v42 = vld [vmem:[#allocation67_spill] sm:$0xff] }
 0x205   : > { %v3361_v52 = vadd.f32 %v7100_v21, %v3214_v33  ;;  %v3362_v58 = vadd.f32 %v7087_v16, %v3215_v54  ;;  %v5214_v1 = vcombine.low %v5206_v15, %v5213_v10  ;;  %v4267_v39 = vrot.slane %v4253_v22, %v5882_v59 }
 0x206   : > { %v1948_v17 = vsel %vm1916_vm2, %v8722_v46, %v8721_v35  ;;  %v4268_v7 = vcombine.high %v4260_v24, %v4260_v24  ;;  %v4587_v11 = vadd.f32 %v4260_v24, %v3360_v49  ;;  %v4910_v32 = vcombine.low %v4525_v8, %v4526_v3  ;;  %v8733_v24 = vld [vmem:[#allocation18_spill] sm:$0xff]  ;;  %v8736_v46 = vld [vmem:[#allocation20_spill] sm:$0xff] }
 0x207   : > { %v4917_v51 = vrot.slane %v4909_v23, %v5882_v59  ;;  %v3363_v38 = vadd.f32 %v7121_v63, %v3216_v61  ;;  %v3308_v48 = vadd.f32 %v5905_v14, %v1945_v47  ;;  %5342 = vst.msk [vmem:[%s7230_s27 + $0xd8] sm:$0xff] %vm281_vm0, %v5214_v1  ;;  %v4269_v43 = vcombine.high %v4267_v39, %v4267_v39  ;;  %v8726_v61 = vld [vmem:[#allocation65_spill] sm:$0xff]  ;;  %v8735_v35 = vld [vmem:[#allocation14_spill] sm:$0xff]  ;;  %v8738_v3 = vld [vmem:[#allocation16_spill] sm:$0xff] }
 0x208   : > { %v4588_v25 = vadd.f32 %v4268_v7, %v3361_v52  ;;  %v4589_v9 = vadd.f32 %v4267_v39, %v3362_v58  ;;  %v3654_v33 = vadd.f32 %v7833_v36, %v7294_v31  ;;  %v4924_v54 = vrot.slane %v4910_v32, %v5882_v59 }
 0x209   : > { %v8724_v41 = vrot.slane %v8723_v5, %v5886_v2  ;;  %v8727_v40 = vrot.slane %v8726_v61, %v5886_v2  ;;  %v8730_v19 = vcombine.high %v8725_v45, %v8725_v45  ;;  %v4590_v0 = vadd.f32 %v4269_v43, %v3363_v38  ;;  %v8741_v38 = vld [vmem:[#allocation26_spill] sm:$0xff] }
 0x20a   : > { %v5181_v13 = vcombine.low %v4587_v11, %v4588_v25  ;;  %v3760_v47 = vmax.f32 %v3654_v33, 0.0  ;;  %v8732_v15 = vcombine.high %v8728_v18, %v8728_v18  ;;  %v4925_v50 = vcombine.low %v4917_v51, %v4924_v54  ;;  %v8739_v11 = vld [vmem:[#allocation22_spill] sm:$0xff] }
 0x20b   : > { %v1977_v49 = vsel %vm1916_vm2, %v8725_v45, %v8724_v41  ;;  %v1978_v26 = vsel %vm1916_vm2, %v8728_v18, %v8727_v40  ;;  %v1979_v31 = vsel %vm1916_vm2, %v8730_v19, %v8729_v42  ;;  %v3309_v4 = vadd.f32 %v7100_v21, %v1946_v55 }
 0x20c   : > { %v1980_v37 = vsel %vm1916_vm2, %v8732_v15, %v8731_v27  ;;  %v3310_v30 = vadd.f32 %v7087_v16, %v1947_v60  ;;  %v3311_v6 = vadd.f32 %v7121_v63, %v1948_v17  ;;  %v5182_v28 = vcombine.low %v4589_v9, %v4590_v0  ;;  %5325 = vst.msk [vmem:[%s7230_s27 + $0x50] sm:$0xff] %vm281_vm0, %v4925_v50 }
 0x20d   : > { %v4032_v8 = vcombine.high %v3760_v47, %v3760_v47  ;;  %v4039_v34 = vrot.slane %v3760_v47, %v5882_v59  ;;  %v3372_v56 = vadd.f32 %v5905_v14, %v1977_v49  ;;  %v5189_v10 = vrot.slane %v5181_v13, %v5882_v59  ;;  %v8743_v13 = vld [vmem:[#allocation60_spill] sm:$0xff]  ;;  %v8745_v47 = vld [vmem:[#allocation54_spill] sm:$0xff] }
 0x20e   : > { %v3734_v22 = vadd.f32 %v7833_v36, %v7331_v62  ;;  %v8734_v55 = vrot.slane %v8733_v24, %v5886_v2  ;;  %v8737_v17 = vrot.slane %v8736_v46, %v5886_v2  ;;  %v5196_v52 = vrot.slane %v5182_v28, %v5882_v59 }
 0x20f   : > { %v4046_v58 = vrot.slane %v4032_v8, %v5882_v59  ;;  %v4047_v1 = vcombine.high %v4039_v34, %v4039_v34  ;;  %v4535_v39 = vadd.f32 %v4039_v34, %v3308_v48  ;;  %v3373_v62 = vadd.f32 %v7100_v21, %v1978_v26 }
 0x210   : > { %v1941_v60 = vsel %vm1916_vm2, %v8735_v35, %v8734_v55  ;;  %v1942_v23 = vsel %vm1916_vm2, %v8738_v3, %v8737_v17  ;;  %v3776_v7 = vmax.f32 %v3734_v22, 0.0  ;;  %v8740_v32 = vcombine.high %v8735_v35, %v8735_v35 }
 0x211   : > { %v8742_v43 = vcombine.high %v8738_v3, %v8738_v3  ;;  %v5197_v9 = vcombine.low %v5189_v10, %v5196_v52  ;;  %v4048_v33 = vcombine.high %v4046_v58, %v4046_v58  ;;  %v4536_v54 = vadd.f32 %v4047_v1, %v3309_v4  ;;  %v8746_v4 = vld [vmem:[#allocation64_spill] sm:$0xff] }
 0x212   : > { %v1943_v51 = vsel %vm1916_vm2, %v8740_v32, %v8739_v11  ;;  %v4537_v5 = vadd.f32 %v4046_v58, %v3310_v30  ;;  %v3374_v48 = vadd.f32 %v7087_v16, %v1979_v31  ;;  %v3375_v41 = vadd.f32 %v7121_v63, %v1980_v37 }
 0x213   : > { %v1944_v25 = vsel %vm1916_vm2, %v8742_v43, %v8741_v38  ;;  %v4304_v45 = vcombine.high %v3776_v7, %v3776_v7  ;;  %v4311_v49 = vrot.slane %v3776_v7, %v5882_v59  ;;  %5341 = vst.msk [vmem:[%s7230_s27 + $0xd0] sm:$0xff] %vm281_vm0, %v5197_v9  ;;  %v4538_v61 = vadd.f32 %v4048_v33, %v3311_v6  ;;  %v8748_v6 = vld [vmem:[#allocation56_spill] sm:$0xff] }
 0x214   : > { %v4960_v40 = vcombine.low %v4535_v39, %v4536_v54  ;;  %v3304_v18 = vadd.f32 %v5905_v14, %v1941_v60  ;;  %v3649_v26 = vadd.f32 %v7833_v36, %v7364_v53  ;;  %v8744_v31 = vrot.slane %v8743_v13, %v5886_v2  ;;  %v8751_v60 = vld [vmem:[#allocation74_spill] sm:$0xff] }
 0x215   : > { %v4318_v42 = vrot.slane %v4304_v45, %v5882_v59  ;;  %v4319_v19 = vcombine.high %v4311_v49, %v4311_v49  ;;  %v4599_v0 = vadd.f32 %v4311_v49, %v3372_v56  ;;  %v4961_v15 = vcombine.low %v4537_v5, %v4538_v61  ;;  %v8749_v56 = vld [vmem:[#allocation66_spill] sm:$0xff] }
 0x216   : > { %v1973_v27 = vsel %vm1916_vm2, %v8745_v47, %v8744_v31  ;;  %v4968_v37 = vrot.slane %v4960_v40, %v5882_v59  ;;  %v3759_v50 = vmax.f32 %v3649_v26, 0.0  ;;  %v8747_v30 = vrot.slane %v8746_v4, %v5886_v2  ;;  %v8755_v45 = vld [vmem:[#allocation102_spill] sm:$0xff]  ;;  %v8758_v40 = vld [vmem:[#allocation107_spill] sm:$0xff]  ;;  %v8759_v26 = vld [vmem:[#allocation116_spill] sm:$0xff] }
 0x217   : > { %v4320_v28 = vcombine.high %v4318_v42, %v4318_v42  ;;  %v4600_v8 = vadd.f32 %v4319_v19, %v3373_v62  ;;  %v4601_v34 = vadd.f32 %v4318_v42, %v3374_v48  ;;  %v8750_v10 = vcombine.high %v8745_v47, %v8745_v47  ;;  %v8753_v48 = vld [vmem:[#allocation109_spill] sm:$0xff]  ;;  %v8761_v31 = vld [vmem:[#allocation120_spill] sm:$0xff] }
 0x218   : > { %v1974_v53 = vsel %vm1916_vm2, %v8748_v6, %v8747_v30  ;;  %v4975_v24 = vrot.slane %v4961_v15, %v5882_v59  ;;  %v4015_v55 = vcombine.high %v3759_v50, %v3759_v50  ;;  %v4022_v35 = vrot.slane %v3759_v50, %v5882_v59 }
 0x219   : > { %v1975_v22 = vsel %vm1916_vm2, %v8750_v10, %v8749_v56  ;;  %v8752_v46 = vcombine.high %v8748_v6, %v8748_v6  ;;  %v4602_v3 = vadd.f32 %v4320_v28, %v3375_v41  ;;  %v5232_v52 = vcombine.low %v4599_v0, %v4600_v8  ;;  %v8763_v10 = vld [vmem:[#allocation155_spill] sm:$0xff] }
 0x21a   : > { %v3305_v58 = vadd.f32 %v7100_v21, %v1942_v23  ;;  %v3306_v1 = vadd.f32 %v7087_v16, %v1943_v51  ;;  %v4976_v39 = vcombine.low %v4968_v37, %v4975_v24  ;;  %v4029_v62 = vrot.slane %v4015_v55, %v5882_v59  ;;  %v8765_v24 = vld [vmem:[#allocation150_spill] sm:$0xff] }
 0x21b   : > { %v1976_v17 = vsel %vm1916_vm2, %v8752_v46, %v8751_v60  ;;  %v4030_v7 = vcombine.high %v4022_v35, %v4022_v35  ;;  %v4531_v11 = vadd.f32 %v4022_v35, %v3304_v18  ;;  %v5233_v32 = vcombine.low %v4601_v34, %v4602_v3  ;;  %v8766_v55 = vld [vmem:[#allocation158_spill] sm:$0xff]  ;;  %v8768_v60 = vld [vmem:[#allocation153_spill] sm:$0xff] }
 0x21c   : > { %v5240_v38 = vrot.slane %v5232_v52, %v5882_v59  ;;  %v3307_v43 = vadd.f32 %v7121_v63, %v1944_v25  ;;  %v3368_v9 = vadd.f32 %v5905_v14, %v1973_v27  ;;  %5328 = vst.msk [vmem:[%s7230_s27 + $0x68] sm:$0xff] %vm281_vm0, %v4976_v39  ;;  %v4031_v33 = vcombine.high %v4029_v62, %v4029_v62  ;;  %v8756_v25 = vld [vmem:[#allocation112_spill] sm:$0xff]  ;;  %v8769_v39 = vld [vmem:[#allocation163_spill] sm:$0xff] }
 0x21d   : > { %v4532_v54 = vadd.f32 %v4030_v7, %v3305_v58  ;;  %v4533_v5 = vadd.f32 %v4029_v62, %v3306_v1  ;;  %v3729_v23 = vadd.f32 %v7833_v36, %v7396_v12  ;;  %v5247_v51 = vrot.slane %v5233_v32, %v5882_v59 }
 0x21e   : > { %v8754_v41 = vrot.slane %v8753_v48, %v5886_v2  ;;  %v8757_v61 = vrot.slane %v8756_v25, %v5886_v2  ;;  %v8760_v42 = vcombine.high %v8755_v45, %v8755_v45  ;;  %v4534_v19 = vadd.f32 %v4031_v33, %v3307_v43 }
 0x21f   : > { %v4943_v0 = vcombine.low %v4531_v11, %v4532_v54  ;;  %v3775_v13 = vmax.f32 %v3729_v23, 0.0  ;;  %v8762_v47 = vcombine.high %v8758_v40, %v8758_v40  ;;  %v5248_v15 = vcombine.low %v5240_v38, %v5247_v51  ;;  %v8771_v11 = vld [vmem:[#allocation166_spill] sm:$0xff] }
 0x220   : > { %v3193_v49 = vsel %vm1916_vm2, %v8755_v45, %v8754_v41  ;;  %v3194_v18 = vsel %vm1916_vm2, %v8758_v40, %v8757_v61  ;;  %v3195_v12 = vsel %vm1916_vm2, %v8760_v42, %v8759_v26  ;;  %v3369_v37 = vadd.f32 %v7100_v21, %v1974_v53  ;;  %v8773_v26 = vld [vmem:[#allocation108_spill] sm:$0xff] }
 0x221   : > { %v3196_v27 = vsel %vm1916_vm2, %v8762_v47, %v8761_v31  ;;  %v3370_v50 = vadd.f32 %v7087_v16, %v1975_v22  ;;  %v3371_v4 = vadd.f32 %v7121_v63, %v1976_v17  ;;  %v4944_v30 = vcombine.low %v4533_v5, %v4534_v19  ;;  %5344 = vst.msk [vmem:[%s7230_s27 + $0xe8] sm:$0xff] %vm281_vm0, %v5248_v15  ;;  %v8776_v47 = vld [vmem:[#allocation111_spill] sm:$0xff]  ;;  %v8778_v15 = vld [vmem:[#allocation105_spill] sm:$0xff] }
 0x222   : > { %v4287_v6 = vcombine.high %v3775_v13, %v3775_v13  ;;  %v4294_v28 = vrot.slane %v3775_v13, %v5882_v59  ;;  %v3316_v8 = vadd.f32 %v5905_v14, %v3193_v49  ;;  %v4951_v34 = vrot.slane %v4943_v0, %v5882_v59 }
 0x223   : > { %v3664_v56 = vadd.f32 %v7833_v36, %v7433_v57  ;;  %v8764_v53 = vrot.slane %v8763_v10, %v5886_v2  ;;  %v8767_v35 = vrot.slane %v8766_v55, %v5886_v2  ;;  %v4958_v17 = vrot.slane %v4944_v30, %v5882_v59  ;;  %v8779_v30 = vld [vmem:[#allocation114_spill] sm:$0xff]  ;;  %v8781_v10 = vld [vmem:[#allocation119_spill] sm:$0xff] }
 0x224   : > { %v4301_v3 = vrot.slane %v4287_v6, %v5882_v59  ;;  %v4302_v52 = vcombine.high %v4294_v28, %v4294_v28  ;;  %v4595_v58 = vadd.f32 %v4294_v28, %v3368_v9  ;;  %v3317_v57 = vadd.f32 %v7100_v21, %v3194_v18 }
 0x225   : > { %v3225_v22 = vsel %vm1916_vm2, %v8765_v24, %v8764_v53  ;;  %v3226_v46 = vsel %vm1916_vm2, %v8768_v60, %v8767_v35  ;;  %v3762_v1 = vmax.f32 %v3664_v56, 0.0  ;;  %v8770_v62 = vcombine.high %v8765_v24, %v8765_v24 }
 0x226   : > { %v8772_v32 = vcombine.high %v8768_v60, %v8768_v60  ;;  %v4959_v43 = vcombine.low %v4951_v34, %v4958_v17  ;;  %v4303_v33 = vcombine.high %v4301_v3, %v4301_v3  ;;  %v4596_v54 = vadd.f32 %v4302_v52, %v3369_v37 }
 0x227   : > { %v3227_v7 = vsel %vm1916_vm2, %v8770_v62, %v8769_v39  ;;  %v4597_v5 = vadd.f32 %v4301_v3, %v3370_v50  ;;  %v3318_v9 = vadd.f32 %v7087_v16, %v3195_v12  ;;  %v3319_v23 = vadd.f32 %v7121_v63, %v3196_v27  ;;  %v8775_v12 = vld [vmem:[#allocation101_spill] sm:$0xff] }
 0x228   : > { %v3228_v38 = vsel %vm1916_vm2, %v8772_v32, %v8771_v11  ;;  %v4066_v51 = vcombine.high %v3762_v1, %v3762_v1  ;;  %v4073_v48 = vrot.slane %v3762_v1, %v5882_v59  ;;  %5327 = vst.msk [vmem:[%s7230_s27 + $0x60] sm:$0xff] %vm281_vm0, %v4959_v43  ;;  %v4598_v41 = vadd.f32 %v4303_v33, %v3371_v4 }
 0x229   : > { %v5215_v45 = vcombine.low %v4595_v58, %v4596_v54  ;;  %v3380_v49 = vadd.f32 %v5905_v14, %v3225_v22  ;;  %v3744_v25 = vadd.f32 %v7833_v36, %v7466_v29  ;;  %v8774_v42 = vrot.slane %v8773_v26, %v5886_v2  ;;  %v8784_v54 = vld [vmem:[#allocation154_spill] sm:$0xff] }
 0x22a   : > { %v4080_v61 = vrot.slane %v4066_v51, %v5882_v59  ;;  %v4081_v40 = vcombine.high %v4073_v48, %v4073_v48  ;;  %v4543_v18 = vadd.f32 %v4073_v48, %v3316_v8  ;;  %v5216_v0 = vcombine.low %v4597_v5, %v4598_v41  ;;  %v8787_v51 = vld [vmem:[#allocation156_spill] sm:$0xff] }
 0x22b   : > { %v3189_v19 = vsel %vm1916_vm2, %v8775_v12, %v8774_v42  ;;  %v5223_v13 = vrot.slane %v5215_v45, %v5882_v59  ;;  %v3778_v31 = vmax.f32 %v3744_v25, 0.0  ;;  %v8777_v27 = vrot.slane %v8776_v47, %v5886_v2  ;;  %v8789_v41 = vld [vmem:[#allocation160_spill] sm:$0xff] }
 0x22c   : > { %v4082_v37 = vcombine.high %v4080_v61, %v4080_v61  ;;  %v4544_v50 = vadd.f32 %v4081_v40, %v3317_v57  ;;  %v4545_v4 = vadd.f32 %v4080_v61, %v3318_v9  ;;  %v8780_v6 = vcombine.high %v8775_v12, %v8775_v12  ;;  %v8783_v57 = vld [vmem:[#allocation152_spill] sm:$0xff]  ;;  %v8786_v9 = vld [vmem:[#allocation149_spill] sm:$0xff]  ;;  %v8791_v40 = vld [vmem:[#allocation162_spill] sm:$0xff] }
 0x22d   : > { %v3190_v29 = vsel %vm1916_vm2, %v8778_v15, %v8777_v27  ;;  %v5230_v8 = vrot.slane %v5216_v0, %v5882_v59  ;;  %v4338_v34 = vcombine.high %v3778_v31, %v3778_v31  ;;  %v4345_v56 = vrot.slane %v3778_v31, %v5882_v59 }
 0x22e   : > { %v3191_v28 = vsel %vm1916_vm2, %v8780_v6, %v8779_v30  ;;  %v8782_v53 = vcombine.high %v8778_v15, %v8778_v15  ;;  %v4546_v22 = vadd.f32 %v4082_v37, %v3319_v23  ;;  %v4994_v55 = vcombine.low %v4543_v18, %v4544_v50 }
 0x22f   : > { %v3381_v35 = vadd.f32 %v7100_v21, %v3226_v46  ;;  %v3382_v60 = vadd.f32 %v7087_v16, %v3227_v7  ;;  %v5231_v17 = vcombine.low %v5223_v13, %v5230_v8  ;;  %v4352_v3 = vrot.slane %v4338_v34, %v5882_v59 }
 0x230   : > { %v3192_v24 = vsel %vm1916_vm2, %v8782_v53, %v8781_v10  ;;  %v4353_v52 = vcombine.high %v4345_v56, %v4345_v56  ;;  %v4607_v58 = vadd.f32 %v4345_v56, %v3380_v49  ;;  %v2379_v1 = vcombine.high %v8783_v57, %v8783_v57 }
 0x231   : > { %v4995_v39 = vcombine.low %v4545_v4, %v4546_v22  ;;  %v5002_v62 = vrot.slane %v4994_v55, %v5882_v59  ;;  %v3383_v11 = vadd.f32 %v7121_v63, %v3228_v38  ;;  %5343 = vst.msk [vmem:[%s7230_s27 + $0xe0] sm:$0xff] %vm281_vm0, %v5231_v17  ;;  %v4354_v32 = vcombine.high %v4352_v3, %v4352_v3 }
 0x232   : > { %v4608_v43 = vadd.f32 %v4353_v52, %v3381_v35  ;;  %v4609_v46 = vadd.f32 %v4352_v3, %v3382_v60  ;;  %v3659_v7 = vadd.f32 %v7833_v36, %v7498_v44  ;;  %v8785_v5 = vrot.slane %v8784_v54, %v5886_v2 }
 0x233   : > { %v5009_v33 = vrot.slane %v4995_v39, %v5882_v59  ;;  %v8788_v38 = vrot.slane %v8787_v51, %v5886_v2  ;;  %v8790_v45 = vcombine.high %v8786_v9, %v8786_v9  ;;  %v4610_v49 = vadd.f32 %v4354_v32, %v3383_v11 }
 0x234   : > { %v3221_v23 = vsel %vm1916_vm2, %v8786_v9, %v8785_v5  ;;  %v5266_v25 = vcombine.low %v4607_v58, %v4608_v43  ;;  %v3761_v61 = vmax.f32 %v3659_v7, 0.0  ;;  %v3224_v18 = vsel %vm1916_vm2, %v2379_v1, %v8791_v40 }
 0x235   : > { %v3222_v48 = vsel %vm1916_vm2, %v8783_v57, %v8788_v38  ;;  %v3223_v44 = vsel %vm1916_vm2, %v8790_v45, %v8789_v41  ;;  %v5010_v26 = vcombine.low %v5002_v62, %v5009_v33  ;;  %v5267_v42 = vcombine.low %v4609_v46, %v4610_v49 }
 0x236   : > { %v3312_v12 = vadd.f32 %v5905_v14, %v3189_v19  ;;  %v4049_v2 = vcombine.high %v3761_v61, %v3761_v61  ;;  %v4056_v0 = vrot.slane %v3761_v61, %v5882_v59  ;;  %v5274_v13 = vrot.slane %v5266_v25, %v5882_v59 }
 0x237   : > { %5330 = vst.msk [vmem:[%s7230_s27 + $0x78] sm:$0xff] %vm281_vm0, %v5010_v26  ;;  %v3313_v31 = vadd.f32 %v7100_v21, %v3190_v29  ;;  %v3314_v47 = vadd.f32 %v7087_v16, %v3191_v28  ;;  %v3739_v27 = vadd.f32 %v7833_v36, %v7535_v20  ;;  %v5281_v15 = vrot.slane %v5267_v42, %v5882_v59 }
 0x238   : > { %v4063_v37 = vrot.slane %v4049_v2, %v5882_v59  ;;  %v4064_v19 = vcombine.high %v4056_v0, %v4056_v0  ;;  %v4539_v50 = vadd.f32 %v4056_v0, %v3312_v12  ;;  %v3315_v4 = vadd.f32 %v7121_v63, %v3192_v24 }
 0x239   : > { %v3777_v30 = vmax.f32 %v3739_v27, 0.0  ;;  %v5282_v6 = vcombine.low %v5274_v13, %v5281_v15  ;;  %v3376_v29 = vadd.f32 %v5905_v14, %v3221_v23  ;;  %v3377_v53 = vadd.f32 %v7100_v21, %v3222_v48 }
 0x23a   : > { %v4065_v8 = vcombine.high %v4063_v37, %v4063_v37  ;;  %v4540_v34 = vadd.f32 %v4064_v19, %v3313_v31  ;;  %v4541_v56 = vadd.f32 %v4063_v37, %v3314_v47  ;;  %v3378_v22 = vadd.f32 %v7087_v16, %v3223_v44 }
 0x23b   : > { %v4321_v10 = vcombine.high %v3777_v30, %v3777_v30  ;;  %v4328_v28 = vrot.slane %v3777_v30, %v5882_v59  ;;  %5346 = vst.msk [vmem:[%s7230_s27 + $0xf8] sm:$0xff] %vm281_vm0, %v5282_v6  ;;  %v3379_v14 = vadd.f32 %v7121_v63, %v3224_v18 }
 0x23c   : > { %v4542_v20 = vadd.f32 %v4065_v8, %v3315_v4  ;;  %v4977_v36 = vcombine.low %v4539_v50, %v4540_v34 }
 0x23d   : > { %v4335_v24 = vrot.slane %v4321_v10, %v5882_v59  ;;  %v4336_v55 = vcombine.high %v4328_v28, %v4328_v28  ;;  %v4603_v35 = vadd.f32 %v4328_v28, %v3376_v29 }
 0x23e   : > { %v4978_v60 = vcombine.low %v4541_v56, %v4542_v20  ;;  %v4985_v58 = vrot.slane %v4977_v36, %v5882_v59 }
 0x23f   : > { %v4337_v17 = vcombine.high %v4335_v24, %v4335_v24  ;;  %v4604_v3 = vadd.f32 %v4336_v55, %v3377_v53  ;;  %v4605_v52 = vadd.f32 %v4335_v24, %v3378_v22 }
 0x240   : > { %v4992_v57 = vrot.slane %v4978_v60, %v5882_v59 }
 0x241   : > { %v4606_v1 = vadd.f32 %v4337_v17, %v3379_v14  ;;  %v5249_v21 = vcombine.low %v4603_v35, %v4604_v3 }
 0x242   : > { %v4993_v39 = vcombine.low %v4985_v58, %v4992_v57 }
 0x243   : > { %v5250_v62 = vcombine.low %v4605_v52, %v4606_v1  ;;  %v5257_v16 = vrot.slane %v5249_v21, %v5882_v59 }
 0x244   : > { %5329 = vst.msk [vmem:[%s7230_s27 + $0x70] sm:$0xff] %vm281_vm0, %v4993_v39 }
 0x245   : > { %v5264_v11 = vrot.slane %v5250_v62, %v5882_v59 }
 0x247   : > { %v5265_v32 = vcombine.low %v5257_v16, %v5264_v11 }
 0x249   : > { %5345 = vst.msk [vmem:[%s7230_s27 + $0xf0] sm:$0xff] %vm281_vm0, %v5265_v32 }
 0x24a PF: > { %s16_s21 = sadd.s32 1, %s5700_s21  }
 0x24b   : > { %p13_p4 = scmp.ge.s32.totalorder %s16_s21, 4  }
 0x24d   :  { %15 = sbr.rel (!%p13_p4) target bundleno = 1 (0x1), region = 80 }

</bundles_post_ra>
